<compile_context>
chip_gen: v6e
topology: v6e:2x2x1
jax: 0.10.0
libtpu: 0.0.40
codegen_flags: <defaults>
</compile_context>

<pallas_src>
import functools

import jax
import jax.numpy as jnp
from jax.experimental import pallas as pl
from jax.experimental.pallas import tpu as pltpu

EPS_STEM = 1e-5   # nn.LayerNorm default eps (stem LayerNorms)
EPS_TFM = 1e-6    # explicit eps=1e-6 LayerNorms (pre-stack LN, MHA LN, FFN LN)


def _layer_norm(x, gamma, beta, eps):
    mu = jnp.mean(x, axis=-1, keepdims=True)
    var = jnp.mean(jnp.square(x - mu), axis=-1, keepdims=True)
    return (x - mu) * jax.lax.rsqrt(var + eps) * gamma + beta


# ----------------------------- fused Pallas kernel -----------------------------

def _fused_kernel(B, L, H, N, A,
                  samples_ref, act_ref, bias_ref, pos_ref,
                  w1s_ref, w1a_ref, g1_ref, b1_ref, w2_ref, g2_ref, b2_ref,
                  lng_ref, lnb_ref,
                  wqkv_ref, wo_ref, ln1g_ref, ln1b_ref,
                  fw1_ref, fb1_ref, fw2_ref, fb2_ref, ln2g_ref, ln2b_ref,
                  hw_ref, hb_ref, o_ref):
    BL = B * L
    cdt = wqkv_ref.dtype        # MXU operand dtype (bf16 or f32); accumulation is f32

    # ---- stem: Linear(no bias) -> LN -> ReLU -> Linear(no bias) -> LN ----
    s = samples_ref[...].astype(cdt)                               # (BL, stoch)
    h = jnp.dot(s, w1s_ref[...], preferred_element_type=jnp.float32)
    # action one-hot @ W_action  ==  VPU select/sum over the A rows (no K=4 MXU pass)
    act = act_ref[...]                                             # (BL, 1) int32
    w1a = w1a_ref[...]                                             # (A, F) f32
    for av in range(A):
        sel = (act == av).astype(jnp.float32)                      # (BL, 1)
        h = h + sel * w1a[av:av + 1, :]                            # (BL,1)*(1,F)
    h = _layer_norm(h, g1_ref[...], b1_ref[...], EPS_STEM)
    h = jnp.maximum(h, 0.0)                                        # ReLU
    h = jnp.dot(h.astype(cdt), w2_ref[...], preferred_element_type=jnp.float32)
    h = _layer_norm(h, g2_ref[...], b2_ref[...], EPS_STEM)

    # ---- positional encoding + pre-stack LayerNorm ----
    F = h.shape[-1]
    h = (h.reshape(B, L, F) + pos_ref[...]).reshape(BL, F)         # pos: (L, F)
    h = _layer_norm(h, lng_ref[...], lnb_ref[...], EPS_TFM)

    dk = F // H
    inv_temp = 1.0 / (float(dk) ** 0.5)

    # additive attention bias, broadcast once to the (H*B, L, L) head-batched layout
    bias_b = jnp.broadcast_to(bias_ref[...], (B, L, L))            # (1orB,L,L)->(B,L,L)
    bias_hb = jnp.tile(bias_b, (H, 1, 1))                          # (H*B, L, L), z=h*B+b

    # ---- N attention blocks, activations resident in VMEM ----
    # TODO(synk): at large N use a layer grid axis (weight streaming) or fori_loop.
    for l in range(N):
        x = h                                                      # (BL, F) f32
        xc = x.astype(cdt)

        # one fused, lane-dense QKV matmul: (BL,F) @ (F,3F)
        qkv = jnp.dot(xc, wqkv_ref[l], preferred_element_type=jnp.float32)  # (BL,3F)

        def gather_heads(mat, start):
            # per-head lane strips -> (H*B, L, dk), batch index z = head*B + b
            return jnp.concatenate(
                [mat[:, start + hd * dk: start + (hd + 1) * dk].reshape(B, L, dk)
                 for hd in range(H)], axis=0)

        q = gather_heads(qkv, 0) * inv_temp                        # (HB, L, dk) f32
        k = gather_heads(qkv, F)
        v = gather_heads(qkv, 2 * F)

        # scores + softmax batched over batch*heads; no max-subtraction needed
        sc = jnp.einsum("zld,zmd->zlm", q.astype(cdt), k.astype(cdt),
                        preferred_element_type=jnp.float32) + bias_hb        # (HB,L,L)
        p = jnp.exp(sc)
        p = p / jnp.sum(p, axis=-1, keepdims=True)                 # exact reciprocal
        # TODO(synk): attention-dropout omitted (identity at inference)
        ctx = jnp.einsum("zlm,zmd->zld", p.astype(cdt), v.astype(cdt),
                         preferred_element_type=jnp.float32)                 # (HB,L,dk)

        # reassemble heads (lane concat, head-major) and apply Wo in one dense matmul
        ctx2 = jnp.concatenate(
            [ctx[hd * B:(hd + 1) * B].reshape(BL, dk) for hd in range(H)],
            axis=1)                                                          # (BL, F)
        attn = jnp.dot(ctx2.astype(cdt), wo_ref[l],
                       preferred_element_type=jnp.float32)
        h1 = _layer_norm(attn + x, ln1g_ref[l], ln1b_ref[l], EPS_TFM)

        # position-wise feed-forward (2-layer MLP with bias, ReLU), residual + LN
        f = jnp.dot(h1.astype(cdt), fw1_ref[l],
                    preferred_element_type=jnp.float32) + fb1_ref[l]
        f = jnp.maximum(f, 0.0)
        f = jnp.dot(f.astype(cdt), fw2_ref[l],
                    preferred_element_type=jnp.float32) + fb2_ref[l]
        h = _layer_norm(f + h1, ln2g_ref[l], ln2b_ref[l], EPS_TFM)

    # ---- head (lane-dense 128-wide padded output slab) ----
    y = jnp.dot(h.astype(cdt), hw_ref[...],
                preferred_element_type=jnp.float32) + hb_ref[...]
    o_ref[...] = y.astype(o_ref.dtype)


# ----------------------------- pallas_call wrapper -----------------------------

def _full_spec(a):
    n = a.ndim
    return pl.BlockSpec(a.shape, lambda i, _n=n: (0,) * _n)


def stochastic_transformer_forward(samples, action, mask, params, *,
                                   action_dim, num_heads,
                                   compute_dtype=jnp.bfloat16):
    B, L, S = samples.shape
    F = params["stem_w1"].shape[1]
    N = len(params["layers"])
    H = num_heads
    BL = B * L
    cdt = compute_dtype

    # --- light wrapper-side layout prep (runs once per call, all tiny) ---
    samples2 = samples.reshape(BL, S).astype(jnp.float32)
    act2 = action.astype(jnp.int32).reshape(BL, 1)
    mask_f = mask.astype(jnp.float32)
    if mask_f.ndim == 2:                       # batch-invariant (causal) mask
        mask_f = mask_f[None]                  # (1, L, L) — DMA does not scale with B
    bias = jnp.where(mask_f == 0.0, -1e9, 0.0).astype(jnp.float32)
    pos = params["pos_emb"][:L].astype(jnp.float32)                 # (L, F)

    w1 = params["stem_w1"]                                          # (S + A, F)
    w1s = w1[:S].astype(cdt)
    w1a = w1[S:].astype(jnp.float32)           # VPU select path, kept exact f32

    def stack(key, dtype=jnp.float32):
        return jnp.stack([lp[key] for lp in params["layers"]]).astype(dtype)

    # fused per-layer QKV weight: (N, F, 3F), columns = [wq | wk | wv] (head-major)
    wqkv = jnp.stack([jnp.concatenate([lp["wq"], lp["wk"], lp["wv"]], axis=1)
                      for lp in params["layers"]]).astype(cdt)
    wo = stack("wo", cdt)
    ln1g, ln1b = stack("ln1_g"), stack("ln1_b")
    fw1, fb1 = stack("fw1", cdt), stack("fb1")
    fw2, fb2 = stack("fw2", cdt), stack("fb2")
    ln2g, ln2b = stack("ln2_g"), stack("ln2_b")

    # pad the head to a lane-dense (multiple of 128) output width
    stoch = params["head_w"].shape[1]
    P = ((stoch + 127) // 128) * 128
    hw_p = jnp.zeros((F, P), jnp.float32).at[:, :stoch].set(params["head_w"]).astype(cdt)
    hb_p = jnp.zeros((1, P), jnp.float32).at[:, :stoch].set(params["head_b"])

    args = (samples2, act2, bias, pos,
            w1s, w1a, params["stem_g1"], params["stem_b1"],
            params["stem_w2"].astype(cdt), params["stem_g2"], params["stem_b2"],
            params["ln_g"], params["ln_b"],
            wqkv, wo, ln1g, ln1b, fw1, fb1, fw2, fb2, ln2g, ln2b,
            hw_p, hb_p)

    out2 = pl.pallas_call(
        functools.partial(_fused_kernel, B, L, H, N, action_dim),
        out_shape=jax.ShapeDtypeStruct((BL, P), jnp.float32),
        grid=(1,),
        in_specs=[_full_spec(a) for a in args],
        out_specs=pl.BlockSpec((BL, P), lambda i: (0, 0)),
        compiler_params=pltpu.CompilerParams(
            dimension_semantics=("arbitrary",),
            # within every generation's default ceiling at these shapes;
            # TODO(synk): size per generation once F/N/L grow.
            vmem_limit_bytes=32 * 1024 * 1024),
    )(*args)

    return out2[:, :stoch].reshape(B, L, stoch)


# ----------------------------- pure-JAX reference -----------------------------

def reference_forward(samples, action, mask, params, *, action_dim, num_heads):
    onehot = jax.nn.one_hot(action.astype(jnp.int32), action_dim, dtype=jnp.float32)
    h = jnp.concatenate([samples, onehot], axis=-1) @ params["stem_w1"]
    h = _layer_norm(h, params["stem_g1"], params["stem_b1"], EPS_STEM)
    h = jnp.maximum(h, 0.0)
    h = h @ params["stem_w2"]
    h = _layer_norm(h, params["stem_g2"], params["stem_b2"], EPS_STEM)
    L = samples.shape[1]
    h = h + params["pos_emb"][:L][None]
    h = _layer_norm(h, params["ln_g"], params["ln_b"], EPS_TFM)
    mask_f = mask.astype(jnp.float32)
    for lp in params["layers"]:
        F = h.shape[-1]
        dk = F // num_heads
        q, k, v = h @ lp["wq"], h @ lp["wk"], h @ lp["wv"]
        heads = []
        for hh in range(num_heads):
            lo, hi = hh * dk, (hh + 1) * dk
            qh, kh, vh = q[..., lo:hi], k[..., lo:hi], v[..., lo:hi]
            s = jnp.einsum("bqd,bkd->bqk", qh * (1.0 / (float(dk) ** 0.5)), kh)
            s = jnp.where(mask_f == 0.0, -1e9, s)
            s = s - jnp.max(s, axis=-1, keepdims=True)
            p = jnp.exp(s)
            p = p / jnp.sum(p, axis=-1, keepdims=True)
            heads.append(jnp.einsum("bqk,bkd->bqd", p, vh))
        attn = jnp.concatenate(heads, axis=-1) @ lp["wo"]
        h1 = _layer_norm(attn + h, lp["ln1_g"], lp["ln1_b"], EPS_TFM)
        f = jnp.maximum(h1 @ lp["fw1"] + lp["fb1"], 0.0)
        f = f @ lp["fw2"] + lp["fb2"]
        h = _layer_norm(f + h1, lp["ln2_g"], lp["ln2_b"], EPS_TFM)
    return h @ params["head_w"] + params["head_b"]


# ----------------------------- deterministic params -----------------------------

def init_params(key, *, stoch_dim, action_dim, feat_dim, num_layers, max_length):
    din = stoch_dim + action_dim
    hid = 2 * feat_dim
    keys = iter(jax.random.split(key, 64))

    def W(shape, scale=0.05):
        return scale * jax.random.normal(next(keys), shape, dtype=jnp.float32)

    def G(n):  # LayerNorm gamma (slightly perturbed, deterministic)
        return 1.0 + 0.1 * jax.random.normal(next(keys), (1, n), dtype=jnp.float32)

    def Bv(n):  # bias / LayerNorm beta
        return 0.1 * jax.random.normal(next(keys), (1, n), dtype=jnp.float32)

    params = dict(
        stem_w1=W((din, feat_dim)), stem_g1=G(feat_dim), stem_b1=Bv(feat_dim),
        stem_w2=W((feat_dim, feat_dim)), stem_g2=G(feat_dim), stem_b2=Bv(feat_dim),
        pos_emb=W((max_length, feat_dim), 0.1),
        ln_g=G(feat_dim), ln_b=Bv(feat_dim),
        head_w=W((feat_dim, stoch_dim)), head_b=Bv(stoch_dim),
        layers=[],
    )
    for _ in range(num_layers):
        params["layers"].append(dict(
            wq=W((feat_dim, feat_dim)), wk=W((feat_dim, feat_dim)),
            wv=W((feat_dim, feat_dim)), wo=W((feat_dim, feat_dim)),
            ln1_g=G(feat_dim), ln1_b=Bv(feat_dim),
            fw1=W((feat_dim, hid)), fb1=Bv(hid),
            fw2=W((hid, feat_dim)), fb2=Bv(feat_dim),
            ln2_g=G(feat_dim), ln2_b=Bv(feat_dim),
        ))
    return params


if __name__ == "__main__":
    B, L = 2, 8
    stoch_dim, action_dim, feat_dim = 32, 4, 64
    num_layers, num_heads, max_length = 2, 4, 16

    root = jax.random.PRNGKey(0)
    k_param, k_samp, k_act = jax.random.split(root, 3)
    params = init_params(k_param, stoch_dim=stoch_dim, action_dim=action_dim,
                         feat_dim=feat_dim, num_layers=num_layers,
                         max_length=max_length)

    samples = jax.random.normal(k_samp, (B, L, stoch_dim), dtype=jnp.float32)
    action = jax.random.randint(k_act, (B, L), 0, action_dim)
    # causal (subsequent) mask: 1 = attend, 0 = masked; batch-invariant (L, L)
    mask = jnp.tril(jnp.ones((L, L), jnp.float32))

    ref = reference_forward(samples, action, mask, params,
                            action_dim=action_dim, num_heads=num_heads)

    # f32 operand path: tight parity with the f32 reference
    out_f32 = stochastic_transformer_forward(samples, action, mask, params,
                                             action_dim=action_dim,
                                             num_heads=num_heads,
                                             compute_dtype=jnp.float32)
    out_f32 = jax.block_until_ready(out_f32)
    assert out_f32.shape == (B, L, stoch_dim), out_f32.shape
    err_f32 = float(jnp.max(jnp.abs(out_f32 - ref)))
    assert jnp.allclose(out_f32, ref, atol=2e-3, rtol=2e-3), f"f32 max_err={err_f32}"

    # bf16 MXU-operand path (the fast production path on v5e/v6e/v7x): loose
    # sanity bound vs the f32 reference (typical max err ~1e-2 at these sizes)
    out_bf16 = stochastic_transformer_forward(samples, action, mask, params,
                                              action_dim=action_dim,
                                              num_heads=num_heads,
                                              compute_dtype=jnp.bfloat16)
    out_bf16 = jax.block_until_ready(out_bf16)
    assert out_bf16.shape == (B, L, stoch_dim), out_bf16.shape
    err_bf16 = float(jnp.max(jnp.abs(out_bf16 - ref)))
    assert jnp.allclose(out_bf16, ref, atol=1e-1, rtol=1e-1), f"bf16 max_err={err_bf16}"

    print("KERNEL_OK")
</pallas_src>

<mosaic_0001>
module attributes {stable_mosaic.version = 11 : i64} {
  func.func @_fused_kernel(%arg0: i32, %arg1: memref<16x32xf32, #tpu.memory_space<vmem>>, %arg2: memref<16x1xi32, #tpu.memory_space<vmem>>, %arg3: memref<1x8x8xf32, #tpu.memory_space<vmem>>, %arg4: memref<8x64xf32, #tpu.memory_space<vmem>>, %arg5: memref<32x64xf32, #tpu.memory_space<vmem>>, %arg6: memref<4x64xf32, #tpu.memory_space<vmem>>, %arg7: memref<1x64xf32, #tpu.memory_space<vmem>>, %arg8: memref<1x64xf32, #tpu.memory_space<vmem>>, %arg9: memref<64x64xf32, #tpu.memory_space<vmem>>, %arg10: memref<1x64xf32, #tpu.memory_space<vmem>>, %arg11: memref<1x64xf32, #tpu.memory_space<vmem>>, %arg12: memref<1x64xf32, #tpu.memory_space<vmem>>, %arg13: memref<1x64xf32, #tpu.memory_space<vmem>>, %arg14: memref<2x64x192xf32, #tpu.memory_space<vmem>>, %arg15: memref<2x64x64xf32, #tpu.memory_space<vmem>>, %arg16: memref<2x1x64xf32, #tpu.memory_space<vmem>>, %arg17: memref<2x1x64xf32, #tpu.memory_space<vmem>>, %arg18: memref<2x64x128xf32, #tpu.memory_space<vmem>>, %arg19: memref<2x1x128xf32, #tpu.memory_space<vmem>>, %arg20: memref<2x128x64xf32, #tpu.memory_space<vmem>>, %arg21: memref<2x1x64xf32, #tpu.memory_space<vmem>>, %arg22: memref<2x1x64xf32, #tpu.memory_space<vmem>>, %arg23: memref<2x1x64xf32, #tpu.memory_space<vmem>>, %arg24: memref<64x128xf32, #tpu.memory_space<vmem>>, %arg25: memref<1x128xf32, #tpu.memory_space<vmem>>, %arg26: memref<16x128xf32, #tpu.memory_space<vmem>>) attributes {dimension_semantics = [#tpu.dimension_semantics<arbitrary>], iteration_bounds = array<i64: 1>, scalar_prefetch = 0 : i64, scratch_operands = 0 : i64, tpu.core_type = #tpu.core_type<tc>, window_params = [{pipeline_mode = #tpu.pipeline_mode<synchronous>, transform_indices = @transform_0, window_bounds = array<i64: 16, 32>}, {pipeline_mode = #tpu.pipeline_mode<synchronous>, transform_indices = @transform_1, window_bounds = array<i64: 16, 1>}, {pipeline_mode = #tpu.pipeline_mode<synchronous>, transform_indices = @transform_2, window_bounds = array<i64: 1, 8, 8>}, {pipeline_mode = #tpu.pipeline_mode<synchronous>, transform_indices = @transform_3, window_bounds = array<i64: 8, 64>}, {pipeline_mode = #tpu.pipeline_mode<synchronous>, transform_indices = @transform_4, window_bounds = array<i64: 32, 64>}, {pipeline_mode = #tpu.pipeline_mode<synchronous>, transform_indices = @transform_5, window_bounds = array<i64: 4, 64>}, {pipeline_mode = #tpu.pipeline_mode<synchronous>, transform_indices = @transform_6, window_bounds = array<i64: 1, 64>}, {pipeline_mode = #tpu.pipeline_mode<synchronous>, transform_indices = @transform_7, window_bounds = array<i64: 1, 64>}, {pipeline_mode = #tpu.pipeline_mode<synchronous>, transform_indices = @transform_8, window_bounds = array<i64: 64, 64>}, {pipeline_mode = #tpu.pipeline_mode<synchronous>, transform_indices = @transform_9, window_bounds = array<i64: 1, 64>}, {pipeline_mode = #tpu.pipeline_mode<synchronous>, transform_indices = @transform_10, window_bounds = array<i64: 1, 64>}, {pipeline_mode = #tpu.pipeline_mode<synchronous>, transform_indices = @transform_11, window_bounds = array<i64: 1, 64>}, {pipeline_mode = #tpu.pipeline_mode<synchronous>, transform_indices = @transform_12, window_bounds = array<i64: 1, 64>}, {pipeline_mode = #tpu.pipeline_mode<synchronous>, transform_indices = @transform_13, window_bounds = array<i64: 2, 64, 192>}, {pipeline_mode = #tpu.pipeline_mode<synchronous>, transform_indices = @transform_14, window_bounds = array<i64: 2, 64, 64>}, {pipeline_mode = #tpu.pipeline_mode<synchronous>, transform_indices = @transform_15, window_bounds = array<i64: 2, 1, 64>}, {pipeline_mode = #tpu.pipeline_mode<synchronous>, transform_indices = @transform_16, window_bounds = array<i64: 2, 1, 64>}, {pipeline_mode = #tpu.pipeline_mode<synchronous>, transform_indices = @transform_17, window_bounds = array<i64: 2, 64, 128>}, {pipeline_mode = #tpu.pipeline_mode<synchronous>, transform_indices = @transform_18, window_bounds = array<i64: 2, 1, 128>}, {pipeline_mode = #tpu.pipeline_mode<synchronous>, transform_indices = @transform_19, window_bounds = array<i64: 2, 128, 64>}, {pipeline_mode = #tpu.pipeline_mode<synchronous>, transform_indices = @transform_20, window_bounds = array<i64: 2, 1, 64>}, {pipeline_mode = #tpu.pipeline_mode<synchronous>, transform_indices = @transform_21, window_bounds = array<i64: 2, 1, 64>}, {pipeline_mode = #tpu.pipeline_mode<synchronous>, transform_indices = @transform_22, window_bounds = array<i64: 2, 1, 64>}, {pipeline_mode = #tpu.pipeline_mode<synchronous>, transform_indices = @transform_23, window_bounds = array<i64: 64, 128>}, {pipeline_mode = #tpu.pipeline_mode<synchronous>, transform_indices = @transform_24, window_bounds = array<i64: 1, 128>}, {pipeline_mode = #tpu.pipeline_mode<synchronous>, transform_indices = @transform_25, window_bounds = array<i64: 16, 128>}]} {
    %c0 = arith.constant 0 : index
    %c0_0 = arith.constant 0 : index
    %0 = vector.load %arg1[%c0, %c0_0] : memref<16x32xf32, #tpu.memory_space<vmem>>, vector<16x32xf32>
    %c0_1 = arith.constant 0 : index
    %c0_2 = arith.constant 0 : index
    %1 = vector.load %arg5[%c0_1, %c0_2] : memref<32x64xf32, #tpu.memory_space<vmem>>, vector<32x64xf32>
    %cst = arith.constant dense<0.000000e+00> : vector<16x64xf32>
    %2 = tpu.matmul %0, %1, %cst {dimension_numbers = #tpu.dot_dimension_numbers<[1], [0], [0], [1], [0, 0, 1, 1], [], []>} : vector<16x32xf32>, vector<32x64xf32>, vector<16x64xf32> -> vector<16x64xf32>
    %c0_3 = arith.constant 0 : index
    %c0_4 = arith.constant 0 : index
    %3 = vector.load %arg2[%c0_3, %c0_4] : memref<16x1xi32, #tpu.memory_space<vmem>>, vector<16x1xi32>
    %c0_5 = arith.constant 0 : index
    %c0_6 = arith.constant 0 : index
    %4 = vector.load %arg6[%c0_5, %c0_6] : memref<4x64xf32, #tpu.memory_space<vmem>>, vector<4x64xf32>
    %c0_i32 = arith.constant 0 : i32
    %5 = vector.broadcast %c0_i32 : i32 to vector<16x1xi32>
    %6 = arith.cmpi eq, %3, %5 : vector<16x1xi32>
    %7 = arith.extui %6 : vector<16x1xi1> to vector<16x1xi32>
    %8 = arith.sitofp %7 : vector<16x1xi32> to vector<16x1xf32>
    %9 = vector.extract_strided_slice %4 {offsets = [0, 0], sizes = [1, 64], strides = [1, 1]} : vector<4x64xf32> to vector<1x64xf32>
    %10 = vector.broadcast %8 : vector<16x1xf32> to vector<16x64xf32>
    %11 = vector.broadcast %9 : vector<1x64xf32> to vector<16x64xf32>
    %12 = arith.mulf %10, %11 : vector<16x64xf32>
    %13 = arith.addf %2, %12 : vector<16x64xf32>
    %c1_i32 = arith.constant 1 : i32
    %14 = vector.broadcast %c1_i32 : i32 to vector<16x1xi32>
    %15 = arith.cmpi eq, %3, %14 : vector<16x1xi32>
    %16 = arith.extui %15 : vector<16x1xi1> to vector<16x1xi32>
    %17 = arith.sitofp %16 : vector<16x1xi32> to vector<16x1xf32>
    %18 = vector.extract_strided_slice %4 {offsets = [1, 0], sizes = [1, 64], strides = [1, 1]} : vector<4x64xf32> to vector<1x64xf32>
    %19 = vector.broadcast %17 : vector<16x1xf32> to vector<16x64xf32>
    %20 = vector.broadcast %18 : vector<1x64xf32> to vector<16x64xf32>
    %21 = arith.mulf %19, %20 : vector<16x64xf32>
    %22 = arith.addf %13, %21 : vector<16x64xf32>
    %c2_i32 = arith.constant 2 : i32
    %23 = vector.broadcast %c2_i32 : i32 to vector<16x1xi32>
    %24 = arith.cmpi eq, %3, %23 : vector<16x1xi32>
    %25 = arith.extui %24 : vector<16x1xi1> to vector<16x1xi32>
    %26 = arith.sitofp %25 : vector<16x1xi32> to vector<16x1xf32>
    %27 = vector.extract_strided_slice %4 {offsets = [2, 0], sizes = [1, 64], strides = [1, 1]} : vector<4x64xf32> to vector<1x64xf32>
    %28 = vector.broadcast %26 : vector<16x1xf32> to vector<16x64xf32>
    %29 = vector.broadcast %27 : vector<1x64xf32> to vector<16x64xf32>
    %30 = arith.mulf %28, %29 : vector<16x64xf32>
    %31 = arith.addf %22, %30 : vector<16x64xf32>
    %c3_i32 = arith.constant 3 : i32
    %32 = vector.broadcast %c3_i32 : i32 to vector<16x1xi32>
    %33 = arith.cmpi eq, %3, %32 : vector<16x1xi32>
    %34 = arith.extui %33 : vector<16x1xi1> to vector<16x1xi32>
    %35 = arith.sitofp %34 : vector<16x1xi32> to vector<16x1xf32>
    %36 = vector.extract_strided_slice %4 {offsets = [3, 0], sizes = [1, 64], strides = [1, 1]} : vector<4x64xf32> to vector<1x64xf32>
    %37 = vector.broadcast %35 : vector<16x1xf32> to vector<16x64xf32>
    %38 = vector.broadcast %36 : vector<1x64xf32> to vector<16x64xf32>
    %39 = arith.mulf %37, %38 : vector<16x64xf32>
    %40 = arith.addf %31, %39 : vector<16x64xf32>
    %c0_7 = arith.constant 0 : index
    %c0_8 = arith.constant 0 : index
    %41 = vector.load %arg7[%c0_7, %c0_8] : memref<1x64xf32, #tpu.memory_space<vmem>>, vector<1x64xf32>
    %c0_9 = arith.constant 0 : index
    %c0_10 = arith.constant 0 : index
    %42 = vector.load %arg8[%c0_9, %c0_10] : memref<1x64xf32, #tpu.memory_space<vmem>>, vector<1x64xf32>
    %cst_11 = arith.constant dense<0.000000e+00> : vector<16xf32>
    %43 = vector.multi_reduction <add>, %40, %cst_11 [1] : vector<16x64xf32> to vector<16xf32>
    %44 = vector.shape_cast %43 : vector<16xf32> to vector<16x1xf32>
    %cst_12 = arith.constant 6.400000e+01 : f32
    %45 = vector.broadcast %cst_12 : f32 to vector<16x1xf32>
    %46 = arith.divf %44, %45 : vector<16x1xf32>
    %47 = vector.broadcast %46 : vector<16x1xf32> to vector<16x64xf32>
    %48 = arith.subf %40, %47 : vector<16x64xf32>
    %49 = arith.mulf %48, %48 : vector<16x64xf32>
    %cst_13 = arith.constant dense<0.000000e+00> : vector<16xf32>
    %50 = vector.multi_reduction <add>, %49, %cst_13 [1] : vector<16x64xf32> to vector<16xf32>
    %51 = vector.shape_cast %50 : vector<16xf32> to vector<16x1xf32>
    %cst_14 = arith.constant 6.400000e+01 : f32
    %52 = vector.broadcast %cst_14 : f32 to vector<16x1xf32>
    %53 = arith.divf %51, %52 : vector<16x1xf32>
    %54 = vector.broadcast %46 : vector<16x1xf32> to vector<16x64xf32>
    %55 = arith.subf %40, %54 : vector<16x64xf32>
    %cst_15 = arith.constant 9.99999974E-6 : f32
    %56 = vector.broadcast %cst_15 : f32 to vector<16x1xf32>
    %57 = arith.addf %53, %56 : vector<16x1xf32>
    %58 = math.rsqrt %57 : vector<16x1xf32>
    %59 = vector.broadcast %58 : vector<16x1xf32> to vector<16x64xf32>
    %60 = arith.mulf %55, %59 : vector<16x64xf32>
    %61 = vector.broadcast %41 : vector<1x64xf32> to vector<16x64xf32>
    %62 = arith.mulf %60, %61 : vector<16x64xf32>
    %63 = vector.broadcast %42 : vector<1x64xf32> to vector<16x64xf32>
    %64 = arith.addf %62, %63 : vector<16x64xf32>
    %cst_16 = arith.constant 0.000000e+00 : f32
    %65 = vector.broadcast %cst_16 : f32 to vector<16x64xf32>
    %66 = arith.maximumf %64, %65 : vector<16x64xf32>
    %c0_17 = arith.constant 0 : index
    %c0_18 = arith.constant 0 : index
    %67 = vector.load %arg9[%c0_17, %c0_18] : memref<64x64xf32, #tpu.memory_space<vmem>>, vector<64x64xf32>
    %cst_19 = arith.constant dense<0.000000e+00> : vector<16x64xf32>
    %68 = tpu.matmul %66, %67, %cst_19 {dimension_numbers = #tpu.dot_dimension_numbers<[1], [0], [0], [1], [0, 0, 1, 1], [], []>} : vector<16x64xf32>, vector<64x64xf32>, vector<16x64xf32> -> vector<16x64xf32>
    %c0_20 = arith.constant 0 : index
    %c0_21 = arith.constant 0 : index
    %69 = vector.load %arg10[%c0_20, %c0_21] : memref<1x64xf32, #tpu.memory_space<vmem>>, vector<1x64xf32>
    %c0_22 = arith.constant 0 : index
    %c0_23 = arith.constant 0 : index
    %70 = vector.load %arg11[%c0_22, %c0_23] : memref<1x64xf32, #tpu.memory_space<vmem>>, vector<1x64xf32>
    %cst_24 = arith.constant dense<0.000000e+00> : vector<16xf32>
    %71 = vector.multi_reduction <add>, %68, %cst_24 [1] : vector<16x64xf32> to vector<16xf32>
    %72 = vector.shape_cast %71 : vector<16xf32> to vector<16x1xf32>
    %cst_25 = arith.constant 6.400000e+01 : f32
    %73 = vector.broadcast %cst_25 : f32 to vector<16x1xf32>
    %74 = arith.divf %72, %73 : vector<16x1xf32>
    %75 = vector.broadcast %74 : vector<16x1xf32> to vector<16x64xf32>
    %76 = arith.subf %68, %75 : vector<16x64xf32>
    %77 = arith.mulf %76, %76 : vector<16x64xf32>
    %cst_26 = arith.constant dense<0.000000e+00> : vector<16xf32>
    %78 = vector.multi_reduction <add>, %77, %cst_26 [1] : vector<16x64xf32> to vector<16xf32>
    %79 = vector.shape_cast %78 : vector<16xf32> to vector<16x1xf32>
    %cst_27 = arith.constant 6.400000e+01 : f32
    %80 = vector.broadcast %cst_27 : f32 to vector<16x1xf32>
    %81 = arith.divf %79, %80 : vector<16x1xf32>
    %82 = vector.broadcast %74 : vector<16x1xf32> to vector<16x64xf32>
    %83 = arith.subf %68, %82 : vector<16x64xf32>
    %cst_28 = arith.constant 9.99999974E-6 : f32
    %84 = vector.broadcast %cst_28 : f32 to vector<16x1xf32>
    %85 = arith.addf %81, %84 : vector<16x1xf32>
    %86 = math.rsqrt %85 : vector<16x1xf32>
    %87 = vector.broadcast %86 : vector<16x1xf32> to vector<16x64xf32>
    %88 = arith.mulf %83, %87 : vector<16x64xf32>
    %89 = vector.broadcast %69 : vector<1x64xf32> to vector<16x64xf32>
    %90 = arith.mulf %88, %89 : vector<16x64xf32>
    %91 = vector.broadcast %70 : vector<1x64xf32> to vector<16x64xf32>
    %92 = arith.addf %90, %91 : vector<16x64xf32>
    %93 = vector.shape_cast %92 : vector<16x64xf32> to vector<2x8x64xf32>
    %c0_29 = arith.constant 0 : index
    %c0_30 = arith.constant 0 : index
    %94 = vector.load %arg4[%c0_29, %c0_30] : memref<8x64xf32, #tpu.memory_space<vmem>>, vector<8x64xf32>
    %95 = vector.shape_cast %94 : vector<8x64xf32> to vector<1x8x64xf32>
    %96 = vector.broadcast %95 : vector<1x8x64xf32> to vector<2x8x64xf32>
    %97 = arith.addf %93, %96 : vector<2x8x64xf32>
    %98 = vector.shape_cast %97 : vector<2x8x64xf32> to vector<16x64xf32>
    %c0_31 = arith.constant 0 : index
    %c0_32 = arith.constant 0 : index
    %99 = vector.load %arg12[%c0_31, %c0_32] : memref<1x64xf32, #tpu.memory_space<vmem>>, vector<1x64xf32>
    %c0_33 = arith.constant 0 : index
    %c0_34 = arith.constant 0 : index
    %100 = vector.load %arg13[%c0_33, %c0_34] : memref<1x64xf32, #tpu.memory_space<vmem>>, vector<1x64xf32>
    %cst_35 = arith.constant dense<0.000000e+00> : vector<16xf32>
    %101 = vector.multi_reduction <add>, %98, %cst_35 [1] : vector<16x64xf32> to vector<16xf32>
    %102 = vector.shape_cast %101 : vector<16xf32> to vector<16x1xf32>
    %cst_36 = arith.constant 6.400000e+01 : f32
    %103 = vector.broadcast %cst_36 : f32 to vector<16x1xf32>
    %104 = arith.divf %102, %103 : vector<16x1xf32>
    %105 = vector.broadcast %104 : vector<16x1xf32> to vector<16x64xf32>
    %106 = arith.subf %98, %105 : vector<16x64xf32>
    %107 = arith.mulf %106, %106 : vector<16x64xf32>
    %cst_37 = arith.constant dense<0.000000e+00> : vector<16xf32>
    %108 = vector.multi_reduction <add>, %107, %cst_37 [1] : vector<16x64xf32> to vector<16xf32>
    %109 = vector.shape_cast %108 : vector<16xf32> to vector<16x1xf32>
    %cst_38 = arith.constant 6.400000e+01 : f32
    %110 = vector.broadcast %cst_38 : f32 to vector<16x1xf32>
    %111 = arith.divf %109, %110 : vector<16x1xf32>
    %112 = vector.broadcast %104 : vector<16x1xf32> to vector<16x64xf32>
    %113 = arith.subf %98, %112 : vector<16x64xf32>
    %cst_39 = arith.constant 9.99999997E-7 : f32
    %114 = vector.broadcast %cst_39 : f32 to vector<16x1xf32>
    %115 = arith.addf %111, %114 : vector<16x1xf32>
    %116 = math.rsqrt %115 : vector<16x1xf32>
    %117 = vector.broadcast %116 : vector<16x1xf32> to vector<16x64xf32>
    %118 = arith.mulf %113, %117 : vector<16x64xf32>
    %119 = vector.broadcast %99 : vector<1x64xf32> to vector<16x64xf32>
    %120 = arith.mulf %118, %119 : vector<16x64xf32>
    %121 = vector.broadcast %100 : vector<1x64xf32> to vector<16x64xf32>
    %122 = arith.addf %120, %121 : vector<16x64xf32>
    %c0_40 = arith.constant 0 : index
    %c0_41 = arith.constant 0 : index
    %c0_42 = arith.constant 0 : index
    %123 = vector.load %arg3[%c0_40, %c0_41, %c0_42] : memref<1x8x8xf32, #tpu.memory_space<vmem>>, vector<1x8x8xf32>
    %124 = vector.shape_cast %123 : vector<1x8x8xf32> to vector<1x8x8xf32>
    %125 = vector.broadcast %124 : vector<1x8x8xf32> to vector<2x8x8xf32>
    %126 = tpu.concatenate %125, %125, %125, %125 in 0 : vector<2x8x8xf32>, vector<2x8x8xf32>, vector<2x8x8xf32>, vector<2x8x8xf32> -> vector<8x8x8xf32>
    %c0_43 = arith.constant 0 : index
    %c0_44 = arith.constant 0 : index
    %c0_45 = arith.constant 0 : index
    %127 = vector.load %arg14[%c0_43, %c0_44, %c0_45] : memref<2x64x192xf32, #tpu.memory_space<vmem>>, vector<1x64x192xf32>
    %128 = vector.shape_cast %127 : vector<1x64x192xf32> to vector<64x192xf32>
    %cst_46 = arith.constant dense<0.000000e+00> : vector<16x192xf32>
    %129 = tpu.matmul %122, %128, %cst_46 {dimension_numbers = #tpu.dot_dimension_numbers<[1], [0], [0], [1], [0, 0, 1, 1], [], []>} : vector<16x64xf32>, vector<64x192xf32>, vector<16x192xf32> -> vector<16x192xf32>
    %130 = vector.extract_strided_slice %129 {offsets = [0, 0], sizes = [16, 16], strides = [1, 1]} : vector<16x192xf32> to vector<16x16xf32>
    %131 = vector.shape_cast %130 : vector<16x16xf32> to vector<2x8x16xf32>
    %132 = vector.extract_strided_slice %129 {offsets = [0, 16], sizes = [16, 16], strides = [1, 1]} : vector<16x192xf32> to vector<16x16xf32>
    %133 = vector.shape_cast %132 : vector<16x16xf32> to vector<2x8x16xf32>
    %134 = vector.extract_strided_slice %129 {offsets = [0, 32], sizes = [16, 16], strides = [1, 1]} : vector<16x192xf32> to vector<16x16xf32>
    %135 = vector.shape_cast %134 : vector<16x16xf32> to vector<2x8x16xf32>
    %136 = vector.extract_strided_slice %129 {offsets = [0, 48], sizes = [16, 16], strides = [1, 1]} : vector<16x192xf32> to vector<16x16xf32>
    %137 = vector.shape_cast %136 : vector<16x16xf32> to vector<2x8x16xf32>
    %138 = tpu.concatenate %131, %133, %135, %137 in 0 : vector<2x8x16xf32>, vector<2x8x16xf32>, vector<2x8x16xf32>, vector<2x8x16xf32> -> vector<8x8x16xf32>
    %cst_47 = arith.constant 2.500000e-01 : f32
    %139 = vector.broadcast %cst_47 : f32 to vector<8x8x16xf32>
    %140 = arith.mulf %138, %139 : vector<8x8x16xf32>
    %141 = vector.extract_strided_slice %129 {offsets = [0, 64], sizes = [16, 16], strides = [1, 1]} : vector<16x192xf32> to vector<16x16xf32>
    %142 = vector.shape_cast %141 : vector<16x16xf32> to vector<2x8x16xf32>
    %143 = vector.extract_strided_slice %129 {offsets = [0, 80], sizes = [16, 16], strides = [1, 1]} : vector<16x192xf32> to vector<16x16xf32>
    %144 = vector.shape_cast %143 : vector<16x16xf32> to vector<2x8x16xf32>
    %145 = vector.extract_strided_slice %129 {offsets = [0, 96], sizes = [16, 16], strides = [1, 1]} : vector<16x192xf32> to vector<16x16xf32>
    %146 = vector.shape_cast %145 : vector<16x16xf32> to vector<2x8x16xf32>
    %147 = vector.extract_strided_slice %129 {offsets = [0, 112], sizes = [16, 16], strides = [1, 1]} : vector<16x192xf32> to vector<16x16xf32>
    %148 = vector.shape_cast %147 : vector<16x16xf32> to vector<2x8x16xf32>
    %149 = tpu.concatenate %142, %144, %146, %148 in 0 : vector<2x8x16xf32>, vector<2x8x16xf32>, vector<2x8x16xf32>, vector<2x8x16xf32> -> vector<8x8x16xf32>
    %150 = vector.extract_strided_slice %129 {offsets = [0, 128], sizes = [16, 16], strides = [1, 1]} : vector<16x192xf32> to vector<16x16xf32>
    %151 = vector.shape_cast %150 : vector<16x16xf32> to vector<2x8x16xf32>
    %152 = vector.extract_strided_slice %129 {offsets = [0, 144], sizes = [16, 16], strides = [1, 1]} : vector<16x192xf32> to vector<16x16xf32>
    %153 = vector.shape_cast %152 : vector<16x16xf32> to vector<2x8x16xf32>
    %154 = vector.extract_strided_slice %129 {offsets = [0, 160], sizes = [16, 16], strides = [1, 1]} : vector<16x192xf32> to vector<16x16xf32>
    %155 = vector.shape_cast %154 : vector<16x16xf32> to vector<2x8x16xf32>
    %156 = vector.extract_strided_slice %129 {offsets = [0, 176], sizes = [16, 16], strides = [1, 1]} : vector<16x192xf32> to vector<16x16xf32>
    %157 = vector.shape_cast %156 : vector<16x16xf32> to vector<2x8x16xf32>
    %158 = tpu.concatenate %151, %153, %155, %157 in 0 : vector<2x8x16xf32>, vector<2x8x16xf32>, vector<2x8x16xf32>, vector<2x8x16xf32> -> vector<8x8x16xf32>
    "tpu.trace_start"() <{level = 10 : i32, message = "zld,zmd->zlm"}> : () -> ()
    %cst_48 = arith.constant dense<0.000000e+00> : vector<8x8x8xf32>
    %159 = tpu.matmul %140, %149, %cst_48 {dimension_numbers = #tpu.dot_dimension_numbers<[2], [2], [1], [1], [0, 0, 0, 1, 1, 1], [0], [0]>} : vector<8x8x16xf32>, vector<8x8x16xf32>, vector<8x8x8xf32> -> vector<8x8x8xf32>
    "tpu.trace_stop"() : () -> ()
    %160 = arith.addf %159, %126 : vector<8x8x8xf32>
    %161 = math.exp %160 : vector<8x8x8xf32>
    %cst_49 = arith.constant dense<0.000000e+00> : vector<8x8xf32>
    %162 = vector.multi_reduction <add>, %161, %cst_49 [2] : vector<8x8x8xf32> to vector<8x8xf32>
    %163 = vector.shape_cast %162 : vector<8x8xf32> to vector<8x8x1xf32>
    %164 = vector.broadcast %163 : vector<8x8x1xf32> to vector<8x8x8xf32>
    %165 = arith.divf %161, %164 : vector<8x8x8xf32>
    "tpu.trace_start"() <{level = 10 : i32, message = "zlm,zmd->zld"}> : () -> ()
    %cst_50 = arith.constant dense<0.000000e+00> : vector<8x8x16xf32>
    %166 = tpu.matmul %165, %158, %cst_50 {dimension_numbers = #tpu.dot_dimension_numbers<[2], [1], [1], [2], [0, 0, 0, 1, 1, 2], [0], [0]>} : vector<8x8x8xf32>, vector<8x8x16xf32>, vector<8x8x16xf32> -> vector<8x8x16xf32>
    "tpu.trace_stop"() : () -> ()
    %167 = vector.extract_strided_slice %166 {offsets = [0, 0, 0], sizes = [2, 8, 16], strides = [1, 1, 1]} : vector<8x8x16xf32> to vector<2x8x16xf32>
    %168 = vector.shape_cast %167 : vector<2x8x16xf32> to vector<16x16xf32>
    %169 = vector.extract_strided_slice %166 {offsets = [2, 0, 0], sizes = [2, 8, 16], strides = [1, 1, 1]} : vector<8x8x16xf32> to vector<2x8x16xf32>
    %170 = vector.shape_cast %169 : vector<2x8x16xf32> to vector<16x16xf32>
    %171 = vector.extract_strided_slice %166 {offsets = [4, 0, 0], sizes = [2, 8, 16], strides = [1, 1, 1]} : vector<8x8x16xf32> to vector<2x8x16xf32>
    %172 = vector.shape_cast %171 : vector<2x8x16xf32> to vector<16x16xf32>
    %173 = vector.extract_strided_slice %166 {offsets = [6, 0, 0], sizes = [2, 8, 16], strides = [1, 1, 1]} : vector<8x8x16xf32> to vector<2x8x16xf32>
    %174 = vector.shape_cast %173 : vector<2x8x16xf32> to vector<16x16xf32>
    %175 = tpu.concatenate %168, %170, %172, %174 in 1 : vector<16x16xf32>, vector<16x16xf32>, vector<16x16xf32>, vector<16x16xf32> -> vector<16x64xf32>
    %c0_51 = arith.constant 0 : index
    %c0_52 = arith.constant 0 : index
    %c0_53 = arith.constant 0 : index
    %176 = vector.load %arg15[%c0_51, %c0_52, %c0_53] : memref<2x64x64xf32, #tpu.memory_space<vmem>>, vector<1x64x64xf32>
    %177 = vector.shape_cast %176 : vector<1x64x64xf32> to vector<64x64xf32>
    %cst_54 = arith.constant dense<0.000000e+00> : vector<16x64xf32>
    %178 = tpu.matmul %175, %177, %cst_54 {dimension_numbers = #tpu.dot_dimension_numbers<[1], [0], [0], [1], [0, 0, 1, 1], [], []>} : vector<16x64xf32>, vector<64x64xf32>, vector<16x64xf32> -> vector<16x64xf32>
    %179 = arith.addf %178, %122 : vector<16x64xf32>
    %c0_55 = arith.constant 0 : index
    %c0_56 = arith.constant 0 : index
    %c0_57 = arith.constant 0 : index
    %180 = vector.load %arg16[%c0_55, %c0_56, %c0_57] : memref<2x1x64xf32, #tpu.memory_space<vmem>>, vector<1x1x64xf32>
    %181 = vector.shape_cast %180 : vector<1x1x64xf32> to vector<1x64xf32>
    %c0_58 = arith.constant 0 : index
    %c0_59 = arith.constant 0 : index
    %c0_60 = arith.constant 0 : index
    %182 = vector.load %arg17[%c0_58, %c0_59, %c0_60] : memref<2x1x64xf32, #tpu.memory_space<vmem>>, vector<1x1x64xf32>
    %183 = vector.shape_cast %182 : vector<1x1x64xf32> to vector<1x64xf32>
    %cst_61 = arith.constant dense<0.000000e+00> : vector<16xf32>
    %184 = vector.multi_reduction <add>, %179, %cst_61 [1] : vector<16x64xf32> to vector<16xf32>
    %185 = vector.shape_cast %184 : vector<16xf32> to vector<16x1xf32>
    %cst_62 = arith.constant 6.400000e+01 : f32
    %186 = vector.broadcast %cst_62 : f32 to vector<16x1xf32>
    %187 = arith.divf %185, %186 : vector<16x1xf32>
    %188 = vector.broadcast %187 : vector<16x1xf32> to vector<16x64xf32>
    %189 = arith.subf %179, %188 : vector<16x64xf32>
    %190 = arith.mulf %189, %189 : vector<16x64xf32>
    %cst_63 = arith.constant dense<0.000000e+00> : vector<16xf32>
    %191 = vector.multi_reduction <add>, %190, %cst_63 [1] : vector<16x64xf32> to vector<16xf32>
    %192 = vector.shape_cast %191 : vector<16xf32> to vector<16x1xf32>
    %cst_64 = arith.constant 6.400000e+01 : f32
    %193 = vector.broadcast %cst_64 : f32 to vector<16x1xf32>
    %194 = arith.divf %192, %193 : vector<16x1xf32>
    %195 = vector.broadcast %187 : vector<16x1xf32> to vector<16x64xf32>
    %196 = arith.subf %179, %195 : vector<16x64xf32>
    %cst_65 = arith.constant 9.99999997E-7 : f32
    %197 = vector.broadcast %cst_65 : f32 to vector<16x1xf32>
    %198 = arith.addf %194, %197 : vector<16x1xf32>
    %199 = math.rsqrt %198 : vector<16x1xf32>
    %200 = vector.broadcast %199 : vector<16x1xf32> to vector<16x64xf32>
    %201 = arith.mulf %196, %200 : vector<16x64xf32>
    %202 = vector.broadcast %181 : vector<1x64xf32> to vector<16x64xf32>
    %203 = arith.mulf %201, %202 : vector<16x64xf32>
    %204 = vector.broadcast %183 : vector<1x64xf32> to vector<16x64xf32>
    %205 = arith.addf %203, %204 : vector<16x64xf32>
    %c0_66 = arith.constant 0 : index
    %c0_67 = arith.constant 0 : index
    %c0_68 = arith.constant 0 : index
    %206 = vector.load %arg18[%c0_66, %c0_67, %c0_68] : memref<2x64x128xf32, #tpu.memory_space<vmem>>, vector<1x64x128xf32>
    %207 = vector.shape_cast %206 : vector<1x64x128xf32> to vector<64x128xf32>
    %cst_69 = arith.constant dense<0.000000e+00> : vector<16x128xf32>
    %208 = tpu.matmul %205, %207, %cst_69 {dimension_numbers = #tpu.dot_dimension_numbers<[1], [0], [0], [1], [0, 0, 1, 1], [], []>} : vector<16x64xf32>, vector<64x128xf32>, vector<16x128xf32> -> vector<16x128xf32>
    %c0_70 = arith.constant 0 : index
    %c0_71 = arith.constant 0 : index
    %c0_72 = arith.constant 0 : index
    %209 = vector.load %arg19[%c0_70, %c0_71, %c0_72] : memref<2x1x128xf32, #tpu.memory_space<vmem>>, vector<1x1x128xf32>
    %210 = vector.shape_cast %209 : vector<1x1x128xf32> to vector<1x128xf32>
    %211 = vector.broadcast %210 : vector<1x128xf32> to vector<16x128xf32>
    %212 = arith.addf %208, %211 : vector<16x128xf32>
    %cst_73 = arith.constant 0.000000e+00 : f32
    %213 = vector.broadcast %cst_73 : f32 to vector<16x128xf32>
    %214 = arith.maximumf %212, %213 : vector<16x128xf32>
    %c0_74 = arith.constant 0 : index
    %c0_75 = arith.constant 0 : index
    %c0_76 = arith.constant 0 : index
    %215 = vector.load %arg20[%c0_74, %c0_75, %c0_76] : memref<2x128x64xf32, #tpu.memory_space<vmem>>, vector<1x128x64xf32>
    %216 = vector.shape_cast %215 : vector<1x128x64xf32> to vector<128x64xf32>
    %cst_77 = arith.constant dense<0.000000e+00> : vector<16x64xf32>
    %217 = tpu.matmul %214, %216, %cst_77 {dimension_numbers = #tpu.dot_dimension_numbers<[1], [0], [0], [1], [0, 0, 1, 1], [], []>} : vector<16x128xf32>, vector<128x64xf32>, vector<16x64xf32> -> vector<16x64xf32>
    %c0_78 = arith.constant 0 : index
    %c0_79 = arith.constant 0 : index
    %c0_80 = arith.constant 0 : index
    %218 = vector.load %arg21[%c0_78, %c0_79, %c0_80] : memref<2x1x64xf32, #tpu.memory_space<vmem>>, vector<1x1x64xf32>
    %219 = vector.shape_cast %218 : vector<1x1x64xf32> to vector<1x64xf32>
    %220 = vector.broadcast %219 : vector<1x64xf32> to vector<16x64xf32>
    %221 = arith.addf %217, %220 : vector<16x64xf32>
    %222 = arith.addf %221, %205 : vector<16x64xf32>
    %c0_81 = arith.constant 0 : index
    %c0_82 = arith.constant 0 : index
    %c0_83 = arith.constant 0 : index
    %223 = vector.load %arg22[%c0_81, %c0_82, %c0_83] : memref<2x1x64xf32, #tpu.memory_space<vmem>>, vector<1x1x64xf32>
    %224 = vector.shape_cast %223 : vector<1x1x64xf32> to vector<1x64xf32>
    %c0_84 = arith.constant 0 : index
    %c0_85 = arith.constant 0 : index
    %c0_86 = arith.constant 0 : index
    %225 = vector.load %arg23[%c0_84, %c0_85, %c0_86] : memref<2x1x64xf32, #tpu.memory_space<vmem>>, vector<1x1x64xf32>
    %226 = vector.shape_cast %225 : vector<1x1x64xf32> to vector<1x64xf32>
    %cst_87 = arith.constant dense<0.000000e+00> : vector<16xf32>
    %227 = vector.multi_reduction <add>, %222, %cst_87 [1] : vector<16x64xf32> to vector<16xf32>
    %228 = vector.shape_cast %227 : vector<16xf32> to vector<16x1xf32>
    %cst_88 = arith.constant 6.400000e+01 : f32
    %229 = vector.broadcast %cst_88 : f32 to vector<16x1xf32>
    %230 = arith.divf %228, %229 : vector<16x1xf32>
    %231 = vector.broadcast %230 : vector<16x1xf32> to vector<16x64xf32>
    %232 = arith.subf %222, %231 : vector<16x64xf32>
    %233 = arith.mulf %232, %232 : vector<16x64xf32>
    %cst_89 = arith.constant dense<0.000000e+00> : vector<16xf32>
    %234 = vector.multi_reduction <add>, %233, %cst_89 [1] : vector<16x64xf32> to vector<16xf32>
    %235 = vector.shape_cast %234 : vector<16xf32> to vector<16x1xf32>
    %cst_90 = arith.constant 6.400000e+01 : f32
    %236 = vector.broadcast %cst_90 : f32 to vector<16x1xf32>
    %237 = arith.divf %235, %236 : vector<16x1xf32>
    %238 = vector.broadcast %230 : vector<16x1xf32> to vector<16x64xf32>
    %239 = arith.subf %222, %238 : vector<16x64xf32>
    %cst_91 = arith.constant 9.99999997E-7 : f32
    %240 = vector.broadcast %cst_91 : f32 to vector<16x1xf32>
    %241 = arith.addf %237, %240 : vector<16x1xf32>
    %242 = math.rsqrt %241 : vector<16x1xf32>
    %243 = vector.broadcast %242 : vector<16x1xf32> to vector<16x64xf32>
    %244 = arith.mulf %239, %243 : vector<16x64xf32>
    %245 = vector.broadcast %224 : vector<1x64xf32> to vector<16x64xf32>
    %246 = arith.mulf %244, %245 : vector<16x64xf32>
    %247 = vector.broadcast %226 : vector<1x64xf32> to vector<16x64xf32>
    %248 = arith.addf %246, %247 : vector<16x64xf32>
    %c1 = arith.constant 1 : index
    %c0_92 = arith.constant 0 : index
    %c0_93 = arith.constant 0 : index
    %249 = vector.load %arg14[%c1, %c0_92, %c0_93] : memref<2x64x192xf32, #tpu.memory_space<vmem>>, vector<1x64x192xf32>
    %250 = vector.shape_cast %249 : vector<1x64x192xf32> to vector<64x192xf32>
    %cst_94 = arith.constant dense<0.000000e+00> : vector<16x192xf32>
    %251 = tpu.matmul %248, %250, %cst_94 {dimension_numbers = #tpu.dot_dimension_numbers<[1], [0], [0], [1], [0, 0, 1, 1], [], []>} : vector<16x64xf32>, vector<64x192xf32>, vector<16x192xf32> -> vector<16x192xf32>
    %252 = vector.extract_strided_slice %251 {offsets = [0, 0], sizes = [16, 16], strides = [1, 1]} : vector<16x192xf32> to vector<16x16xf32>
    %253 = vector.shape_cast %252 : vector<16x16xf32> to vector<2x8x16xf32>
    %254 = vector.extract_strided_slice %251 {offsets = [0, 16], sizes = [16, 16], strides = [1, 1]} : vector<16x192xf32> to vector<16x16xf32>
    %255 = vector.shape_cast %254 : vector<16x16xf32> to vector<2x8x16xf32>
    %256 = vector.extract_strided_slice %251 {offsets = [0, 32], sizes = [16, 16], strides = [1, 1]} : vector<16x192xf32> to vector<16x16xf32>
    %257 = vector.shape_cast %256 : vector<16x16xf32> to vector<2x8x16xf32>
    %258 = vector.extract_strided_slice %251 {offsets = [0, 48], sizes = [16, 16], strides = [1, 1]} : vector<16x192xf32> to vector<16x16xf32>
    %259 = vector.shape_cast %258 : vector<16x16xf32> to vector<2x8x16xf32>
    %260 = tpu.concatenate %253, %255, %257, %259 in 0 : vector<2x8x16xf32>, vector<2x8x16xf32>, vector<2x8x16xf32>, vector<2x8x16xf32> -> vector<8x8x16xf32>
    %cst_95 = arith.constant 2.500000e-01 : f32
    %261 = vector.broadcast %cst_95 : f32 to vector<8x8x16xf32>
    %262 = arith.mulf %260, %261 : vector<8x8x16xf32>
    %263 = vector.extract_strided_slice %251 {offsets = [0, 64], sizes = [16, 16], strides = [1, 1]} : vector<16x192xf32> to vector<16x16xf32>
    %264 = vector.shape_cast %263 : vector<16x16xf32> to vector<2x8x16xf32>
    %265 = vector.extract_strided_slice %251 {offsets = [0, 80], sizes = [16, 16], strides = [1, 1]} : vector<16x192xf32> to vector<16x16xf32>
    %266 = vector.shape_cast %265 : vector<16x16xf32> to vector<2x8x16xf32>
    %267 = vector.extract_strided_slice %251 {offsets = [0, 96], sizes = [16, 16], strides = [1, 1]} : vector<16x192xf32> to vector<16x16xf32>
    %268 = vector.shape_cast %267 : vector<16x16xf32> to vector<2x8x16xf32>
    %269 = vector.extract_strided_slice %251 {offsets = [0, 112], sizes = [16, 16], strides = [1, 1]} : vector<16x192xf32> to vector<16x16xf32>
    %270 = vector.shape_cast %269 : vector<16x16xf32> to vector<2x8x16xf32>
    %271 = tpu.concatenate %264, %266, %268, %270 in 0 : vector<2x8x16xf32>, vector<2x8x16xf32>, vector<2x8x16xf32>, vector<2x8x16xf32> -> vector<8x8x16xf32>
    %272 = vector.extract_strided_slice %251 {offsets = [0, 128], sizes = [16, 16], strides = [1, 1]} : vector<16x192xf32> to vector<16x16xf32>
    %273 = vector.shape_cast %272 : vector<16x16xf32> to vector<2x8x16xf32>
    %274 = vector.extract_strided_slice %251 {offsets = [0, 144], sizes = [16, 16], strides = [1, 1]} : vector<16x192xf32> to vector<16x16xf32>
    %275 = vector.shape_cast %274 : vector<16x16xf32> to vector<2x8x16xf32>
    %276 = vector.extract_strided_slice %251 {offsets = [0, 160], sizes = [16, 16], strides = [1, 1]} : vector<16x192xf32> to vector<16x16xf32>
    %277 = vector.shape_cast %276 : vector<16x16xf32> to vector<2x8x16xf32>
    %278 = vector.extract_strided_slice %251 {offsets = [0, 176], sizes = [16, 16], strides = [1, 1]} : vector<16x192xf32> to vector<16x16xf32>
    %279 = vector.shape_cast %278 : vector<16x16xf32> to vector<2x8x16xf32>
    %280 = tpu.concatenate %273, %275, %277, %279 in 0 : vector<2x8x16xf32>, vector<2x8x16xf32>, vector<2x8x16xf32>, vector<2x8x16xf32> -> vector<8x8x16xf32>
    "tpu.trace_start"() <{level = 10 : i32, message = "zld,zmd->zlm"}> : () -> ()
    %cst_96 = arith.constant dense<0.000000e+00> : vector<8x8x8xf32>
    %281 = tpu.matmul %262, %271, %cst_96 {dimension_numbers = #tpu.dot_dimension_numbers<[2], [2], [1], [1], [0, 0, 0, 1, 1, 1], [0], [0]>} : vector<8x8x16xf32>, vector<8x8x16xf32>, vector<8x8x8xf32> -> vector<8x8x8xf32>
    "tpu.trace_stop"() : () -> ()
    %282 = arith.addf %281, %126 : vector<8x8x8xf32>
    %283 = math.exp %282 : vector<8x8x8xf32>
    %cst_97 = arith.constant dense<0.000000e+00> : vector<8x8xf32>
    %284 = vector.multi_reduction <add>, %283, %cst_97 [2] : vector<8x8x8xf32> to vector<8x8xf32>
    %285 = vector.shape_cast %284 : vector<8x8xf32> to vector<8x8x1xf32>
    %286 = vector.broadcast %285 : vector<8x8x1xf32> to vector<8x8x8xf32>
    %287 = arith.divf %283, %286 : vector<8x8x8xf32>
    "tpu.trace_start"() <{level = 10 : i32, message = "zlm,zmd->zld"}> : () -> ()
    %cst_98 = arith.constant dense<0.000000e+00> : vector<8x8x16xf32>
    %288 = tpu.matmul %287, %280, %cst_98 {dimension_numbers = #tpu.dot_dimension_numbers<[2], [1], [1], [2], [0, 0, 0, 1, 1, 2], [0], [0]>} : vector<8x8x8xf32>, vector<8x8x16xf32>, vector<8x8x16xf32> -> vector<8x8x16xf32>
    "tpu.trace_stop"() : () -> ()
    %289 = vector.extract_strided_slice %288 {offsets = [0, 0, 0], sizes = [2, 8, 16], strides = [1, 1, 1]} : vector<8x8x16xf32> to vector<2x8x16xf32>
    %290 = vector.shape_cast %289 : vector<2x8x16xf32> to vector<16x16xf32>
    %291 = vector.extract_strided_slice %288 {offsets = [2, 0, 0], sizes = [2, 8, 16], strides = [1, 1, 1]} : vector<8x8x16xf32> to vector<2x8x16xf32>
    %292 = vector.shape_cast %291 : vector<2x8x16xf32> to vector<16x16xf32>
    %293 = vector.extract_strided_slice %288 {offsets = [4, 0, 0], sizes = [2, 8, 16], strides = [1, 1, 1]} : vector<8x8x16xf32> to vector<2x8x16xf32>
    %294 = vector.shape_cast %293 : vector<2x8x16xf32> to vector<16x16xf32>
    %295 = vector.extract_strided_slice %288 {offsets = [6, 0, 0], sizes = [2, 8, 16], strides = [1, 1, 1]} : vector<8x8x16xf32> to vector<2x8x16xf32>
    %296 = vector.shape_cast %295 : vector<2x8x16xf32> to vector<16x16xf32>
    %297 = tpu.concatenate %290, %292, %294, %296 in 1 : vector<16x16xf32>, vector<16x16xf32>, vector<16x16xf32>, vector<16x16xf32> -> vector<16x64xf32>
    %c1_99 = arith.constant 1 : index
    %c0_100 = arith.constant 0 : index
    %c0_101 = arith.constant 0 : index
    %298 = vector.load %arg15[%c1_99, %c0_100, %c0_101] : memref<2x64x64xf32, #tpu.memory_space<vmem>>, vector<1x64x64xf32>
    %299 = vector.shape_cast %298 : vector<1x64x64xf32> to vector<64x64xf32>
    %cst_102 = arith.constant dense<0.000000e+00> : vector<16x64xf32>
    %300 = tpu.matmul %297, %299, %cst_102 {dimension_numbers = #tpu.dot_dimension_numbers<[1], [0], [0], [1], [0, 0, 1, 1], [], []>} : vector<16x64xf32>, vector<64x64xf32>, vector<16x64xf32> -> vector<16x64xf32>
    %301 = arith.addf %300, %248 : vector<16x64xf32>
    %c1_103 = arith.constant 1 : index
    %c0_104 = arith.constant 0 : index
    %c0_105 = arith.constant 0 : index
    %302 = vector.load %arg16[%c1_103, %c0_104, %c0_105] : memref<2x1x64xf32, #tpu.memory_space<vmem>>, vector<1x1x64xf32>
    %303 = vector.shape_cast %302 : vector<1x1x64xf32> to vector<1x64xf32>
    %c1_106 = arith.constant 1 : index
    %c0_107 = arith.constant 0 : index
    %c0_108 = arith.constant 0 : index
    %304 = vector.load %arg17[%c1_106, %c0_107, %c0_108] : memref<2x1x64xf32, #tpu.memory_space<vmem>>, vector<1x1x64xf32>
    %305 = vector.shape_cast %304 : vector<1x1x64xf32> to vector<1x64xf32>
    %cst_109 = arith.constant dense<0.000000e+00> : vector<16xf32>
    %306 = vector.multi_reduction <add>, %301, %cst_109 [1] : vector<16x64xf32> to vector<16xf32>
    %307 = vector.shape_cast %306 : vector<16xf32> to vector<16x1xf32>
    %cst_110 = arith.constant 6.400000e+01 : f32
    %308 = vector.broadcast %cst_110 : f32 to vector<16x1xf32>
    %309 = arith.divf %307, %308 : vector<16x1xf32>
    %310 = vector.broadcast %309 : vector<16x1xf32> to vector<16x64xf32>
    %311 = arith.subf %301, %310 : vector<16x64xf32>
    %312 = arith.mulf %311, %311 : vector<16x64xf32>
    %cst_111 = arith.constant dense<0.000000e+00> : vector<16xf32>
    %313 = vector.multi_reduction <add>, %312, %cst_111 [1] : vector<16x64xf32> to vector<16xf32>
    %314 = vector.shape_cast %313 : vector<16xf32> to vector<16x1xf32>
    %cst_112 = arith.constant 6.400000e+01 : f32
    %315 = vector.broadcast %cst_112 : f32 to vector<16x1xf32>
    %316 = arith.divf %314, %315 : vector<16x1xf32>
    %317 = vector.broadcast %309 : vector<16x1xf32> to vector<16x64xf32>
    %318 = arith.subf %301, %317 : vector<16x64xf32>
    %cst_113 = arith.constant 9.99999997E-7 : f32
    %319 = vector.broadcast %cst_113 : f32 to vector<16x1xf32>
    %320 = arith.addf %316, %319 : vector<16x1xf32>
    %321 = math.rsqrt %320 : vector<16x1xf32>
    %322 = vector.broadcast %321 : vector<16x1xf32> to vector<16x64xf32>
    %323 = arith.mulf %318, %322 : vector<16x64xf32>
    %324 = vector.broadcast %303 : vector<1x64xf32> to vector<16x64xf32>
    %325 = arith.mulf %323, %324 : vector<16x64xf32>
    %326 = vector.broadcast %305 : vector<1x64xf32> to vector<16x64xf32>
    %327 = arith.addf %325, %326 : vector<16x64xf32>
    %c1_114 = arith.constant 1 : index
    %c0_115 = arith.constant 0 : index
    %c0_116 = arith.constant 0 : index
    %328 = vector.load %arg18[%c1_114, %c0_115, %c0_116] : memref<2x64x128xf32, #tpu.memory_space<vmem>>, vector<1x64x128xf32>
    %329 = vector.shape_cast %328 : vector<1x64x128xf32> to vector<64x128xf32>
    %cst_117 = arith.constant dense<0.000000e+00> : vector<16x128xf32>
    %330 = tpu.matmul %327, %329, %cst_117 {dimension_numbers = #tpu.dot_dimension_numbers<[1], [0], [0], [1], [0, 0, 1, 1], [], []>} : vector<16x64xf32>, vector<64x128xf32>, vector<16x128xf32> -> vector<16x128xf32>
    %c1_118 = arith.constant 1 : index
    %c0_119 = arith.constant 0 : index
    %c0_120 = arith.constant 0 : index
    %331 = vector.load %arg19[%c1_118, %c0_119, %c0_120] : memref<2x1x128xf32, #tpu.memory_space<vmem>>, vector<1x1x128xf32>
    %332 = vector.shape_cast %331 : vector<1x1x128xf32> to vector<1x128xf32>
    %333 = vector.broadcast %332 : vector<1x128xf32> to vector<16x128xf32>
    %334 = arith.addf %330, %333 : vector<16x128xf32>
    %cst_121 = arith.constant 0.000000e+00 : f32
    %335 = vector.broadcast %cst_121 : f32 to vector<16x128xf32>
    %336 = arith.maximumf %334, %335 : vector<16x128xf32>
    %c1_122 = arith.constant 1 : index
    %c0_123 = arith.constant 0 : index
    %c0_124 = arith.constant 0 : index
    %337 = vector.load %arg20[%c1_122, %c0_123, %c0_124] : memref<2x128x64xf32, #tpu.memory_space<vmem>>, vector<1x128x64xf32>
    %338 = vector.shape_cast %337 : vector<1x128x64xf32> to vector<128x64xf32>
    %cst_125 = arith.constant dense<0.000000e+00> : vector<16x64xf32>
    %339 = tpu.matmul %336, %338, %cst_125 {dimension_numbers = #tpu.dot_dimension_numbers<[1], [0], [0], [1], [0, 0, 1, 1], [], []>} : vector<16x128xf32>, vector<128x64xf32>, vector<16x64xf32> -> vector<16x64xf32>
    %c1_126 = arith.constant 1 : index
    %c0_127 = arith.constant 0 : index
    %c0_128 = arith.constant 0 : index
    %340 = vector.load %arg21[%c1_126, %c0_127, %c0_128] : memref<2x1x64xf32, #tpu.memory_space<vmem>>, vector<1x1x64xf32>
    %341 = vector.shape_cast %340 : vector<1x1x64xf32> to vector<1x64xf32>
    %342 = vector.broadcast %341 : vector<1x64xf32> to vector<16x64xf32>
    %343 = arith.addf %339, %342 : vector<16x64xf32>
    %344 = arith.addf %343, %327 : vector<16x64xf32>
    %c1_129 = arith.constant 1 : index
    %c0_130 = arith.constant 0 : index
    %c0_131 = arith.constant 0 : index
    %345 = vector.load %arg22[%c1_129, %c0_130, %c0_131] : memref<2x1x64xf32, #tpu.memory_space<vmem>>, vector<1x1x64xf32>
    %346 = vector.shape_cast %345 : vector<1x1x64xf32> to vector<1x64xf32>
    %c1_132 = arith.constant 1 : index
    %c0_133 = arith.constant 0 : index
    %c0_134 = arith.constant 0 : index
    %347 = vector.load %arg23[%c1_132, %c0_133, %c0_134] : memref<2x1x64xf32, #tpu.memory_space<vmem>>, vector<1x1x64xf32>
    %348 = vector.shape_cast %347 : vector<1x1x64xf32> to vector<1x64xf32>
    %cst_135 = arith.constant dense<0.000000e+00> : vector<16xf32>
    %349 = vector.multi_reduction <add>, %344, %cst_135 [1] : vector<16x64xf32> to vector<16xf32>
    %350 = vector.shape_cast %349 : vector<16xf32> to vector<16x1xf32>
    %cst_136 = arith.constant 6.400000e+01 : f32
    %351 = vector.broadcast %cst_136 : f32 to vector<16x1xf32>
    %352 = arith.divf %350, %351 : vector<16x1xf32>
    %353 = vector.broadcast %352 : vector<16x1xf32> to vector<16x64xf32>
    %354 = arith.subf %344, %353 : vector<16x64xf32>
    %355 = arith.mulf %354, %354 : vector<16x64xf32>
    %cst_137 = arith.constant dense<0.000000e+00> : vector<16xf32>
    %356 = vector.multi_reduction <add>, %355, %cst_137 [1] : vector<16x64xf32> to vector<16xf32>
    %357 = vector.shape_cast %356 : vector<16xf32> to vector<16x1xf32>
    %cst_138 = arith.constant 6.400000e+01 : f32
    %358 = vector.broadcast %cst_138 : f32 to vector<16x1xf32>
    %359 = arith.divf %357, %358 : vector<16x1xf32>
    %360 = vector.broadcast %352 : vector<16x1xf32> to vector<16x64xf32>
    %361 = arith.subf %344, %360 : vector<16x64xf32>
    %cst_139 = arith.constant 9.99999997E-7 : f32
    %362 = vector.broadcast %cst_139 : f32 to vector<16x1xf32>
    %363 = arith.addf %359, %362 : vector<16x1xf32>
    %364 = math.rsqrt %363 : vector<16x1xf32>
    %365 = vector.broadcast %364 : vector<16x1xf32> to vector<16x64xf32>
    %366 = arith.mulf %361, %365 : vector<16x64xf32>
    %367 = vector.broadcast %346 : vector<1x64xf32> to vector<16x64xf32>
    %368 = arith.mulf %366, %367 : vector<16x64xf32>
    %369 = vector.broadcast %348 : vector<1x64xf32> to vector<16x64xf32>
    %370 = arith.addf %368, %369 : vector<16x64xf32>
    %c0_140 = arith.constant 0 : index
    %c0_141 = arith.constant 0 : index
    %371 = vector.load %arg24[%c0_140, %c0_141] : memref<64x128xf32, #tpu.memory_space<vmem>>, vector<64x128xf32>
    %cst_142 = arith.constant dense<0.000000e+00> : vector<16x128xf32>
    %372 = tpu.matmul %370, %371, %cst_142 {dimension_numbers = #tpu.dot_dimension_numbers<[1], [0], [0], [1], [0, 0, 1, 1], [], []>} : vector<16x64xf32>, vector<64x128xf32>, vector<16x128xf32> -> vector<16x128xf32>
    %c0_143 = arith.constant 0 : index
    %c0_144 = arith.constant 0 : index
    %373 = vector.load %arg25[%c0_143, %c0_144] : memref<1x128xf32, #tpu.memory_space<vmem>>, vector<1x128xf32>
    %374 = vector.broadcast %373 : vector<1x128xf32> to vector<16x128xf32>
    %375 = arith.addf %372, %374 : vector<16x128xf32>
    %c0_145 = arith.constant 0 : index
    %c0_146 = arith.constant 0 : index
    %376 = vector.load %arg26[%c0_145, %c0_146] : memref<16x128xf32, #tpu.memory_space<vmem>>, vector<16x128xf32>
    tpu.vector_store %arg26[%c0_145, %c0_146], %375 {strides = array<i32>} : memref<16x128xf32, #tpu.memory_space<vmem>>, vector<16x128xf32>,
    return
  }
  func.func @transform_0(%arg0: i32) -> (i32, i32) {
    %c0_i32 = arith.constant 0 : i32
    %c0_i32_0 = arith.constant 0 : i32
    %c0_i32_1 = arith.constant 0 : i32
    return %c0_i32, %c0_i32_0 : i32, i32
  }
  func.func @transform_1(%arg0: i32) -> (i32, i32) {
    %c0_i32 = arith.constant 0 : i32
    %c0_i32_0 = arith.constant 0 : i32
    %c0_i32_1 = arith.constant 0 : i32
    return %c0_i32, %c0_i32_0 : i32, i32
  }
  func.func @transform_2(%arg0: i32) -> (i32, i32, i32) {
    %c0_i32 = arith.constant 0 : i32
    %c0_i32_0 = arith.constant 0 : i32
    %c0_i32_1 = arith.constant 0 : i32
    %c0_i32_2 = arith.constant 0 : i32
    return %c0_i32, %c0_i32_0, %c0_i32_1 : i32, i32, i32
  }
  func.func @transform_3(%arg0: i32) -> (i32, i32) {
    %c0_i32 = arith.constant 0 : i32
    %c0_i32_0 = arith.constant 0 : i32
    %c0_i32_1 = arith.constant 0 : i32
    return %c0_i32, %c0_i32_0 : i32, i32
  }
  func.func @transform_4(%arg0: i32) -> (i32, i32) {
    %c0_i32 = arith.constant 0 : i32
    %c0_i32_0 = arith.constant 0 : i32
    %c0_i32_1 = arith.constant 0 : i32
    return %c0_i32, %c0_i32_0 : i32, i32
  }
  func.func @transform_5(%arg0: i32) -> (i32, i32) {
    %c0_i32 = arith.constant 0 : i32
    %c0_i32_0 = arith.constant 0 : i32
    %c0_i32_1 = arith.constant 0 : i32
    return %c0_i32, %c0_i32_0 : i32, i32
  }
  func.func @transform_6(%arg0: i32) -> (i32, i32) {
    %c0_i32 = arith.constant 0 : i32
    %c0_i32_0 = arith.constant 0 : i32
    %c0_i32_1 = arith.constant 0 : i32
    return %c0_i32, %c0_i32_0 : i32, i32
  }
  func.func @transform_7(%arg0: i32) -> (i32, i32) {
    %c0_i32 = arith.constant 0 : i32
    %c0_i32_0 = arith.constant 0 : i32
    %c0_i32_1 = arith.constant 0 : i32
    return %c0_i32, %c0_i32_0 : i32, i32
  }
  func.func @transform_8(%arg0: i32) -> (i32, i32) {
    %c0_i32 = arith.constant 0 : i32
    %c0_i32_0 = arith.constant 0 : i32
    %c0_i32_1 = arith.constant 0 : i32
    return %c0_i32, %c0_i32_0 : i32, i32
  }
  func.func @transform_9(%arg0: i32) -> (i32, i32) {
    %c0_i32 = arith.constant 0 : i32
    %c0_i32_0 = arith.constant 0 : i32
    %c0_i32_1 = arith.constant 0 : i32
    return %c0_i32, %c0_i32_0 : i32, i32
  }
  func.func @transform_10(%arg0: i32) -> (i32, i32) {
    %c0_i32 = arith.constant 0 : i32
    %c0_i32_0 = arith.constant 0 : i32
    %c0_i32_1 = arith.constant 0 : i32
    return %c0_i32, %c0_i32_0 : i32, i32
  }
  func.func @transform_11(%arg0: i32) -> (i32, i32) {
    %c0_i32 = arith.constant 0 : i32
    %c0_i32_0 = arith.constant 0 : i32
    %c0_i32_1 = arith.constant 0 : i32
    return %c0_i32, %c0_i32_0 : i32, i32
  }
  func.func @transform_12(%arg0: i32) -> (i32, i32) {
    %c0_i32 = arith.constant 0 : i32
    %c0_i32_0 = arith.constant 0 : i32
    %c0_i32_1 = arith.constant 0 : i32
    return %c0_i32, %c0_i32_0 : i32, i32
  }
  func.func @transform_13(%arg0: i32) -> (i32, i32, i32) {
    %c0_i32 = arith.constant 0 : i32
    %c0_i32_0 = arith.constant 0 : i32
    %c0_i32_1 = arith.constant 0 : i32
    %c0_i32_2 = arith.constant 0 : i32
    return %c0_i32, %c0_i32_0, %c0_i32_1 : i32, i32, i32
  }
  func.func @transform_14(%arg0: i32) -> (i32, i32, i32) {
    %c0_i32 = arith.constant 0 : i32
    %c0_i32_0 = arith.constant 0 : i32
    %c0_i32_1 = arith.constant 0 : i32
    %c0_i32_2 = arith.constant 0 : i32
    return %c0_i32, %c0_i32_0, %c0_i32_1 : i32, i32, i32
  }
  func.func @transform_15(%arg0: i32) -> (i32, i32, i32) {
    %c0_i32 = arith.constant 0 : i32
    %c0_i32_0 = arith.constant 0 : i32
    %c0_i32_1 = arith.constant 0 : i32
    %c0_i32_2 = arith.constant 0 : i32
    return %c0_i32, %c0_i32_0, %c0_i32_1 : i32, i32, i32
  }
  func.func @transform_16(%arg0: i32) -> (i32, i32, i32) {
    %c0_i32 = arith.constant 0 : i32
    %c0_i32_0 = arith.constant 0 : i32
    %c0_i32_1 = arith.constant 0 : i32
    %c0_i32_2 = arith.constant 0 : i32
    return %c0_i32, %c0_i32_0, %c0_i32_1 : i32, i32, i32
  }
  func.func @transform_17(%arg0: i32) -> (i32, i32, i32) {
    %c0_i32 = arith.constant 0 : i32
    %c0_i32_0 = arith.constant 0 : i32
    %c0_i32_1 = arith.constant 0 : i32
    %c0_i32_2 = arith.constant 0 : i32
    return %c0_i32, %c0_i32_0, %c0_i32_1 : i32, i32, i32
  }
  func.func @transform_18(%arg0: i32) -> (i32, i32, i32) {
    %c0_i32 = arith.constant 0 : i32
    %c0_i32_0 = arith.constant 0 : i32
    %c0_i32_1 = arith.constant 0 : i32
    %c0_i32_2 = arith.constant 0 : i32
    return %c0_i32, %c0_i32_0, %c0_i32_1 : i32, i32, i32
  }
  func.func @transform_19(%arg0: i32) -> (i32, i32, i32) {
    %c0_i32 = arith.constant 0 : i32
    %c0_i32_0 = arith.constant 0 : i32
    %c0_i32_1 = arith.constant 0 : i32
    %c0_i32_2 = arith.constant 0 : i32
    return %c0_i32, %c0_i32_0, %c0_i32_1 : i32, i32, i32
  }
  func.func @transform_20(%arg0: i32) -> (i32, i32, i32) {
    %c0_i32 = arith.constant 0 : i32
    %c0_i32_0 = arith.constant 0 : i32
    %c0_i32_1 = arith.constant 0 : i32
    %c0_i32_2 = arith.constant 0 : i32
    return %c0_i32, %c0_i32_0, %c0_i32_1 : i32, i32, i32
  }
  func.func @transform_21(%arg0: i32) -> (i32, i32, i32) {
    %c0_i32 = arith.constant 0 : i32
    %c0_i32_0 = arith.constant 0 : i32
    %c0_i32_1 = arith.constant 0 : i32
    %c0_i32_2 = arith.constant 0 : i32
    return %c0_i32, %c0_i32_0, %c0_i32_1 : i32, i32, i32
  }
  func.func @transform_22(%arg0: i32) -> (i32, i32, i32) {
    %c0_i32 = arith.constant 0 : i32
    %c0_i32_0 = arith.constant 0 : i32
    %c0_i32_1 = arith.constant 0 : i32
    %c0_i32_2 = arith.constant 0 : i32
    return %c0_i32, %c0_i32_0, %c0_i32_1 : i32, i32, i32
  }
  func.func @transform_23(%arg0: i32) -> (i32, i32) {
    %c0_i32 = arith.constant 0 : i32
    %c0_i32_0 = arith.constant 0 : i32
    %c0_i32_1 = arith.constant 0 : i32
    return %c0_i32, %c0_i32_0 : i32, i32
  }
  func.func @transform_24(%arg0: i32) -> (i32, i32) {
    %c0_i32 = arith.constant 0 : i32
    %c0_i32_0 = arith.constant 0 : i32
    %c0_i32_1 = arith.constant 0 : i32
    return %c0_i32, %c0_i32_0 : i32, i32
  }
  func.func @transform_25(%arg0: i32) -> (i32, i32) {
    %c0_i32 = arith.constant 0 : i32
    %c0_i32_0 = arith.constant 0 : i32
    %c0_i32_1 = arith.constant 0 : i32
    return %c0_i32, %c0_i32_0 : i32, i32
  }
}

</mosaic_0001>

<bundles_post_ra>
// kernel: tpu_custom_call.1
= control target key start
LH: loop header
LB: loop body
LE: loop exit
PB: predicated region body
PF: predicated region fallthrough
CT: control target
= control target key end

     0   :  { %s6371_s0 = inlined_call_operand.hbm [shape: f32[16,32], index: 0, kind: input, shape index: {}]   ;;  %s6372_s1 = inlined_call_operand.vmem [shape: s32[16,1], index: 1, kind: input, shape index: {}]   ;;  %s6373_s2 = inlined_call_operand.vmem [shape: f32[1,8,8], index: 2, kind: input, shape index: {}]   ;;  %s6374_s3 = inlined_call_operand.hbm [shape: f32[8,64], index: 3, kind: input, shape index: {}]   ;;  %s6375_s4 = inlined_call_operand.vmem [shape: f32[32,64], index: 4, kind: input, shape index: {}]   ;;  %s6376_s5 = inlined_call_operand.hbm [shape: f32[4,64], index: 5, kind: input, shape index: {}]   ;;  %s6377_s6 = inlined_call_operand.hbm [shape: f32[1,64], index: 6, kind: input, shape index: {}]   ;;  %s6378_s7 = inlined_call_operand.hbm [shape: f32[1,64], index: 7, kind: input, shape index: {}]   ;;  %s6379_s8 = inlined_call_operand.hbm [shape: f32[64,64], index: 8, kind: input, shape index: {}]   ;;  %s6380_s9 = inlined_call_operand.hbm [shape: f32[1,64], index: 9, kind: input, shape index: {}]   ;;  %s6381_s10 = inlined_call_operand.hbm [shape: f32[1,64], index: 10, kind: input, shape index: {}]   ;;  %s6382_s11 = inlined_call_operand.hbm [shape: f32[1,64], index: 11, kind: input, shape index: {}]   ;;  %s6383_s12 = inlined_call_operand.hbm [shape: f32[1,64], index: 12, kind: input, shape index: {}]   ;;  %s6384_s13 = inlined_call_operand.vmem [shape: f32[2,64,192], index: 13, kind: input, shape index: {}]   ;;  %s6385_s14 = inlined_call_operand.vmem [shape: f32[2,64,64], index: 14, kind: input, shape index: {}]   ;;  %s6386_s15 = inlined_call_operand.vmem [shape: f32[2,1,64], index: 15, kind: input, shape index: {}]   ;;  %s6387_s16 = inlined_call_operand.vmem [shape: f32[2,1,64], index: 16, kind: input, shape index: {}]   ;;  %s6388_s17 = inlined_call_operand.hbm [shape: f32[2,64,128], index: 17, kind: input, shape index: {}]   ;;  %s6389_s18 = inlined_call_operand.vmem [shape: f32[2,1,128], index: 18, kind: input, shape index: {}]   ;;  %s6390_s19 = inlined_call_operand.vmem [shape: f32[2,128,64], index: 19, kind: input, shape index: {}]   ;;  %s6391_s20 = inlined_call_operand.vmem [shape: f32[2,1,64], index: 20, kind: input, shape index: {}]   ;;  %s6392_s21 = inlined_call_operand.vmem [shape: f32[2,1,64], index: 21, kind: input, shape index: {}]   ;;  %s6393_s22 = inlined_call_operand.vmem [shape: f32[2,1,64], index: 22, kind: input, shape index: {}]   ;;  %s6394_s23 = inlined_call_operand.hbm [shape: f32[64,128], index: 23, kind: input, shape index: {}]   ;;  %s6395_s24 = inlined_call_operand.vmem [shape: f32[1,128], index: 24, kind: input, shape index: {}]   ;;  %s6396_s25 = inlined_call_operand.hbm [shape: f32[16,128], index: 25, kind: output, shape index: {}]  }
   0x1   :  { %6400 = sst [smem:[#allocation31_spill]] %s6371_s0 }
   0x2   :  { %6401 = sst [smem:[#allocation32_spill]] %s6372_s1 }
   0x3   :  { %6402 = sst [smem:[#allocation33_spill]] %s6373_s2 }
   0x4   :  { %6403 = sst [smem:[#allocation34_spill]] %s6374_s3 }
   0x5   :  { %6404 = sst [smem:[#allocation35_spill]] %s6375_s4 }
   0x6   :  { %6405 = sst [smem:[#allocation36_spill]] %s6376_s5 }
   0x7   :  { %6406 = sst [smem:[#allocation37_spill]] %s6377_s6 }
   0x8   :  { %6407 = sst [smem:[#allocation38_spill]] %s6378_s7 }
   0x9   :  { %6408 = sst [smem:[#allocation39_spill]] %s6379_s8 }
   0xa   :  { %6409 = sst [smem:[#allocation40_spill]] %s6380_s9 }
   0xb   :  { %30 = vsyncpa [#allocation3], 0 }
   0xc   :  { %31 = vsyncpa [#allocation6], 0 }
   0xd   :  { %32 = vsyncpa [#allocation9], 0 }
   0xe   :  { %33 = vsyncpa [#allocation12], 0 }
   0xf   :  { %34 = vsyncpa [#allocation15], 0 }
  0x10   :  { %35 = vsyncpa [#allocation18], 0 }
  0x11   :  { %36 = vsyncpa [#allocation21], 0 }
  0x12   :  { %37 = vsyncpa [#allocation4], 0  ;;  %s5468_s29 = smov [#allocation5]   ;;  %s5469_s6 = smov [#allocation8]  }
  0x13   :  { %s60_s2 = sshll.u32 %s5468_s29, 4  ;;  %s82_s30 = sshll.u32 %s5469_s6, 4  ;;  %s61_s2 = int_to_ptr.vmem [resolvable:$true] %s60_s2  ;;  %s83_s30 = int_to_ptr.vmem [resolvable:$true] %s82_s30 }
  0x14   :  { %s5200_s7 = scalar_lea.vmem %s61_s2, 128  ;;  %p5205_p1 = scmp.lt.s32.totalorder %s61_s2, %s61_s2 }
  0x15   :  { %p5201_p0 = scmp.ne.s32.totalorder %s61_s2, %s5200_s7  ;;  %p5206_p2 = scmp.lt.s32.totalorder %s5200_s7, %s5200_s7 }
  0x17   :  { %p5207_p3 = por %p5206_p2, %p5205_p1 }
  0x19   :  { %p5208_p4 = pnand %p5207_p3, %p5201_p0 }
  0x1b   :  { %5211 = shalt.err (!%p5208_p4)
}
  0x1c   :  { %s6410_s1 = sld [smem:[#allocation34_spill]]  ;;  %s5220_s8 = scalar_lea.vmem %s83_s30, 16 }
  0x1d   :  { %p5221_p5 = scmp.ne.s32.totalorder %s83_s30, %s5220_s8  ;;  %s5224_s27 = scalar_lea.vmem %s83_s30, 32 }
  0x1e   :  { %p5225_p6 = scmp.lt.s32.totalorder %s83_s30, %s83_s30  ;;  %p5226_p7 = scmp.lt.s32.totalorder %s5224_s27, %s5220_s8 }
  0x20   :  { %p5227_p8 = por %p5226_p7, %p5225_p6 }
  0x22   :  { %63 = dma.hbm_to_vmem [thread:$0]  %s6410_s1, 128, %s61_s2, [#allocation6]  }
  0x23   :  { %p5228_p9 = pnand %p5227_p8, %p5221_p5 }
  0x25   :  { %5231 = shalt.err (!%p5228_p9)
}
  0x26   :  { %s6411_s9 = sld [smem:[#allocation37_spill]]  ;;  %s5470_s5 = smov [#allocation11]  }
  0x27   :  { %s101_s0 = sshll.u32 %s5470_s5, 4  ;;  %s5471_s29 = smov [#allocation14]   ;;  %s102_s0 = int_to_ptr.vmem [resolvable:$true] %s101_s0 }
  0x28   :  { %s124_s6 = sshll.u32 %s5471_s29, 4  ;;  %s5240_s7 = scalar_lea.vmem %s102_s0, 1024  ;;  %s125_s6 = int_to_ptr.vmem [resolvable:$true] %s124_s6 }
  0x29   :  { %p5241_p10 = scmp.ne.s32.totalorder %s102_s0, %s5240_s7  ;;  %p5245_p11 = scmp.lt.s32.totalorder %s102_s0, %s102_s0 }
  0x2a   :  { %p5246_p12 = scmp.lt.s32.totalorder %s5240_s7, %s5240_s7 }
  0x2c   :  { %85 = dma.hbm_to_vmem [thread:$0]  %s6411_s9, 16, %s83_s30, [#allocation9]  }
  0x2d   :  { %p5247_p13 = por %p5246_p12, %p5245_p11 }
  0x2f   :  { %p5248_p0 = pnand %p5247_p13, %p5241_p10 }
  0x31   :  { %5251 = shalt.err (!%p5248_p0)
}
  0x32   :  { %s5472_s2 = smov 128   ;;  %s5473_s3 = smov 8  }
  0x33   :  { %s6412_s1 = sld [smem:[#allocation39_spill]]  ;;  %s5260_s8 = scalar_lea.vmem %s125_s6, 16 }
  0x34   :  { %p5261_p1 = scmp.ne.s32.totalorder %s125_s6, %s5260_s8  ;;  %s5264_s27 = scalar_lea.vmem %s125_s6, 32 }
  0x35   :  { %p5265_p2 = scmp.lt.s32.totalorder %s125_s6, %s125_s6  ;;  %p5266_p3 = scmp.lt.s32.totalorder %s5264_s27, %s5260_s8 }
  0x37   :  { %p5267_p4 = por %p5266_p3, %p5265_p2 }
  0x39   :  { %107 = dma.hbm_to_vmem [thread:$0]  %s6412_s1, 1024, %s102_s0, [#allocation12], %s5472_s2, %s5472_s2, %s5473_s3  }
  0x3a   :  { %p5268_p5 = pnand %p5267_p4, %p5261_p1 }
  0x3c   :  { %5271 = shalt.err (!%p5268_p5)
}
  0x3d   :  { %127 = dma.hbm_to_vmem [thread:$0]  %s6381_s10, 16, %s125_s6, [#allocation15]  }
  0x3e   :  { %s5474_s9 = smov [#allocation17]   ;;  %s5475_s29 = smov [#allocation2]  }
  0x3f   :  { %s144_s5 = sshll.u32 %s5474_s9, 4  ;;  %s43_s7 = sshll.u32 %s5475_s29, 4  ;;  %s145_s5 = int_to_ptr.vmem [resolvable:$true] %s144_s5  ;;  %s44_s7 = int_to_ptr.vmem [resolvable:$true] %s43_s7 }
  0x40   :  { %s5280_s26 = scalar_lea.vmem %s145_s5, 16  ;;  %s5284_s0 = scalar_lea.vmem %s145_s5, 32 }
  0x41   :  { %p5281_p6 = scmp.ne.s32.totalorder %s145_s5, %s5280_s26  ;;  %p5285_p7 = scmp.lt.s32.totalorder %s145_s5, %s145_s5 }
  0x42   :  { %p5286_p8 = scmp.lt.s32.totalorder %s5284_s0, %s5280_s26 }
  0x44   :  { %p5287_p9 = por %p5286_p8, %p5285_p7 }
  0x46   :  { %p5288_p10 = pnand %p5287_p9, %p5281_p6 }
  0x48   :  { %5291 = shalt.err (!%p5288_p10)
}
  0x49   :  { %147 = dma.hbm_to_vmem [thread:$0]  %s6383_s12, 16, %s145_s5, [#allocation18]  }
  0x4a   :  { %s5300_s8 = scalar_lea.vmem %s44_s7, 256  ;;  %p5305_p12 = scmp.lt.s32.totalorder %s44_s7, %s44_s7 }
  0x4b   :  { %p5301_p11 = scmp.ne.s32.totalorder %s44_s7, %s5300_s8  ;;  %p5306_p13 = scmp.lt.s32.totalorder %s5300_s8, %s5300_s8 }
  0x4d   :  { %p5307_p0 = por %p5306_p13, %p5305_p12 }
  0x4f   :  { %p5308_p1 = pnand %p5307_p0, %p5301_p11 }
  0x51   :  { %5311 = shalt.err (!%p5308_p1)
}
  0x52   :  { %s6413_s27 = sld [smem:[#allocation31_spill]]  ;;  %s5476_s4 = smov [#allocation7]  }
  0x53   :  { %s72_s28 = sshll.u32 %s5476_s4, 4  ;;  %s5477_s9 = smov [#allocation10]   ;;  %s73_s28 = int_to_ptr.vmem [resolvable:$true] %s72_s28 }
  0x54   :  { %s92_s29 = sshll.u32 %s5477_s9, 4  ;;  %s5320_s12 = scalar_lea.vmem %s73_s28, 64  ;;  %s93_s29 = int_to_ptr.vmem [resolvable:$true] %s92_s29 }
  0x55   :  { %p5321_p2 = scmp.ne.s32.totalorder %s73_s28, %s5320_s12  ;;  %p5325_p3 = scmp.lt.s32.totalorder %s73_s28, %s73_s28 }
  0x56   :  { %p5326_p4 = scmp.lt.s32.totalorder %s5320_s12, %s5320_s12 }
  0x58   :  { %49 = dma.hbm_to_vmem [thread:$0]  %s6413_s27, 256, %s44_s7, [#allocation3], %s5472_s2, %s5472_s2, %s5473_s3  }
  0x59   :  { %p5327_p5 = por %p5326_p4, %p5325_p3 }
  0x5b   :  { %p5328_p6 = pnand %p5327_p5, %p5321_p2 }
  0x5d   :  { %5331 = shalt.err (!%p5328_p6)
}
  0x5e   :  { %s6414_s0 = sld [smem:[#allocation36_spill]]  ;;  %s5340_s30 = scalar_lea.vmem %s93_s29, 16 }
  0x5f   :  { %p5341_p7 = scmp.ne.s32.totalorder %s93_s29, %s5340_s30  ;;  %s5344_s7 = scalar_lea.vmem %s93_s29, 32 }
  0x60   :  { %p5345_p8 = scmp.lt.s32.totalorder %s93_s29, %s93_s29  ;;  %p5346_p9 = scmp.lt.s32.totalorder %s5344_s7, %s5340_s30 }
  0x62   :  { %p5347_p10 = por %p5346_p9, %p5345_p8 }
  0x64   :  { %75 = dma.hbm_to_vmem [thread:$0]  %s6414_s0, 64, %s73_s28, [#allocation6]  }
  0x65   :  { %p5348_p11 = pnand %p5347_p10, %p5341_p7 }
  0x67   :  { %5351 = shalt.err (!%p5348_p11)
}
  0x68   :  { %s6415_s10 = sld [smem:[#allocation38_spill]]  ;;  %s5478_s6 = smov [#allocation13]  }
  0x69   :  { %s114_s27 = sshll.u32 %s5478_s6, 4  ;;  %s5479_s4 = smov [#allocation16]   ;;  %s115_s27 = int_to_ptr.vmem [resolvable:$true] %s114_s27 }
  0x6a   :  { %s134_s9 = sshll.u32 %s5479_s4, 4  ;;  %s5360_s12 = scalar_lea.vmem %s115_s27, 16  ;;  %s135_s9 = int_to_ptr.vmem [resolvable:$true] %s134_s9 }
  0x6b   :  { %p5361_p12 = scmp.ne.s32.totalorder %s115_s27, %s5360_s12  ;;  %s5364_s28 = scalar_lea.vmem %s115_s27, 32 }
  0x6c   :  { %p5365_p13 = scmp.lt.s32.totalorder %s115_s27, %s115_s27  ;;  %p5366_p0 = scmp.lt.s32.totalorder %s5364_s28, %s5360_s12 }
  0x6e   :  { %95 = dma.hbm_to_vmem [thread:$0]  %s6415_s10, 16, %s93_s29, [#allocation9]  }
  0x6f   :  { %p5367_p1 = por %p5366_p0, %p5365_p13 }
  0x71   :  { %p5368_p2 = pnand %p5367_p1, %p5361_p12 }
  0x73   :  { %5371 = shalt.err (!%p5368_p2)
}
  0x74   :  { %s6416_s0 = sld [smem:[#allocation40_spill]]  ;;  %s5380_s30 = scalar_lea.vmem %s135_s9, 16 }
  0x75   :  { %p5381_p3 = scmp.ne.s32.totalorder %s135_s9, %s5380_s30  ;;  %s5384_s29 = scalar_lea.vmem %s135_s9, 32 }
  0x76   :  { %p5385_p4 = scmp.lt.s32.totalorder %s135_s9, %s135_s9  ;;  %p5386_p5 = scmp.lt.s32.totalorder %s5384_s29, %s5380_s30 }
  0x78   :  { %p5387_p6 = por %p5386_p5, %p5385_p4 }
  0x7a   :  { %117 = dma.hbm_to_vmem [thread:$0]  %s6416_s0, 16, %s115_s27, [#allocation12]  }
  0x7b   :  { %p5388_p7 = pnand %p5387_p6, %p5381_p3 }
  0x7d   :  { %5391 = shalt.err (!%p5388_p7)
}
  0x7e   :  { %137 = dma.hbm_to_vmem [thread:$0]  %s6382_s11, 16, %s135_s9, [#allocation15]  }
  0x7f   :  { %s5480_s8 = smov [#allocation19]   ;;  %s5481_s6 = smov [#allocation20]  }
  0x80   :  { %s161_s10 = sshll.u32 %s5480_s8, 4  ;;  %s183_s4 = sshll.u32 %s5481_s6, 4  ;;  %s162_s10 = int_to_ptr.vmem [resolvable:$true] %s161_s10  ;;  %s184_s4 = int_to_ptr.vmem [resolvable:$true] %s183_s4 }
  0x81   :  { %s5400_s12 = scalar_lea.vmem %s162_s10, 2048  ;;  %p5405_p9 = scmp.lt.s32.totalorder %s162_s10, %s162_s10 }
  0x82   :  { %p5401_p8 = scmp.ne.s32.totalorder %s162_s10, %s5400_s12  ;;  %p5406_p10 = scmp.lt.s32.totalorder %s5400_s12, %s5400_s12 }
  0x84   :  { %p5407_p11 = por %p5406_p10, %p5405_p9 }
  0x86   :  { %p5408_p12 = pnand %p5407_p11, %p5401_p8 }
  0x88   :  { %5411 = shalt.err (!%p5408_p12)
}
  0x89   :  { %167 = dma.hbm_to_vmem [thread:$0]  %s6388_s17, 2048, %s162_s10, [#allocation18], %s5472_s2, %s5472_s2, %s5473_s3  }
  0x8a   :  { %s5420_s11 = scalar_lea.vmem %s184_s4, 1024  ;;  %p5425_p0 = scmp.lt.s32.totalorder %s184_s4, %s184_s4 }
  0x8b   :  { %p5421_p13 = scmp.ne.s32.totalorder %s184_s4, %s5420_s11  ;;  %p5426_p1 = scmp.lt.s32.totalorder %s5420_s11, %s5420_s11 }
  0x8d   :  { %p5427_p2 = por %p5426_p1, %p5425_p0 }
  0x8f   :  { %p5428_p3 = pnand %p5427_p2, %p5421_p13 }
  0x91   :  { %5431 = shalt.err (!%p5428_p3)
}
  0x92   :  { %189 = dma.hbm_to_vmem [thread:$0]  %s6394_s23, 1024, %s184_s4, [#allocation21], %s5472_s2, %s5472_s2, %s5473_s3  }
  0x93   :  { %5452 = dma.done.wait [#allocation3], 256  }
  0x94   :  { %5453 = vsyncadd [#allocation3], 4294967040 }
  0x95   :  { %5454 = dma.done.wait [#allocation6], 192  }
  0x96   :  { %5455 = vsyncadd [#allocation6], 4294967104 }
  0x97   :  { %5456 = dma.done.wait [#allocation9], 32  }
  0x98   :  { %5457 = vsyncadd [#allocation9], 4294967264 }
  0x99   :  { %5458 = dma.done.wait [#allocation12], 1040  }
  0x9a   :  { %5459 = vsyncadd [#allocation12], 4294966256 }
  0x9b   :  { %5460 = dma.done.wait [#allocation15], 32  }
  0x9c   :  { %5461 = vsyncadd [#allocation15], 4294967264 }
  0x9d   :  { %5462 = dma.done.wait [#allocation18], 2064  }
  0x9e   :  { %5463 = vsyncadd [#allocation18], 4294965232 }
  0x9f   :  { %5464 = dma.done.wait [#allocation21], 1024  }
  0xa0   :  { %5465 = vsyncadd [#allocation21], 4294966272  ;;  %v5482_v0 = vmov 0   ;;  %v5483_v1 = vmov 0.0   ;;  %vm259_vm0 = vcmask 261120   ;;  %s6417_s26 = sld [smem:[#allocation35_spill]]  ;;  %v253_v22 = vlaneseq }
  0xa1   :  { %5077 = vset.pattern.permute.xlu0 %v5482_v0  ;;  %5088 = vset.pattern.permute.xlu1 %v5482_v0  ;;  %v228_v4 = vld [vmem:[#allocation2] sm:$0xff]  ;;  %s6418_s10 = sld [smem:[#allocation32_spill]]  ;;  %v229_v15 = vld [vmem:[#allocation2 + $0x8] sm:$0xff]  ;;  %v236_v26 = vld [vmem:[#allocation7] sm:$0xf]  ;;  %vm415_vm9 = vcmask 523264  }
  0xa2   :  { %728 = vmatprep.mubr.f32.mxu0 %v5483_v1  ;;  %4705 = vmatprep.mubr.msk.f32.mxu1 %vm259_vm0, %v228_v4  ;;  %v254_v23 = vshrl.u32 %v253_v22, 7  ;;  %s5484_s6 = smov 112   ;;  %vm5485_vm10 = vmmov 0   ;;  %s5486_s4 = smov 96   ;;  %vm791_vm11 = vcmask 130048   ;;  %vm1422_vm12 = vcmask 64512  }
  0xa3   :  { %s5487_s12 = smov 80   ;;  %s5488_s27 = smov 64   ;;  %vm2075_vm13 = vcmask 392192  }
  0xa4   :  { %v255_v25 = vsub.s32 0, %v254_v23  ;;  %v383_v27 = vsub.s32 2, %v254_v23  ;;  %v359_v31 = vsub.s32 1, %v254_v23  ;;  %v407_v35 = vsub.s32 3, %v254_v23  ;;  %s6419_s9 = sld [smem:[#allocation33_spill]]  ;;  %s5490_s0 = smov 32  }
  0xa5   :  { %s5491_s30 = smov 48  }
  0xa6   :  { %v233_v2 = vld [vmem:[%s6417_s26 + $0x18] sm:$0xff]  ;;  %v232_v3 = vld [vmem:[%s6417_s26 + $0x10] sm:$0xff]  ;;  %v231_v5 = vld [vmem:[%s6417_s26 + $0x8] sm:$0xff]  ;;  %v256_v30 = vrot.slane %v236_v26, %v255_v25  ;;  %v384_v34 = vrot.slane %v236_v26, %v383_v27  ;;  %v360_v39 = vrot.slane %v236_v26, %v359_v31  ;;  %v408_v43 = vrot.slane %v236_v26, %v407_v35 }
  0xa7   :  { %4697 = vmatprep.subr.mxu1 %v233_v2  ;;  %v234_v6 = vld [vmem:[%s6418_s10] sm:$0xff]  ;;  %v235_v7 = vld [vmem:[%s6418_s10 + $0x8] sm:$0xff]  ;;  %v4402_v27 = vld [vmem:[#allocation8] ss:$0 sm:$0xff] }
  0xa8   :  { %4698 = vmatpush3.msra.mxu1 %v233_v2  ;;  %vm237_vm1 = vcmp.eq.s32.totalorder %v234_v6, 0  ;;  %vm238_vm2 = vcmp.eq.s32.totalorder %v235_v7, 0  ;;  %vm365_vm3 = vcmp.eq.s32.totalorder %v234_v6, 2  ;;  %vm366_vm4 = vcmp.eq.s32.totalorder %v235_v7, 2  ;;  %v230_v8 = vld [vmem:[%s6417_s26] sm:$0xff]  ;;  %s5489_s26 = smov 16  }
  0xa9   :  { %4699 = vmatprep.subr.mxu1 %v232_v3  ;;  %v4392_v9 = vsel %vm237_vm1, 1.0, %v5483_v1  ;;  %v4393_v10 = vsel %vm238_vm2, 1.0, %v5483_v1  ;;  %v4398_v11 = vsel %vm365_vm3, 1.0, %v5483_v1  ;;  %v4399_v12 = vsel %vm366_vm4, 1.0, %v5483_v1 }
  0xaa   :  { %4700 = vmatpush3.msra.mxu1 %v232_v3  ;;  %v5078_v13 = vpack.i.bf16 %v4393_v10, %v4392_v9  ;;  %v5089_v14 = vpack.i.bf16 %v4399_v12, %v4398_v11  ;;  %vm341_vm5 = vcmp.eq.s32.totalorder %v234_v6, 1  ;;  %vm342_vm6 = vcmp.eq.s32.totalorder %v235_v7, 1  ;;  %v468_v12 = vld [vmem:[#allocation11 + $0x38] sm:$0xff] }
  0xab   :  { %4701 = vmatprep.subr.mxu1 %v231_v5  ;;  %v4396_v16 = vsel %vm341_vm5, 1.0, %v5483_v1  ;;  %v4397_v17 = vsel %vm342_vm6, 1.0, %v5483_v1  ;;  %vm389_vm7 = vcmp.eq.s32.totalorder %v234_v6, 3  ;;  %vm390_vm8 = vcmp.eq.s32.totalorder %v235_v7, 3 }
  0xac   :  { %4702 = vmatpush3.msra.mxu1 %v231_v5  ;;  %5079 = vperm.xlu0 %5077, %v5078_v13   ;;  %v5083_v18 = vpack.i.bf16 %v4397_v17, %v4396_v16  ;;  %v4400_v19 = vsel %vm389_vm7, 1.0, %v5483_v1  ;;  %v4401_v20 = vsel %vm390_vm8, 1.0, %v5483_v1  ;;  %v467_v13 = vld [vmem:[#allocation11 + $0x30] sm:$0xff]  ;;  %v464_v16 = vld [vmem:[#allocation11 + $0x18] sm:$0xff] }
  0xad   :  { %4703 = vmatprep.subr.mxu1 %v230_v8  ;;  %5090 = vperm.xlu1 %5088, %v5089_v14   ;;  %v5094_v21 = vpack.i.bf16 %v4401_v20, %v4400_v19  ;;  %v466_v14 = vld [vmem:[#allocation11 + $0x28] sm:$0xff]  ;;  %v463_v17 = vld [vmem:[#allocation11 + $0x10] sm:$0xff]  ;;  %v461_v19 = vld [vmem:[#allocation11] sm:$0xff] }
  0xae   :  { %4704 = vmatpush3.msra.mxu1 %v230_v8 }
  0xaf   :  { %4706 = vmatmul.mubr.msk.f32.vlgmr.msra.gmra.mxu1 %vm259_vm0, %v229_v15  ;;  %4708 = vmatprep.subr.mxu1 %v468_v12  ;;  %v465_v15 = vld [vmem:[#allocation11 + $0x20] sm:$0xff] }
  0xb0   :  { %5084 = vperm.xlu0 %5077, %v5083_v18   ;;  %4709 = vmatpush3.msra.mxu1 %v468_v12  ;;  %v462_v18 = vld [vmem:[#allocation11 + $0x8] sm:$0xff] }
  0xb1   :  { %5095 = vperm.xlu1 %5088, %v5094_v21   ;;  %4710 = vmatprep.subr.mxu1 %v467_v13 }
  0xb2   :  { %4711 = vmatpush3.msra.mxu1 %v467_v13 }
  0xb3   :  { %4712 = vmatprep.subr.mxu1 %v466_v14 }
  0xb4   :  { %4713 = vmatpush3.msra.mxu1 %v466_v14 }
  0xb5   :  { %4714 = vmatprep.subr.mxu1 %v465_v15 }
  0xb6   :  { %4715 = vmatpush3.msra.mxu1 %v465_v15 }
  0xb7   :  { %4716 = vmatprep.subr.mxu1 %v464_v16 }
  0xb8   :  { %4717 = vmatpush3.msra.mxu1 %v464_v16 }
  0xb9   :  { %4718 = vmatprep.subr.mxu1 %v463_v17 }
  0xba   :  { %4719 = vmatpush3.msra.mxu1 %v463_v17 }
  0xbb   :  { %4720 = vmatprep.subr.mxu1 %v462_v18 }
  0xbc   :  { %4721 = vmatpush3.msra.mxu1 %v462_v18 }
  0xbd   :  { %4722 = vmatprep.subr.mxu1 %v461_v19 }
  0xbe   :  { %4723 = vmatpush3.msra.mxu1 %v461_v19 }
  0xbf   :  { %4727 = vmatprep.subr.mxu1 %v5483_v1 }
 0x127   :  { %v5080_v24 = vpop.permute.xlu0 %5079 }
 0x128   :  { %v5091_v28 = vpop.permute.xlu1 %5090  ;;  %v5082_v29 = vunpack.i.h.bf16 %v5080_v24  ;;  %v5081_v33 = vunpack.i.l.bf16 %v5080_v24 }
 0x129   :  { %v5093_v36 = vunpack.i.h.bf16 %v5091_v28  ;;  %v5092_v42 = vunpack.i.l.bf16 %v5091_v28 }
 0x12a   :  { %v258_v38 = vmul.f32 %v5082_v29, %v256_v30  ;;  %v257_v45 = vmul.f32 %v5081_v33, %v256_v30  ;;  %v4403_v29 = vld [vmem:[#allocation10] ss:$0 sm:$0xff] }
 0x12b   :  { %v5085_v32 = vpop.permute.xlu0 %5084  ;;  %v386_v46 = vmul.f32 %v5093_v36, %v384_v34  ;;  %v385_v55 = vmul.f32 %v5092_v42, %v384_v34 }
 0x12c   :  { %v5087_v37 = vunpack.i.h.bf16 %v5085_v32  ;;  %v5096_v40 = vpop.permute.xlu1 %5095  ;;  %v5086_v41 = vunpack.i.l.bf16 %v5085_v32 }
 0x12d   :  { %v5098_v47 = vunpack.i.h.bf16 %v5096_v40  ;;  %v5097_v51 = vunpack.i.l.bf16 %v5096_v40 }
 0x12e   :  { %v362_v49 = vmul.f32 %v5087_v37, %v360_v39  ;;  %v361_v54 = vmul.f32 %v5086_v41, %v360_v39 }
 0x12f   :  { %v410_v56 = vmul.f32 %v5098_v47, %v408_v43  ;;  %v409_v59 = vmul.f32 %v5097_v51, %v408_v43 }
 0x16f   :  { %v4707_v44 = vpop.f32.mrf.mxu1 }
 0x170   :  { %v338_v48 = vadd.f32 %v4707_v44, %v258_v38 }
 0x171   :  { %v332_v50 = vpop.f32.mrf.mxu1 }
 0x172   :  { %v364_v52 = vadd.f32 %v362_v49, %v338_v48  ;;  %v333_v53 = vadd.f32 %v332_v50, %v257_v45 }
 0x174   :  { %v363_v57 = vadd.f32 %v361_v54, %v333_v53  ;;  %v388_v58 = vadd.f32 %v386_v46, %v364_v52 }
 0x176   :  { %v412_v60 = vadd.f32 %v410_v56, %v388_v58  ;;  %v387_v61 = vadd.f32 %v385_v55, %v363_v57 }
 0x178   :  { %v419_v62 = vsel %vm415_vm9, %v412_v60, 0.0  ;;  %v411_v63 = vadd.f32 %v409_v59, %v387_v61  ;;  %v4406_v59 = vld [vmem:[#allocation13] ss:$0 sm:$0xff] }
 0x179   :  { %420 = vadd.xlane.f32.xlu1 %v419_v62  ;;  %v4407_v62 = vld [vmem:[#allocation14] ss:$0 sm:$0xff] }
 0x17a   :  { %v416_v0 = vsel %vm415_vm9, %v411_v63, 0.0 }
 0x17b   :  { %417 = vadd.xlane.f32.xlu0 %v416_v0 }
 0x202   :  { %v421_v2 = vpop.xlane.xlu1 %420 }
 0x203   :  { %v424_v3 = vmul.f32 0.015625, %v421_v2  ;;  %v594_v2 = vld [vmem:[#allocation5] sm:$0xff] }
 0x204   :  { %v418_v4 = vpop.xlane.xlu0 %417 }
 0x205   :  { %v423_v5 = vmul.f32 0.015625, %v418_v4  ;;  %v426_v6 = vsub.f32 %v412_v60, %v424_v3 }
 0x207   :  { %v425_v7 = vsub.f32 %v411_v63, %v423_v5  ;;  %v428_v10 = vmul.f32 %v426_v6, %v426_v6 }
 0x209   :  { %v427_v8 = vmul.f32 %v425_v7, %v425_v7  ;;  %v432_v11 = vsel %vm415_vm9, %v428_v10, 0.0 }
 0x20b   :  { %v429_v9 = vsel %vm415_vm9, %v427_v8, 0.0 }
 0x20c   :  { %430 = vadd.xlane.f32.xlu0 %v429_v9 }
 0x210   :  { %433 = vadd.xlane.f32.xlu0 %v432_v11 }
 0x295   :  { %v431_v20 = vpop.xlane.xlu0 %430 }
 0x296   :  { %v435_v21 = vmul.f32 0.015625, %v431_v20  ;;  %v657_v20 = vld [vmem:[%s6384_s13 + $0x78] sm:$0xff] }
 0x297   :  { %680 = vmatprep.subr.mxu0 %v657_v20 }
 0x298   :  { %v437_v22 = vadd.f32 1e-05, %v435_v21  ;;  %v656_v21 = vld [vmem:[%s6384_s13 + $0x70] sm:$0xff] }
 0x299   :  { %v434_v23 = vpop.xlane.xlu0 %433  ;;  %681 = vmatpush1.msra.mxu0 %v656_v21 }
 0x29a   :  { %5099 = vrsqrt.f32 %v437_v22  ;;  %v436_v24 = vmul.f32 0.015625, %v434_v23  ;;  %v655_v22 = vld [vmem:[%s6384_s13 + $0x68] sm:$0xff]  ;;  %v654_v23 = vld [vmem:[%s6384_s13 + $0x60] sm:$0xff] }
 0x29b   :  { %682 = vmatprep.subr.mxu0 %v655_v22 }
 0x29c   :  { %v438_v25 = vadd.f32 1e-05, %v436_v24  ;;  %v653_v24 = vld [vmem:[%s6384_s13 + $0x58] sm:$0xff]  ;;  %683 = vmatpush1.msra.mxu0 %v654_v23 }
 0x29d   :  { %684 = vmatprep.subr.mxu0 %v653_v24 }
 0x29e   :  { %5101 = vrsqrt.f32 %v438_v25  ;;  %v652_v25 = vld [vmem:[%s6384_s13 + $0x50] sm:$0xff] }
 0x29f   :  { %685 = vmatpush1.msra.mxu0 %v652_v25 }
 0x2a7   :  { %v5100_v26 = vpop.eup %5099 }
 0x2a8   :  { %v441_v28 = vmul.f32 %v5100_v26, %v425_v7  ;;  %v651_v26 = vld [vmem:[%s6384_s13 + $0x48] sm:$0xff] }
 0x2a9   :  { %686 = vmatprep.subr.mxu0 %v651_v26 }
 0x2aa   :  { %v449_v30 = vmul.f32 %v4402_v27, %v441_v28  ;;  %v649_v28 = vld [vmem:[%s6384_s13 + $0x38] sm:$0xff] }
 0x2ab   :  { %v5102_v31 = vpop.eup %5101 }
 0x2ac   :  { %v442_v32 = vmul.f32 %v5102_v31, %v426_v6  ;;  %v457_v33 = vadd.f32 %v4403_v29, %v449_v30  ;;  %v647_v30 = vld [vmem:[%s6384_s13 + $0x28] sm:$0xff]  ;;  %v646_v31 = vld [vmem:[%s6384_s13 + $0x20] sm:$0xff] }
 0x2ae   :  { %v450_v34 = vmul.f32 %v4402_v27, %v442_v32  ;;  %v459_v35 = vmax.f32 %v457_v33, 0.0  ;;  %v650_v27 = vld [vmem:[%s6384_s13 + $0x40] sm:$0xff]  ;;  %v645_v32 = vld [vmem:[%s6384_s13 + $0x18] sm:$0xff]  ;;  %v644_v33 = vld [vmem:[%s6384_s13 + $0x10] sm:$0xff] }
 0x2af   :  { %687 = vmatpush1.msra.mxu0 %v650_v27 }
 0x2b0   :  { %v458_v36 = vadd.f32 %v4403_v29, %v450_v34  ;;  %4724 = vmatprep.mubr.msk.f32.mxu1 %vm415_vm9, %v459_v35  ;;  %v648_v29 = vld [vmem:[%s6384_s13 + $0x30] sm:$0xff]  ;;  %688 = vmatprep.subr.mxu0 %v649_v28  ;;  %v643_v34 = vld [vmem:[%s6384_s13 + $0x8] sm:$0xff]  ;;  %v642_v35 = vld [vmem:[%s6384_s13] sm:$0xff] }
 0x2b1   :  { %689 = vmatpush1.msra.mxu0 %v648_v29 }
 0x2b2   :  { %v460_v37 = vmax.f32 %v458_v36, 0.0  ;;  %690 = vmatprep.subr.mxu0 %v647_v30 }
 0x2b3   :  { %691 = vmatpush1.msra.mxu0 %v646_v31 }
 0x2b4   :  { %4725 = vmatmul.mubr.msk.f32.vlgmr.msra.gmra.mxu1 %vm415_vm9, %v460_v37  ;;  %692 = vmatprep.subr.mxu0 %v645_v32 }
 0x2b5   :  { %693 = vmatpush1.msra.mxu0 %v644_v33  ;;  %4729 = vmatprep.mubr.msk.f32.mxu1 %vm5485_vm10, %v5483_v1 }
 0x2b6   :  { %694 = vmatprep.subr.mxu0 %v643_v34 }
 0x2b7   :  { %695 = vmatpush1.msra.mxu0 %v642_v35 }
 0x2b8   :  { %4742 = vmatprep.subr.mxu0 %v5483_v1 }
 0x374   :  { %v4726_v38 = vpop.f32.mrf.mxu1 }
 0x375   :  { %v555_v39 = vsel %vm415_vm9, %v4726_v38, 0.0 }
 0x376   :  { %556 = vadd.xlane.f32.xlu0 %v555_v39  ;;  %v541_v40 = vpop.f32.mrf.mxu1 }
 0x377   :  { %v552_v41 = vsel %vm415_vm9, %v541_v40, 0.0 }
 0x378   :  { %553 = vadd.xlane.f32.xlu1 %v552_v41 }
 0x3ff   :  { %v557_v42 = vpop.xlane.xlu0 %556 }
 0x400   :  { %v559_v43 = vmul.f32 0.015625, %v557_v42 }
 0x401   :  { %v554_v44 = vpop.xlane.xlu1 %553 }
 0x402   :  { %v561_v45 = vsub.f32 %v4726_v38, %v559_v43  ;;  %v558_v46 = vmul.f32 0.015625, %v554_v44 }
 0x404   :  { %v560_v47 = vsub.f32 %v541_v40, %v558_v46  ;;  %v563_v48 = vmul.f32 %v561_v45, %v561_v45  ;;  %v4408_v46 = vld [vmem:[#allocation16] ss:$0 sm:$0xff] }
 0x406   :  { %v567_v49 = vsel %vm415_vm9, %v563_v48, 0.0  ;;  %v562_v50 = vmul.f32 %v560_v47, %v560_v47  ;;  %v4409_v48 = vld [vmem:[#allocation17] ss:$0 sm:$0xff] }
 0x407   :  { %568 = vadd.xlane.f32.xlu0 %v567_v49 }
 0x408   :  { %v564_v51 = vsel %vm415_vm9, %v562_v50, 0.0 }
 0x409   :  { %565 = vadd.xlane.f32.xlu1 %v564_v51 }
 0x490   :  { %v569_v52 = vpop.xlane.xlu0 %568 }
 0x491   :  { %v571_v53 = vmul.f32 0.015625, %v569_v52 }
 0x492   :  { %v566_v54 = vpop.xlane.xlu1 %565 }
 0x493   :  { %v573_v55 = vadd.f32 1e-05, %v571_v53  ;;  %v570_v56 = vmul.f32 0.015625, %v566_v54 }
 0x495   :  { %5103 = vrsqrt.f32 %v573_v55  ;;  %v572_v57 = vadd.f32 1e-05, %v570_v56 }
 0x497   :  { %5105 = vrsqrt.f32 %v572_v57 }
 0x4a2   :  { %v5104_v58 = vpop.eup %5103 }
 0x4a3   :  { %v577_v60 = vmul.f32 %v5104_v58, %v561_v45 }
 0x4a4   :  { %v5106_v61 = vpop.eup %5105 }
 0x4a5   :  { %v585_v63 = vmul.f32 %v4406_v59, %v577_v60  ;;  %v576_v0 = vmul.f32 %v5106_v61, %v560_v47 }
 0x4a7   :  { %v593_v3 = vadd.f32 %v4407_v62, %v585_v63  ;;  %v584_v4 = vmul.f32 %v4406_v59, %v576_v0 }
 0x4a9   :  { %v596_v5 = vadd.f32 %v594_v2, %v593_v3  ;;  %v592_v6 = vadd.f32 %v4407_v62, %v584_v4 }
 0x4ab   :  { %v602_v7 = vsel %vm415_vm9, %v596_v5, 0.0  ;;  %v595_v8 = vadd.f32 %v594_v2, %v592_v6 }
 0x4ac   :  { %603 = vadd.xlane.f32.xlu0 %v602_v7 }
 0x4ad   :  { %v599_v9 = vsel %vm415_vm9, %v595_v8, 0.0 }
 0x4ae   :  { %600 = vadd.xlane.f32.xlu1 %v599_v9 }
 0x535   :  { %v604_v10 = vpop.xlane.xlu0 %603 }
 0x536   :  { %v606_v11 = vmul.f32 0.015625, %v604_v10 }
 0x537   :  { %v601_v12 = vpop.xlane.xlu1 %600 }
 0x538   :  { %v608_v13 = vsub.f32 %v596_v5, %v606_v11  ;;  %v605_v14 = vmul.f32 0.015625, %v601_v12 }
 0x53a   :  { %v607_v15 = vsub.f32 %v595_v8, %v605_v14  ;;  %v610_v16 = vmul.f32 %v608_v13, %v608_v13 }
 0x53c   :  { %v614_v17 = vsel %vm415_vm9, %v610_v16, 0.0  ;;  %v609_v18 = vmul.f32 %v607_v15, %v607_v15 }
 0x53d   :  { %615 = vadd.xlane.f32.xlu0 %v614_v17 }
 0x53e   :  { %v611_v19 = vsel %vm415_vm9, %v609_v18, 0.0 }
 0x53f   :  { %612 = vadd.xlane.f32.xlu1 %v611_v19 }
 0x5c6   :  { %v616_v36 = vpop.xlane.xlu0 %615 }
 0x5c7   :  { %v618_v37 = vmul.f32 0.015625, %v616_v36 }
 0x5c8   :  { %v613_v38 = vpop.xlane.xlu1 %612 }
 0x5c9   :  { %v620_v39 = vadd.f32 1e-06, %v618_v37  ;;  %v617_v40 = vmul.f32 0.015625, %v613_v38 }
 0x5cb   :  { %5107 = vrsqrt.f32 %v620_v39  ;;  %v619_v41 = vadd.f32 1e-06, %v617_v40 }
 0x5cd   :  { %5109 = vrsqrt.f32 %v619_v41 }
 0x5d8   :  { %v5108_v42 = vpop.eup %5107 }
 0x5d9   :  { %v624_v45 = vmul.f32 %v5108_v42, %v608_v13 }
 0x5da   :  { %v5110_v43 = vpop.eup %5109 }
 0x5db   :  { %v623_v44 = vmul.f32 %v5110_v43, %v607_v15  ;;  %v632_v50 = vmul.f32 %v4408_v46, %v624_v45  ;;  %v5850_v15 = vld [vmem:[%s6419_s9] sm:$0xff] }
 0x5dd   :  { %v631_v47 = vmul.f32 %v4408_v46, %v623_v44  ;;  %v5769_v51 = vadd.f32 %v4409_v48, %v632_v50 }
 0x5df   :  { %v5764_v49 = vadd.f32 %v4409_v48, %v631_v47 }
 0x5e1   :  { %4410 = vmatmul.mubr.msk.f32.vlgmr.msra.gmra.mxu0 %vm415_vm9, %v5764_v49 }
 0x5e2   :  { %734 = vmatprep.mubr.f32.mxu0 %v5483_v1 }
 0x5e5   :  { %4411 = vmatmul.mubr.msk.f32.gmra.mxu0 %vm415_vm9, %v5769_v51 }
 0x5e6   :  { %4744 = vmatprep.mubr.msk.f32.mxu0 %vm5485_vm10, %v5483_v1 }
 0x6a1   :  { %v730_v52 = vpop.f32.mrf.mxu0 }
 0x6a2   :  { %743 = vrot.lane.b32.xlu1 %v730_v52, %s5484_s6  ;;  %v761_v63 = vmul.f32 0.25, %v730_v52 }
 0x6a3   :  { %v5774_v53 = vpop.f32.mrf.mxu0 }
 0x6a5   :  { %v736_v54 = vpop.f32.mrf.mxu0 }
 0x6a6   :  { %749 = vrot.lane.b32.xlu1 %v730_v52, %s5486_s4  ;;  %745 = vrot.lane.b32.xlu0 %v736_v54, %s5484_s6  ;;  %v762_v2 = vmul.f32 0.25, %v736_v54 }
 0x6a7   :  { %v5792_v62 = vpop.f32.mrf.mxu0 }
 0x6aa   :  { %751 = vrot.lane.b32.xlu1 %v736_v54, %s5486_s4  ;;  %755 = vrot.lane.b32.xlu0 %v730_v52, %s5487_s12 }
 0x6ae   :  { %757 = vrot.lane.b32.xlu1 %v736_v54, %s5487_s12  ;;  %789 = vrot.lane.b32.xlu0 %v730_v52, %s5488_s27 }
 0x6b2   :  { %867 = vrot.lane.b32.xlu1 %v736_v54, %s5488_s27 }
 0x714   :  { %v744_v55 = vpop.permute.xlu1 %743 }
 0x715   :  { %944 = vrot.lane.b32.xlu0 %v744_v55, %s5488_s27  ;;  %v763_v4 = vmul.f32 0.25, %v744_v55 }
 0x718   :  { %v750_v56 = vpop.permute.xlu1 %749  ;;  %v746_v57 = vpop.permute.xlu0 %745 }
 0x719   :  { %1098 = vrot.lane.b32.xlu0 %v750_v56, %s5488_s27  ;;  %1021 = vrot.lane.b32.xlu1 %v746_v57, %s5488_s27  ;;  %v765_v7 = vmul.f32 0.25, %v750_v56  ;;  %v764_v8 = vmul.f32 0.25, %v746_v57 }
 0x71c   :  { %v752_v58 = vpop.permute.xlu1 %751  ;;  %v756_v59 = vpop.permute.xlu0 %755 }
 0x71d   :  { %1175 = vrot.lane.b32.xlu1 %v752_v58, %s5488_s27  ;;  %1252 = vrot.lane.b32.xlu0 %v756_v59, %s5488_s27  ;;  %v766_v11 = vmul.f32 0.25, %v752_v58  ;;  %v767_v12 = vmul.f32 0.25, %v756_v59 }
 0x720   :  { %v758_v60 = vpop.permute.xlu1 %757  ;;  %v790_v61 = vpop.permute.xlu0 %789 }
 0x721   :  { %1329 = vrot.lane.b32.xlu1 %v758_v60, %s5488_s27  ;;  %4728 = vmatpush3.xpose.msk.msra.mxu1 %vm791_vm11, %v790_v61  ;;  %v768_v14 = vmul.f32 0.25, %v758_v60 }
 0x722   :  { %773 = vrot.lane.b32.xlu0 %v5792_v62, %s5484_s6  ;;  %4732 = vmatprep.subr.mxu1 %v5483_v1 }
 0x724   :  { %v868_v0 = vpop.permute.xlu1 %867  ;;  %4730 = vmatmul.mubr.msk.f32.vlgmr.msra.gmra.mxu1 %vm791_vm11, %v761_v63 }
 0x725   :  { %771 = vrot.lane.b32.xlu1 %v5774_v53, %s5484_s6  ;;  %4733 = vmatpush3.xpose.msk.msra.mxu1 %vm791_vm11, %v868_v0 }
 0x726   :  { %4734 = vmatprep.mubr.msk.f32.mxu1 %vm5485_vm10, %v5483_v1  ;;  %4737 = vmatprep.subr.mxu1 %v5483_v1 }
 0x728   :  { %4735 = vmatmul.mubr.msk.f32.vlgmr.msra.gmra.mxu1 %vm791_vm11, %v762_v2 }
 0x729   :  { %777 = vrot.lane.b32.xlu1 %v5774_v53, %s5486_s4  ;;  %4739 = vmatprep.mubr.msk.f32.mxu1 %vm5485_vm10, %v5483_v1 }
 0x72d   :  { %779 = vrot.lane.b32.xlu1 %v5792_v62, %s5486_s4 }
 0x787   :  { %v945_v3 = vpop.permute.xlu0 %944 }
 0x788   :  { %4738 = vmatpush3.xpose.msk.msra.mxu1 %vm791_vm11, %v945_v3 }
 0x789   :  { %4747 = vmatprep.subr.mxu1 %v5483_v1 }
 0x78b   :  { %v1022_v5 = vpop.permute.xlu1 %1021  ;;  %v1099_v6 = vpop.permute.xlu0 %1098  ;;  %4740 = vmatmul.mubr.msk.f32.vlgmr.msra.gmra.mxu1 %vm791_vm11, %v763_v4 }
 0x78c   :  { %4743 = vmatpush3.xpose.msk.msra.mxu0 %vm791_vm11, %v1022_v5  ;;  %4748 = vmatpush3.xpose.msk.msra.mxu1 %vm791_vm11, %v1099_v6 }
 0x78d   :  { %4749 = vmatprep.mubr.msk.f32.mxu1 %vm5485_vm10, %v5483_v1  ;;  %4752 = vmatprep.subr.mxu0 %v5483_v1 }
 0x78e   :  { %4757 = vmatprep.subr.mxu1 %v5483_v1 }
 0x78f   :  { %4745 = vmatmul.mubr.msk.f32.vlgmr.msra.gmra.mxu0 %vm791_vm11, %v764_v8  ;;  %v1176_v9 = vpop.permute.xlu1 %1175  ;;  %v1253_v10 = vpop.permute.xlu0 %1252  ;;  %4750 = vmatmul.mubr.msk.f32.vlgmr.msra.gmra.mxu1 %vm791_vm11, %v765_v7 }
 0x790   :  { %4753 = vmatpush3.xpose.msk.msra.mxu0 %vm791_vm11, %v1176_v9  ;;  %4758 = vmatpush3.xpose.msk.msra.mxu1 %vm791_vm11, %v1253_v10 }
 0x791   :  { %4754 = vmatprep.mubr.msk.f32.mxu0 %vm5485_vm10, %v5483_v1  ;;  %4759 = vmatprep.mubr.msk.f32.mxu1 %vm5485_vm10, %v5483_v1 }
 0x792   :  { %4762 = vmatprep.subr.mxu0 %v5483_v1  ;;  %4767 = vmatprep.subr.mxu1 %v5483_v1 }
 0x793   :  { %4755 = vmatmul.mubr.msk.f32.vlgmr.msra.gmra.mxu0 %vm791_vm11, %v766_v11  ;;  %v1330_v13 = vpop.permute.xlu1 %1329  ;;  %4760 = vmatmul.mubr.msk.f32.vlgmr.msra.gmra.mxu1 %vm791_vm11, %v767_v12 }
 0x794   :  { %4763 = vmatpush3.xpose.msk.msra.mxu0 %vm791_vm11, %v1330_v13  ;;  %4768 = vmatpush3.msra.mxu1 %v5774_v53  ;;  %v774_v7 = vpop.permute.xlu0 %773 }
 0x795   :  { %4764 = vmatprep.mubr.msk.f32.mxu0 %vm5485_vm10, %v5483_v1  ;;  %4772 = vmatprep.subr.mxu0 %v5483_v1 }
 0x796   :  { %4769 = vmatprep.mubr.msk.f32.mxu1 %vm5485_vm10, %v5483_v1  ;;  %4777 = vmatprep.subr.mxu1 %v5483_v1 }
 0x797   :  { %4765 = vmatmul.mubr.msk.f32.vlgmr.msra.gmra.mxu0 %vm791_vm11, %v768_v14  ;;  %v772_v5 = vpop.permute.xlu1 %771 }
 0x798   :  { %4773 = vmatpush3.msra.mxu0 %v5792_v62  ;;  %4774 = vmatprep.mubr.msk.f32.mxu0 %vm5485_vm10, %v5483_v1 }
 0x799   :  { %4782 = vmatprep.subr.mxu0 %v5483_v1 }
 0x79b   :  { %v778_v6 = vpop.permute.xlu1 %777 }
 0x79f   :  { %v780_v8 = vpop.permute.xlu1 %779 }
 0x7e4   :  { %v863_v16 = vpop.f32.mrf.mxu1 }
 0x7e5   :  { %v864_v17 = vadd.f32 %v863_v16, %v5850_v15 }
 0x7e6   :  { %v4731_v18 = vpop.f32.mrf.mxu1 }
 0x7e7   :  { %v1406_v19 = vmul.f32 1.442695, %v864_v17 }
 0x7e8   :  { %v940_v20 = vpop.f32.mrf.mxu1 }
 0x7e9   :  { %5111 = vpow2.f32 %v1406_v19  ;;  %v941_v21 = vadd.f32 %v940_v20, %v5850_v15 }
 0x7ea   :  { %v4736_v22 = vpop.f32.mrf.mxu1 }
 0x7eb   :  { %v1408_v23 = vmul.f32 1.442695, %v941_v21 }
 0x7ed   :  { %5113 = vpow2.f32 %v1408_v23 }
 0x7f6   :  { %v5854_v24 = vpop.eup %5111 }
 0x7f7   :  { %v1423_v25 = vsel %vm1422_vm12, %v5854_v24, 0.0 }
 0x7f8   :  { %1424 = vadd.xlane.f32.xlu0 %v1423_v25 }
 0x7fa   :  { %v5858_v26 = vpop.eup %5113 }
 0x7fb   :  { %v1426_v27 = vsel %vm1422_vm12, %v5858_v26, 0.0 }
 0x7fc   :  { %1427 = vadd.xlane.f32.xlu1 %v1426_v27 }
 0x84b   :  { %v1017_v28 = vpop.f32.mrf.mxu1 }
 0x84c   :  { %v1018_v29 = vadd.f32 %v1017_v28, %v5850_v15 }
 0x84d   :  { %v4741_v30 = vpop.f32.mrf.mxu1 }
 0x84e   :  { %v1410_v31 = vmul.f32 1.442695, %v1018_v29 }
 0x84f   :  { %v1094_v32 = vpop.f32.mrf.mxu0  ;;  %v1171_v33 = vpop.f32.mrf.mxu1 }
 0x850   :  { %5115 = vpow2.f32 %v1410_v31  ;;  %v1095_v34 = vadd.f32 %v1094_v32, %v5850_v15  ;;  %v1172_v35 = vadd.f32 %v1171_v33, %v5850_v15 }
 0x851   :  { %v4746_v36 = vpop.f32.mrf.mxu0  ;;  %v4751_v37 = vpop.f32.mrf.mxu1 }
 0x852   :  { %v1412_v38 = vmul.f32 1.442695, %v1095_v34  ;;  %v1414_v39 = vmul.f32 1.442695, %v1172_v35  ;;  %v2085_v34 = vld [vmem:[%s6385_s14 + $0x38] sm:$0xff]  ;;  %v2084_v35 = vld [vmem:[%s6385_s14 + $0x30] sm:$0xff] }
 0x853   :  { %v1248_v40 = vpop.f32.mrf.mxu0  ;;  %v1325_v41 = vpop.f32.mrf.mxu1 }
 0x854   :  { %5117 = vpow2.f32 %v1412_v38  ;;  %v1249_v42 = vadd.f32 %v1248_v40, %v5850_v15  ;;  %v1326_v43 = vadd.f32 %v1325_v41, %v5850_v15  ;;  %v2083_v40 = vld [vmem:[%s6385_s14 + $0x28] sm:$0xff]  ;;  %v2082_v41 = vld [vmem:[%s6385_s14 + $0x20] sm:$0xff] }
 0x855   :  { %5119 = vpow2.f32 %v1414_v39  ;;  %v4756_v44 = vpop.f32.mrf.mxu0  ;;  %v4761_v45 = vpop.f32.mrf.mxu1 }
 0x856   :  { %v1416_v46 = vmul.f32 1.442695, %v1249_v42  ;;  %v1418_v47 = vmul.f32 1.442695, %v1326_v43  ;;  %v2081_v42 = vld [vmem:[%s6385_s14 + $0x18] sm:$0xff]  ;;  %v2080_v43 = vld [vmem:[%s6385_s14 + $0x10] sm:$0xff] }
 0x857   :  { %v1402_v48 = vpop.f32.mrf.mxu0  ;;  %v2079_v44 = vld [vmem:[%s6385_s14 + $0x8] sm:$0xff]  ;;  %v2078_v45 = vld [vmem:[%s6385_s14] sm:$0xff] }
 0x858   :  { %5121 = vpow2.f32 %v1416_v46  ;;  %v1403_v50 = vadd.f32 %v1402_v48, %v5850_v15 }
 0x859   :  { %5123 = vpow2.f32 %v1418_v47  ;;  %v4766_v52 = vpop.f32.mrf.mxu0 }
 0x85a   :  { %v1420_v54 = vmul.f32 1.442695, %v1403_v50 }
 0x85c   :  { %5125 = vpow2.f32 %v1420_v54 }
 0x85d   :  { %v5116_v55 = vpop.eup %5115 }
 0x85e   :  { %v1429_v56 = vsel %vm1422_vm12, %v5116_v55, 0.0 }
 0x85f   :  { %1430 = vadd.xlane.f32.xlu0 %v1429_v56 }
 0x861   :  { %v5118_v57 = vpop.eup %5117 }
 0x862   :  { %v5120_v58 = vpop.eup %5119  ;;  %v1432_v59 = vsel %vm1422_vm12, %v5118_v57, 0.0 }
 0x863   :  { %v1435_v60 = vsel %vm1422_vm12, %v5120_v58, 0.0  ;;  %1433 = vadd.xlane.f32.xlu0 %v1432_v59 }
 0x864   :  { %1436 = vadd.xlane.f32.xlu1 %v1435_v60 }
 0x865   :  { %v5122_v61 = vpop.eup %5121 }
 0x866   :  { %v5871_v63 = vpop.eup %5123  ;;  %v1438_v0 = vsel %vm1422_vm12, %v5122_v61, 0.0 }
 0x867   :  { %v1441_v2 = vsel %vm1422_vm12, %v5871_v63, 0.0  ;;  %1439 = vadd.xlane.f32.xlu0 %v1438_v0 }
 0x868   :  { %1442 = vadd.xlane.f32.xlu1 %v1441_v2 }
 0x869   :  { %v5876_v3 = vpop.eup %5125 }
 0x86a   :  { %v1444_v4 = vsel %vm1422_vm12, %v5876_v3, 0.0 }
 0x86b   :  { %1445 = vadd.xlane.f32.xlu0 %v1444_v4 }
 0x879   :  { %785 = vrot.lane.b32.xlu1 %v5792_v62, %s5487_s12 }
 0x881   :  { %v1425_v9 = vpop.xlane.xlu0 %1424  ;;  %783 = vrot.lane.b32.xlu0 %v5774_v53, %s5487_s12 }
 0x882   :  { %5127 = vrcp.f32 %v1425_v9 }
 0x885   :  { %v1428_v10 = vpop.xlane.xlu1 %1427 }
 0x886   :  { %5129 = vrcp.f32 %v1428_v10 }
 0x88f   :  { %v5128_v11 = vpop.eup %5127 }
 0x890   :  { %v1448_v12 = vmul.f32 %v5128_v11, %v5854_v24 }
 0x892   :  { %4770 = vmatmul.mubr.msk.f32.vlgmr.msra.gmra.mxu1 %vm1422_vm12, %v1448_v12 }
 0x893   :  { %v5130_v13 = vpop.eup %5129  ;;  %4778 = vmatpush3.msra.mxu1 %v772_v5  ;;  %4779 = vmatprep.mubr.msk.f32.mxu1 %vm5485_vm10, %v5483_v1 }
 0x894   :  { %v1450_v62 = vmul.f32 %v5130_v13, %v5858_v26  ;;  %4787 = vmatprep.subr.mxu1 %v5483_v1 }
 0x896   :  { %4775 = vmatmul.mubr.msk.f32.vlgmr.msra.gmra.mxu0 %vm1422_vm12, %v1450_v62 }
 0x897   :  { %4783 = vmatpush3.msra.mxu0 %v774_v7  ;;  %4784 = vmatprep.mubr.msk.f32.mxu0 %vm5485_vm10, %v5483_v1 }
 0x898   :  { %4792 = vmatprep.subr.mxu0 %v5483_v1 }
 0x8e8   :  { %v1431_v53 = vpop.xlane.xlu0 %1430 }
 0x8e9   :  { %5131 = vrcp.f32 %v1431_v53 }
 0x8ec   :  { %v1434_v14 = vpop.xlane.xlu0 %1433 }
 0x8ed   :  { %v1437_v16 = vpop.xlane.xlu1 %1436  ;;  %5133 = vrcp.f32 %v1434_v14 }
 0x8ee   :  { %5135 = vrcp.f32 %v1437_v16 }
 0x8f0   :  { %v1440_v17 = vpop.xlane.xlu0 %1439 }
 0x8f1   :  { %v1443_v18 = vpop.xlane.xlu1 %1442  ;;  %5137 = vrcp.f32 %v1440_v17 }
 0x8f2   :  { %5139 = vrcp.f32 %v1443_v18 }
 0x8f4   :  { %v1446_v19 = vpop.xlane.xlu0 %1445 }
 0x8f5   :  { %5141 = vrcp.f32 %v1446_v19  ;;  %v786_v31 = vpop.permute.xlu1 %785 }
 0x8f6   :  { %v5132_v20 = vpop.eup %5131 }
 0x8f7   :  { %v1452_v21 = vmul.f32 %v5132_v20, %v5116_v55 }
 0x8f8   :  { %v784_v27 = vpop.permute.xlu0 %783 }
 0x8f9   :  { %4780 = vmatmul.mubr.msk.f32.vlgmr.msra.gmra.mxu1 %vm1422_vm12, %v1452_v21 }
 0x8fa   :  { %v5134_v22 = vpop.eup %5133  ;;  %4788 = vmatpush3.msra.mxu1 %v778_v6  ;;  %4789 = vmatprep.mubr.msk.f32.mxu1 %vm5485_vm10, %v5483_v1 }
 0x8fb   :  { %v5136_v23 = vpop.eup %5135  ;;  %4797 = vmatprep.subr.mxu1 %v5483_v1  ;;  %v1454_v24 = vmul.f32 %v5134_v22, %v5118_v57 }
 0x8fc   :  { %v1456_v25 = vmul.f32 %v5136_v23, %v5120_v58 }
 0x8fd   :  { %4785 = vmatmul.mubr.msk.f32.vlgmr.msra.gmra.mxu0 %vm1422_vm12, %v1454_v24  ;;  %v2218_v24 = vld [vmem:[#allocation19 + $0x38] sm:$0xff] }
 0x8fe   :  { %v5138_v26 = vpop.eup %5137  ;;  %4790 = vmatmul.mubr.msk.f32.vlgmr.msra.gmra.mxu1 %vm1422_vm12, %v1456_v25  ;;  %4793 = vmatpush3.msra.mxu0 %v780_v8  ;;  %v2217_v25 = vld [vmem:[#allocation19 + $0x30] sm:$0xff] }
 0x8ff   :  { %v5140_v28 = vpop.eup %5139  ;;  %4798 = vmatpush3.msra.mxu1 %v784_v27  ;;  %4794 = vmatprep.mubr.msk.f32.mxu0 %vm5485_vm10, %v5483_v1  ;;  %v1458_v29 = vmul.f32 %v5138_v26, %v5122_v61  ;;  %v2216_v26 = vld [vmem:[#allocation19 + $0x28] sm:$0xff]  ;;  %v2215_v27 = vld [vmem:[#allocation19 + $0x20] sm:$0xff] }
 0x900   :  { %4799 = vmatprep.mubr.msk.f32.mxu1 %vm5485_vm10, %v5483_v1  ;;  %4802 = vmatprep.subr.mxu0 %v5483_v1  ;;  %v1460_v30 = vmul.f32 %v5140_v28, %v5871_v63  ;;  %v2214_v28 = vld [vmem:[#allocation19 + $0x18] sm:$0xff] }
 0x901   :  { %4795 = vmatmul.mubr.msk.f32.vlgmr.msra.gmra.mxu0 %vm1422_vm12, %v1458_v29  ;;  %4807 = vmatprep.subr.mxu1 %v2085_v34  ;;  %v2213_v29 = vld [vmem:[#allocation19 + $0x10] sm:$0xff] }
 0x902   :  { %v5142_v32 = vpop.eup %5141  ;;  %4800 = vmatmul.mubr.msk.f32.vlgmr.msra.gmra.mxu1 %vm1422_vm12, %v1460_v30  ;;  %4803 = vmatpush3.msra.mxu0 %v786_v31  ;;  %v2212_v30 = vld [vmem:[#allocation19 + $0x8] sm:$0xff]  ;;  %v2211_v31 = vld [vmem:[#allocation19] sm:$0xff] }
 0x903   :  { %4804 = vmatprep.mubr.msk.f32.mxu0 %vm5485_vm10, %v5483_v1  ;;  %v1462_v33 = vmul.f32 %v5142_v32, %v5876_v3  ;;  %4808 = vmatpush3.msra.mxu1 %v2085_v34  ;;  %v2324_v32 = vld [vmem:[%s6390_s19 + $0x78] sm:$0xff]  ;;  %v2322_v34 = vld [vmem:[%s6390_s19 + $0x68] sm:$0xff] }
 0x904   :  { %4809 = vmatprep.subr.mxu1 %v2084_v35  ;;  %4826 = vmatprep.subr.mxu0 %v2218_v24 }
 0x905   :  { %4805 = vmatmul.mubr.msk.f32.vlgmr.msra.gmra.mxu0 %vm1422_vm12, %v1462_v33  ;;  %4810 = vmatpush3.msra.mxu1 %v2084_v35  ;;  %v2323_v33 = vld [vmem:[%s6390_s19 + $0x70] sm:$0xff]  ;;  %v2321_v35 = vld [vmem:[%s6390_s19 + $0x60] sm:$0xff] }
 0x906   :  { %4811 = vmatprep.subr.mxu1 %v2083_v40  ;;  %4827 = vmatpush3.msra.mxu0 %v2218_v24 }
 0x907   :  { %4812 = vmatpush3.msra.mxu1 %v2083_v40  ;;  %4828 = vmatprep.subr.mxu0 %v2217_v25  ;;  %v2316_v40 = vld [vmem:[%s6390_s19 + $0x38] sm:$0xff] }
 0x908   :  { %4813 = vmatprep.subr.mxu1 %v2082_v41  ;;  %4829 = vmatpush3.msra.mxu0 %v2217_v25 }
 0x909   :  { %4814 = vmatpush3.msra.mxu1 %v2082_v41  ;;  %4830 = vmatprep.subr.mxu0 %v2216_v26  ;;  %v2315_v41 = vld [vmem:[%s6390_s19 + $0x30] sm:$0xff] }
 0x90a   :  { %4815 = vmatprep.subr.mxu1 %v2081_v42  ;;  %4831 = vmatpush3.msra.mxu0 %v2216_v26 }
 0x90b   :  { %4816 = vmatpush3.msra.mxu1 %v2081_v42  ;;  %4832 = vmatprep.subr.mxu0 %v2215_v27  ;;  %v2314_v42 = vld [vmem:[%s6390_s19 + $0x28] sm:$0xff] }
 0x90c   :  { %4817 = vmatprep.subr.mxu1 %v2080_v43  ;;  %4833 = vmatpush3.msra.mxu0 %v2215_v27 }
 0x90d   :  { %4818 = vmatpush3.msra.mxu1 %v2080_v43  ;;  %4834 = vmatprep.subr.mxu0 %v2214_v28  ;;  %v2313_v43 = vld [vmem:[%s6390_s19 + $0x20] sm:$0xff] }
 0x90e   :  { %4819 = vmatprep.subr.mxu1 %v2079_v44  ;;  %4835 = vmatpush3.msra.mxu0 %v2214_v28  ;;  %v4461_v28 = vld [vmem:[%s6384_s13 + $0xf8] sm:$0xff] }
 0x90f   :  { %4820 = vmatpush3.msra.mxu1 %v2079_v44  ;;  %4836 = vmatprep.subr.mxu0 %v2213_v29 }
 0x910   :  { %4821 = vmatprep.subr.mxu1 %v2078_v45  ;;  %4837 = vmatpush3.msra.mxu0 %v2213_v29  ;;  %v4460_v29 = vld [vmem:[%s6384_s13 + $0xf0] sm:$0xff] }
 0x911   :  { %4822 = vmatpush3.msra.mxu1 %v2078_v45  ;;  %4838 = vmatprep.subr.mxu0 %v2212_v30 }
 0x912   :  { %4839 = vmatpush3.msra.mxu0 %v2212_v30  ;;  %4845 = vmatprep.subr.mxu1 %v2324_v32  ;;  %v4459_v30 = vld [vmem:[%s6384_s13 + $0xe8] sm:$0xff] }
 0x913   :  { %4840 = vmatprep.subr.mxu0 %v2211_v31 }
 0x914   :  { %4841 = vmatpush3.msra.mxu0 %v2211_v31  ;;  %v4458_v31 = vld [vmem:[%s6384_s13 + $0xe0] sm:$0xff] }
 0x915   :  { %2492 = vmatprep.subr.mxu0 %v4461_v28 }
 0x952   :  { %v1532_v36 = vpop.f32.mrf.mxu1 }
 0x954   :  { %v4771_v37 = vpop.f32.mrf.mxu1 }
 0x955   :  { %v2319_v37 = vld [vmem:[%s6390_s19 + $0x50] sm:$0xff] }
 0x956   :  { %v1605_v38 = vpop.f32.mrf.mxu0 }
 0x958   :  { %v4776_v39 = vpop.f32.mrf.mxu0 }
 0x959   :  { %v2317_v39 = vld [vmem:[%s6390_s19 + $0x40] sm:$0xff] }
 0x9b9   :  { %v1678_v46 = vpop.f32.mrf.mxu1 }
 0x9ba   :  { %2049 = vrot.lane.b32.xlu0 %v1678_v46, %s5489_s26 }
 0x9bb   :  { %v4781_v47 = vpop.f32.mrf.mxu1 }
 0x9bd   :  { %v1751_v48 = vpop.f32.mrf.mxu0 }
 0x9be   :  { %v1824_v50 = vpop.f32.mrf.mxu1  ;;  %2051 = vrot.lane.b32.xlu1 %v1751_v48, %s5489_s26 }
 0x9bf   :  { %2057 = vrot.lane.b32.xlu0 %v1824_v50, %s5490_s0  ;;  %v4786_v52 = vpop.f32.mrf.mxu0 }
 0x9c0   :  { %v4791_v54 = vpop.f32.mrf.mxu1 }
 0x9c1   :  { %v1897_v55 = vpop.f32.mrf.mxu0  ;;  %v4438_v54 = vld [vmem:[%s6386_s15] ss:$0 sm:$0xff] }
 0x9c2   :  { %v1970_v56 = vpop.f32.mrf.mxu1  ;;  %2059 = vrot.lane.b32.xlu1 %v1897_v55, %s5490_s0 }
 0x9c3   :  { %2065 = vrot.lane.b32.xlu0 %v1970_v56, %s5491_s30  ;;  %v4796_v57 = vpop.f32.mrf.mxu0  ;;  %v4439_v56 = vld [vmem:[%s6387_s16] ss:$0 sm:$0xff] }
 0x9c4   :  { %v4801_v58 = vpop.f32.mrf.mxu1 }
 0x9c5   :  { %v2043_v59 = vpop.f32.mrf.mxu0 }
 0x9c6   :  { %2067 = vrot.lane.b32.xlu1 %v2043_v59, %s5491_s30 }
 0x9c7   :  { %v4806_v60 = vpop.f32.mrf.mxu0 }
 0xa2c   :  { %v2050_v61 = vpop.permute.xlu0 %2049 }
 0xa2d   :  { %v2071_v2 = vsel %vm791_vm11, %v1532_v36, %v2050_v61  ;;  %v2320_v36 = vld [vmem:[%s6390_s19 + $0x58] sm:$0xff] }
 0xa30   :  { %v2052_v63 = vpop.permute.xlu1 %2051 }
 0xa31   :  { %v2058_v0 = vpop.permute.xlu0 %2057  ;;  %v2072_v7 = vsel %vm791_vm11, %v1605_v38, %v2052_v63  ;;  %v2318_v38 = vld [vmem:[%s6390_s19 + $0x48] sm:$0xff] }
 0xa32   :  { %v2073_v4 = vsel %vm259_vm0, %v2071_v2, %v2058_v0  ;;  %v2312_v0 = vld [vmem:[%s6390_s19 + $0x18] sm:$0xff]  ;;  %v2311_v2 = vld [vmem:[%s6390_s19 + $0x10] sm:$0xff] }
 0xa34   :  { %v2060_v3 = vpop.permute.xlu1 %2059 }
 0xa35   :  { %v2066_v5 = vpop.permute.xlu0 %2065  ;;  %v2074_v8 = vsel %vm259_vm0, %v2072_v7, %v2060_v3  ;;  %v2310_v3 = vld [vmem:[%s6390_s19 + $0x8] sm:$0xff] }
 0xa36   :  { %v2076_v6 = vsel %vm2075_vm13, %v2073_v4, %v2066_v5  ;;  %v2309_v4 = vld [vmem:[%s6390_s19] sm:$0xff] }
 0xa37   :  { %4823 = vmatprep.mubr.msk.f32.mxu1 %vm415_vm9, %v2076_v6  ;;  %v4440_v5 = vld [vmem:[%s6389_s18] ss:$0 sm:$0xff] }
 0xa38   :  { %v2068_v9 = vpop.permute.xlu1 %2067 }
 0xa39   :  { %v2077_v10 = vsel %vm2075_vm13, %v2074_v8, %v2068_v9 }
 0xa3a   :  { %4824 = vmatmul.mubr.msk.f32.vlgmr.msra.gmra.mxu1 %vm415_vm9, %v2077_v10 }
 0xa3b   :  { %4846 = vmatpush3.msra.mxu1 %v2324_v32  ;;  %v4457_v32 = vld [vmem:[%s6384_s13 + $0xd8] sm:$0xff] }
 0xa3c   :  { %4847 = vmatprep.subr.mxu1 %v2323_v33 }
 0xa3d   :  { %4848 = vmatpush3.msra.mxu1 %v2323_v33  ;;  %v4456_v33 = vld [vmem:[%s6384_s13 + $0xd0] sm:$0xff] }
 0xa3e   :  { %4849 = vmatprep.subr.mxu1 %v2322_v34 }
 0xa3f   :  { %4850 = vmatpush3.msra.mxu1 %v2322_v34  ;;  %v4455_v34 = vld [vmem:[%s6384_s13 + $0xc8] sm:$0xff] }
 0xa40   :  { %4851 = vmatprep.subr.mxu1 %v2321_v35 }
 0xa41   :  { %4852 = vmatpush3.msra.mxu1 %v2321_v35  ;;  %v4454_v35 = vld [vmem:[%s6384_s13 + $0xc0] sm:$0xff] }
 0xa42   :  { %4853 = vmatprep.subr.mxu1 %v2320_v36 }
 0xa43   :  { %4854 = vmatpush3.msra.mxu1 %v2320_v36  ;;  %v4453_v36 = vld [vmem:[%s6384_s13 + $0xb8] sm:$0xff] }
 0xa44   :  { %4855 = vmatprep.subr.mxu1 %v2319_v37 }
 0xa45   :  { %4856 = vmatpush3.msra.mxu1 %v2319_v37  ;;  %v4452_v37 = vld [vmem:[%s6384_s13 + $0xb0] sm:$0xff] }
 0xa46   :  { %4857 = vmatprep.subr.mxu1 %v2318_v38 }
 0xa47   :  { %4858 = vmatpush3.msra.mxu1 %v2318_v38  ;;  %v4451_v38 = vld [vmem:[%s6384_s13 + $0xa8] sm:$0xff] }
 0xa48   :  { %4859 = vmatprep.subr.mxu1 %v2317_v39 }
 0xa49   :  { %4860 = vmatpush3.msra.mxu1 %v2317_v39  ;;  %v4450_v39 = vld [vmem:[%s6384_s13 + $0xa0] sm:$0xff] }
 0xa4a   :  { %4861 = vmatprep.subr.mxu1 %v2316_v40 }
 0xa4b   :  { %4862 = vmatpush3.msra.mxu1 %v2316_v40  ;;  %v4449_v40 = vld [vmem:[%s6384_s13 + $0x98] sm:$0xff] }
 0xa4c   :  { %4863 = vmatprep.subr.mxu1 %v2315_v41 }
 0xa4d   :  { %4864 = vmatpush3.msra.mxu1 %v2315_v41  ;;  %v4448_v41 = vld [vmem:[%s6384_s13 + $0x90] sm:$0xff] }
 0xa4e   :  { %4865 = vmatprep.subr.mxu1 %v2314_v42 }
 0xa4f   :  { %4866 = vmatpush3.msra.mxu1 %v2314_v42  ;;  %v4447_v42 = vld [vmem:[%s6384_s13 + $0x88] sm:$0xff] }
 0xa50   :  { %4867 = vmatprep.subr.mxu1 %v2313_v43 }
 0xa51   :  { %4868 = vmatpush3.msra.mxu1 %v2313_v43  ;;  %v4446_v43 = vld [vmem:[%s6384_s13 + $0x80] sm:$0xff] }
 0xa52   :  { %4869 = vmatprep.subr.mxu1 %v2312_v0 }
 0xa53   :  { %4870 = vmatpush3.msra.mxu1 %v2312_v0 }
 0xa54   :  { %4871 = vmatprep.subr.mxu1 %v2311_v2 }
 0xa55   :  { %4872 = vmatpush3.msra.mxu1 %v2311_v2 }
 0xa56   :  { %4873 = vmatprep.subr.mxu1 %v2310_v3 }
 0xa57   :  { %4874 = vmatpush3.msra.mxu1 %v2310_v3 }
 0xa58   :  { %4875 = vmatprep.subr.mxu1 %v2309_v4 }
 0xa59   :  { %4876 = vmatpush3.msra.mxu1 %v2309_v4 }
 0xa5a   :  { %4895 = vmatprep.subr.mxu1 %v5483_v1 }
 0xafa   :  { %v4825_v11 = vpop.f32.mrf.mxu1 }
 0xafb   :  { %v2164_v12 = vadd.f32 %v4825_v11, %v5769_v51 }
 0xafc   :  { %v2158_v13 = vpop.f32.mrf.mxu1 }
 0xafd   :  { %v2159_v62 = vadd.f32 %v2158_v13, %v5764_v49  ;;  %v2172_v53 = vsel %vm415_vm9, %v2164_v12, 0.0 }
 0xafe   :  { %2173 = vadd.xlane.f32.xlu1 %v2172_v53 }
 0xaff   :  { %v2169_v14 = vsel %vm415_vm9, %v2159_v62, 0.0 }
 0xb00   :  { %2170 = vadd.xlane.f32.xlu0 %v2169_v14 }
 0xb87   :  { %v2174_v16 = vpop.xlane.xlu1 %2173 }
 0xb88   :  { %v2176_v17 = vmul.f32 0.015625, %v2174_v16 }
 0xb89   :  { %v2171_v18 = vpop.xlane.xlu0 %2170 }
 0xb8a   :  { %v2175_v19 = vmul.f32 0.015625, %v2171_v18  ;;  %v5954_v20 = vsub.f32 %v2164_v12, %v2176_v17  ;;  %v4443_v12 = vld [vmem:[%s6391_s20] ss:$0 sm:$0xff] }
 0xb8c   :  { %v5956_v21 = vsub.f32 %v2159_v62, %v2175_v19  ;;  %v2180_v49 = vmul.f32 %v5954_v20, %v5954_v20 }
 0xb8e   :  { %v2179_v51 = vmul.f32 %v5956_v21, %v5956_v21  ;;  %v2184_v23 = vsel %vm415_vm9, %v2180_v49, 0.0 }
 0xb90   :  { %v2181_v22 = vsel %vm415_vm9, %v2179_v51, 0.0 }
 0xb91   :  { %2182 = vadd.xlane.f32.xlu0 %v2181_v22 }
 0xb95   :  { %2185 = vadd.xlane.f32.xlu0 %v2184_v23 }
 0xc1a   :  { %v2183_v44 = vpop.xlane.xlu0 %2182 }
 0xc1b   :  { %v2187_v45 = vmul.f32 0.015625, %v2183_v44 }
 0xc1d   :  { %v2189_v46 = vadd.f32 1e-06, %v2187_v45 }
 0xc1e   :  { %v2186_v47 = vpop.xlane.xlu0 %2185 }
 0xc1f   :  { %5143 = vrsqrt.f32 %v2189_v46  ;;  %v2188_v48 = vmul.f32 0.015625, %v2186_v47 }
 0xc21   :  { %v2190_v50 = vadd.f32 1e-06, %v2188_v48 }
 0xc23   :  { %5145 = vrsqrt.f32 %v2190_v50 }
 0xc2c   :  { %v5144_v52 = vpop.eup %5143 }
 0xc2d   :  { %v2193_v55 = vmul.f32 %v5144_v52, %v5956_v21 }
 0xc2f   :  { %v2201_v57 = vmul.f32 %v4438_v54, %v2193_v55 }
 0xc30   :  { %v5146_v58 = vpop.eup %5145 }
 0xc31   :  { %v2194_v59 = vmul.f32 %v5146_v58, %v5954_v20  ;;  %v2209_v60 = vadd.f32 %v4439_v56, %v2201_v57  ;;  %v4444_v57 = vld [vmem:[%s6392_s21] ss:$0 sm:$0xff] }
 0xc33   :  { %v2202_v61 = vmul.f32 %v4438_v54, %v2194_v59  ;;  %4842 = vmatprep.mubr.msk.f32.mxu0 %vm415_vm9, %v2209_v60  ;;  %v4445_v59 = vld [vmem:[%s6393_s22] ss:$0 sm:$0xff] }
 0xc35   :  { %v2210_v63 = vadd.f32 %v4439_v56, %v2202_v61 }
 0xc37   :  { %4843 = vmatmul.mubr.msk.f32.vlgmr.msra.gmra.mxu0 %vm415_vm9, %v2210_v63 }
 0xc38   :  { %2540 = vmatprep.mubr.f32.mxu0 %v5483_v1  ;;  %2493 = vmatpush1.msra.mxu0 %v4460_v29 }
 0xc39   :  { %2494 = vmatprep.subr.mxu0 %v4459_v30 }
 0xc3a   :  { %2495 = vmatpush1.msra.mxu0 %v4458_v31 }
 0xc3b   :  { %2496 = vmatprep.subr.mxu0 %v4457_v32 }
 0xc3c   :  { %2497 = vmatpush1.msra.mxu0 %v4456_v33 }
 0xc3d   :  { %2498 = vmatprep.subr.mxu0 %v4455_v34 }
 0xc3e   :  { %2499 = vmatpush1.msra.mxu0 %v4454_v35 }
 0xc3f   :  { %2500 = vmatprep.subr.mxu0 %v4453_v36 }
 0xc40   :  { %2501 = vmatpush1.msra.mxu0 %v4452_v37 }
 0xc41   :  { %2502 = vmatprep.subr.mxu0 %v4451_v38 }
 0xc42   :  { %2503 = vmatpush1.msra.mxu0 %v4450_v39 }
 0xc43   :  { %2504 = vmatprep.subr.mxu0 %v4449_v40 }
 0xc44   :  { %2505 = vmatpush1.msra.mxu0 %v4448_v41 }
 0xc45   :  { %2506 = vmatprep.subr.mxu0 %v4447_v42 }
 0xc46   :  { %2507 = vmatpush1.msra.mxu0 %v4446_v43 }
 0xc47   :  { %4880 = vmatprep.subr.mxu0 %v5483_v1 }
 0xcf7   :  { %v4844_v6 = vpop.f32.mrf.mxu0 }
 0xcf8   :  { %v2304_v7 = vadd.f32 %v4844_v6, %v4440_v5 }
 0xcf9   :  { %v2298_v8 = vpop.f32.mrf.mxu0 }
 0xcfa   :  { %v2299_v9 = vadd.f32 %v4440_v5, %v2298_v8  ;;  %v2308_v11 = vmax.f32 %v2304_v7, 0.0 }
 0xcfc   :  { %v2307_v10 = vmax.f32 %v2299_v9, 0.0 }
 0xcfe   :  { %4877 = vmatprep.mubr.f32.mxu1 %v2307_v10 }
 0xcff   :  { %4878 = vmatmul.mubr.f32.vlgmr.msra.gmra.mxu1 %v2308_v11 }
 0xd00   :  { %4897 = vmatprep.mubr.msk.f32.mxu1 %vm5485_vm10, %v5483_v1 }
 0xdbf   :  { %v4879_v13 = vpop.f32.mrf.mxu1 }
 0xdc0   :  { %v2404_v62 = vadd.f32 %v4879_v13, %v4443_v12 }
 0xdc1   :  { %v2398_v53 = vpop.f32.mrf.mxu1 }
 0xdc2   :  { %v2399_v14 = vadd.f32 %v4443_v12, %v2398_v53  ;;  %v2408_v16 = vadd.f32 %v2404_v62, %v2210_v63 }
 0xdc4   :  { %v2414_v17 = vsel %vm415_vm9, %v2408_v16, 0.0  ;;  %v2407_v18 = vadd.f32 %v2399_v14, %v2209_v60 }
 0xdc5   :  { %2415 = vadd.xlane.f32.xlu0 %v2414_v17 }
 0xdc6   :  { %v2411_v19 = vsel %vm415_vm9, %v2407_v18, 0.0 }
 0xdc7   :  { %2412 = vadd.xlane.f32.xlu1 %v2411_v19 }
 0xe4e   :  { %v2416_v20 = vpop.xlane.xlu0 %2415 }
 0xe4f   :  { %v2418_v21 = vmul.f32 0.015625, %v2416_v20 }
 0xe50   :  { %v2413_v51 = vpop.xlane.xlu1 %2412 }
 0xe51   :  { %v2420_v22 = vsub.f32 %v2408_v16, %v2418_v21  ;;  %v2417_v49 = vmul.f32 0.015625, %v2413_v51 }
 0xe53   :  { %v2419_v23 = vsub.f32 %v2407_v18, %v2417_v49  ;;  %v2422_v24 = vmul.f32 %v2420_v22, %v2420_v22 }
 0xe55   :  { %v2426_v25 = vsel %vm415_vm9, %v2422_v24, 0.0  ;;  %v2421_v26 = vmul.f32 %v2419_v23, %v2419_v23 }
 0xe56   :  { %2427 = vadd.xlane.f32.xlu0 %v2426_v25 }
 0xe57   :  { %v2423_v27 = vsel %vm415_vm9, %v2421_v26, 0.0 }
 0xe58   :  { %2424 = vadd.xlane.f32.xlu1 %v2423_v27 }
 0xedf   :  { %v2428_v44 = vpop.xlane.xlu0 %2427 }
 0xee0   :  { %v2430_v45 = vmul.f32 0.015625, %v2428_v44 }
 0xee1   :  { %v2425_v46 = vpop.xlane.xlu1 %2424 }
 0xee2   :  { %v2432_v47 = vadd.f32 1e-06, %v2430_v45  ;;  %v2429_v48 = vmul.f32 0.015625, %v2425_v46 }
 0xee4   :  { %5147 = vrsqrt.f32 %v2432_v47  ;;  %v2431_v50 = vadd.f32 1e-06, %v2429_v48 }
 0xee6   :  { %5149 = vrsqrt.f32 %v2431_v50 }
 0xef1   :  { %v5148_v52 = vpop.eup %5147 }
 0xef2   :  { %v2436_v56 = vmul.f32 %v5148_v52, %v2420_v22 }
 0xef3   :  { %v5150_v54 = vpop.eup %5149 }
 0xef4   :  { %v2435_v55 = vmul.f32 %v5150_v54, %v2419_v23  ;;  %v2444_v61 = vmul.f32 %v4444_v57, %v2436_v56 }
 0xef6   :  { %v2443_v58 = vmul.f32 %v4444_v57, %v2435_v55  ;;  %v6096_v63 = vadd.f32 %v4445_v59, %v2444_v61  ;;  %v5191_v61 = vld [vmem:[%s6419_s9] sm:$0xff] }
 0xef8   :  { %v6091_v60 = vadd.f32 %v4445_v59, %v2443_v58 }
 0xefa   :  { %4462 = vmatmul.mubr.msk.f32.vlgmr.msra.gmra.mxu0 %vm415_vm9, %v6091_v60 }
 0xefb   :  { %2546 = vmatprep.mubr.f32.mxu0 %v5483_v1 }
 0xefe   :  { %4463 = vmatmul.mubr.msk.f32.gmra.mxu0 %vm415_vm9, %v6096_v63 }
 0xeff   :  { %4882 = vmatprep.mubr.msk.f32.mxu0 %vm5485_vm10, %v5483_v1 }
 0xfba   :  { %v2542_v0 = vpop.f32.mrf.mxu0 }
 0xfbb   :  { %2555 = vrot.lane.b32.xlu1 %v2542_v0, %s5484_s6  ;;  %v2573_v12 = vmul.f32 0.25, %v2542_v0 }
 0xfbc   :  { %v6103_v2 = vpop.f32.mrf.mxu0 }
 0xfbe   :  { %v2548_v3 = vpop.f32.mrf.mxu0 }
 0xfbf   :  { %2561 = vrot.lane.b32.xlu1 %v2542_v0, %s5486_s4  ;;  %2557 = vrot.lane.b32.xlu0 %v2548_v3, %s5484_s6  ;;  %v2574_v62 = vmul.f32 0.25, %v2548_v3 }
 0xfc0   :  { %v6117_v11 = vpop.f32.mrf.mxu0 }
 0xfc3   :  { %2563 = vrot.lane.b32.xlu1 %v2548_v3, %s5486_s4  ;;  %2567 = vrot.lane.b32.xlu0 %v2542_v0, %s5487_s12 }
 0xfc7   :  { %2569 = vrot.lane.b32.xlu1 %v2548_v3, %s5487_s12  ;;  %2601 = vrot.lane.b32.xlu0 %v2542_v0, %s5488_s27 }
 0xfcb   :  { %2678 = vrot.lane.b32.xlu1 %v2548_v3, %s5488_s27 }
0x102d   :  { %v2556_v4 = vpop.permute.xlu1 %2555 }
0x102e   :  { %2755 = vrot.lane.b32.xlu0 %v2556_v4, %s5488_s27  ;;  %v2575_v14 = vmul.f32 0.25, %v2556_v4 }
0x1031   :  { %v2562_v5 = vpop.permute.xlu1 %2561  ;;  %v2558_v6 = vpop.permute.xlu0 %2557 }
0x1032   :  { %2909 = vrot.lane.b32.xlu0 %v2562_v5, %s5488_s27  ;;  %2832 = vrot.lane.b32.xlu1 %v2558_v6, %s5488_s27  ;;  %v2577_v18 = vmul.f32 0.25, %v2562_v5  ;;  %v2576_v19 = vmul.f32 0.25, %v2558_v6 }
0x1035   :  { %v2564_v7 = vpop.permute.xlu1 %2563  ;;  %v2568_v8 = vpop.permute.xlu0 %2567 }
0x1036   :  { %2986 = vrot.lane.b32.xlu1 %v2564_v7, %s5488_s27  ;;  %3063 = vrot.lane.b32.xlu0 %v2568_v8, %s5488_s27  ;;  %v2578_v51 = vmul.f32 0.25, %v2564_v7  ;;  %v2579_v22 = vmul.f32 0.25, %v2568_v8 }
0x1039   :  { %v2570_v9 = vpop.permute.xlu1 %2569  ;;  %v2602_v10 = vpop.permute.xlu0 %2601 }
0x103a   :  { %3140 = vrot.lane.b32.xlu1 %v2570_v9, %s5488_s27  ;;  %4881 = vmatpush3.xpose.msk.msra.mxu0 %vm791_vm11, %v2602_v10  ;;  %v2580_v23 = vmul.f32 0.25, %v2570_v9 }
0x103b   :  { %2585 = vrot.lane.b32.xlu0 %v6117_v11, %s5484_s6  ;;  %4885 = vmatprep.subr.mxu0 %v5483_v1 }
0x103d   :  { %v2679_v13 = vpop.permute.xlu1 %2678  ;;  %4883 = vmatmul.mubr.msk.f32.vlgmr.msra.gmra.mxu0 %vm791_vm11, %v2573_v12 }
0x103e   :  { %2583 = vrot.lane.b32.xlu1 %v6103_v2, %s5484_s6  ;;  %4886 = vmatpush3.xpose.msk.msra.mxu0 %vm791_vm11, %v2679_v13 }
0x103f   :  { %4887 = vmatprep.mubr.msk.f32.mxu0 %vm5485_vm10, %v5483_v1  ;;  %4890 = vmatprep.subr.mxu0 %v5483_v1 }
0x1041   :  { %4888 = vmatmul.mubr.msk.f32.vlgmr.msra.gmra.mxu0 %vm791_vm11, %v2574_v62 }
0x1042   :  { %2589 = vrot.lane.b32.xlu1 %v6103_v2, %s5486_s4  ;;  %4892 = vmatprep.mubr.msk.f32.mxu0 %vm5485_vm10, %v5483_v1 }
0x1046   :  { %2591 = vrot.lane.b32.xlu1 %v6117_v11, %s5486_s4 }
0x10a0   :  { %v2756_v53 = vpop.permute.xlu0 %2755 }
0x10a1   :  { %4891 = vmatpush3.xpose.msk.msra.mxu0 %vm791_vm11, %v2756_v53 }
0x10a2   :  { %4900 = vmatprep.subr.mxu0 %v5483_v1 }
0x10a4   :  { %v2833_v16 = vpop.permute.xlu1 %2832  ;;  %v2910_v17 = vpop.permute.xlu0 %2909  ;;  %4893 = vmatmul.mubr.msk.f32.vlgmr.msra.gmra.mxu0 %vm791_vm11, %v2575_v14 }
0x10a5   :  { %4896 = vmatpush3.xpose.msk.msra.mxu1 %vm791_vm11, %v2833_v16  ;;  %4901 = vmatpush3.xpose.msk.msra.mxu0 %vm791_vm11, %v2910_v17 }
0x10a6   :  { %4902 = vmatprep.mubr.msk.f32.mxu0 %vm5485_vm10, %v5483_v1  ;;  %4905 = vmatprep.subr.mxu1 %v5483_v1 }
0x10a7   :  { %4910 = vmatprep.subr.mxu0 %v5483_v1 }
0x10a8   :  { %4898 = vmatmul.mubr.msk.f32.vlgmr.msra.gmra.mxu1 %vm791_vm11, %v2576_v19  ;;  %v2987_v20 = vpop.permute.xlu1 %2986  ;;  %v3064_v21 = vpop.permute.xlu0 %3063  ;;  %4903 = vmatmul.mubr.msk.f32.vlgmr.msra.gmra.mxu0 %vm791_vm11, %v2577_v18 }
0x10a9   :  { %4906 = vmatpush3.xpose.msk.msra.mxu1 %vm791_vm11, %v2987_v20  ;;  %4911 = vmatpush3.xpose.msk.msra.mxu0 %vm791_vm11, %v3064_v21 }
0x10aa   :  { %4907 = vmatprep.mubr.msk.f32.mxu1 %vm5485_vm10, %v5483_v1  ;;  %4912 = vmatprep.mubr.msk.f32.mxu0 %vm5485_vm10, %v5483_v1 }
0x10ab   :  { %4915 = vmatprep.subr.mxu1 %v5483_v1  ;;  %4920 = vmatprep.subr.mxu0 %v5483_v1 }
0x10ac   :  { %4908 = vmatmul.mubr.msk.f32.vlgmr.msra.gmra.mxu1 %vm791_vm11, %v2578_v51  ;;  %v3141_v49 = vpop.permute.xlu1 %3140  ;;  %4913 = vmatmul.mubr.msk.f32.vlgmr.msra.gmra.mxu0 %vm791_vm11, %v2579_v22 }
0x10ad   :  { %4916 = vmatpush3.xpose.msk.msra.mxu1 %vm791_vm11, %v3141_v49  ;;  %4921 = vmatpush3.msra.mxu0 %v6103_v2  ;;  %v2586_v18 = vpop.permute.xlu0 %2585 }
0x10ae   :  { %4917 = vmatprep.mubr.msk.f32.mxu1 %vm5485_vm10, %v5483_v1  ;;  %4925 = vmatprep.subr.mxu1 %v5483_v1 }
0x10af   :  { %4922 = vmatprep.mubr.msk.f32.mxu0 %vm5485_vm10, %v5483_v1  ;;  %4930 = vmatprep.subr.mxu0 %v5483_v1 }
0x10b0   :  { %4918 = vmatmul.mubr.msk.f32.vlgmr.msra.gmra.mxu1 %vm791_vm11, %v2580_v23  ;;  %v2584_v16 = vpop.permute.xlu1 %2583 }
0x10b1   :  { %4926 = vmatpush3.msra.mxu1 %v6117_v11  ;;  %4927 = vmatprep.mubr.msk.f32.mxu1 %vm5485_vm10, %v5483_v1 }
0x10b2   :  { %4935 = vmatprep.subr.mxu1 %v5483_v1 }
0x10b4   :  { %v2590_v17 = vpop.permute.xlu1 %2589 }
0x10b8   :  { %v2592_v19 = vpop.permute.xlu1 %2591 }
0x10fd   :  { %v2674_v24 = vpop.f32.mrf.mxu0 }
0x10fe   :  { %v2675_v25 = vadd.f32 %v2674_v24, %v5850_v15 }
0x10ff   :  { %v4884_v26 = vpop.f32.mrf.mxu0 }
0x1100   :  { %v3217_v27 = vmul.f32 1.442695, %v2675_v25 }
0x1101   :  { %v2751_v28 = vpop.f32.mrf.mxu0 }
0x1102   :  { %5151 = vpow2.f32 %v3217_v27  ;;  %v2752_v29 = vadd.f32 %v2751_v28, %v5850_v15 }
0x1103   :  { %v4889_v30 = vpop.f32.mrf.mxu0 }
0x1104   :  { %v3219_v31 = vmul.f32 1.442695, %v2752_v29 }
0x1106   :  { %5153 = vpow2.f32 %v3219_v31 }
0x110f   :  { %v6174_v32 = vpop.eup %5151 }
0x1110   :  { %v3233_v33 = vsel %vm1422_vm12, %v6174_v32, 0.0 }
0x1111   :  { %3234 = vadd.xlane.f32.xlu0 %v3233_v33 }
0x1113   :  { %v6178_v34 = vpop.eup %5153 }
0x1114   :  { %v3236_v35 = vsel %vm1422_vm12, %v6178_v34, 0.0 }
0x1115   :  { %3237 = vadd.xlane.f32.xlu1 %v3236_v35 }
0x1164   :  { %v2828_v36 = vpop.f32.mrf.mxu0 }
0x1165   :  { %v2829_v37 = vadd.f32 %v2828_v36, %v5850_v15 }
0x1166   :  { %v4894_v38 = vpop.f32.mrf.mxu0 }
0x1167   :  { %v3221_v39 = vmul.f32 1.442695, %v2829_v37 }
0x1168   :  { %v2905_v40 = vpop.f32.mrf.mxu1  ;;  %v2982_v41 = vpop.f32.mrf.mxu0 }
0x1169   :  { %5155 = vpow2.f32 %v3221_v39  ;;  %v2906_v42 = vadd.f32 %v2905_v40, %v5850_v15  ;;  %v2983_v43 = vadd.f32 %v2982_v41, %v5850_v15 }
0x116a   :  { %v4899_v44 = vpop.f32.mrf.mxu1  ;;  %v4904_v45 = vpop.f32.mrf.mxu0 }
0x116b   :  { %v3223_v46 = vmul.f32 1.442695, %v2906_v42  ;;  %v3225_v47 = vmul.f32 1.442695, %v2983_v43  ;;  %v4495_v42 = vld [vmem:[%s6385_s14 + $0x78] sm:$0xff]  ;;  %v4494_v43 = vld [vmem:[%s6385_s14 + $0x70] sm:$0xff] }
0x116c   :  { %v3059_v48 = vpop.f32.mrf.mxu1  ;;  %v3136_v50 = vpop.f32.mrf.mxu0 }
0x116d   :  { %5157 = vpow2.f32 %v3223_v46  ;;  %v3060_v52 = vadd.f32 %v3059_v48, %v5850_v15  ;;  %v3137_v54 = vadd.f32 %v3136_v50, %v5850_v15  ;;  %v4492_v48 = vld [vmem:[%s6385_s14 + $0x60] sm:$0xff]  ;;  %v4491_v50 = vld [vmem:[%s6385_s14 + $0x58] sm:$0xff] }
0x116e   :  { %5159 = vpow2.f32 %v3225_v47  ;;  %v4909_v55 = vpop.f32.mrf.mxu1  ;;  %v4914_v56 = vpop.f32.mrf.mxu0  ;;  %v4493_v47 = vld [vmem:[%s6385_s14 + $0x68] sm:$0xff] }
0x116f   :  { %v3227_v57 = vmul.f32 1.442695, %v3060_v52  ;;  %v3229_v58 = vmul.f32 1.442695, %v3137_v54  ;;  %v4490_v52 = vld [vmem:[%s6385_s14 + $0x50] sm:$0xff]  ;;  %v4489_v54 = vld [vmem:[%s6385_s14 + $0x48] sm:$0xff] }
0x1170   :  { %v3213_v59 = vpop.f32.mrf.mxu1  ;;  %v4488_v55 = vld [vmem:[%s6385_s14 + $0x40] sm:$0xff] }
0x1171   :  { %5161 = vpow2.f32 %v3227_v57  ;;  %v3214_v0 = vadd.f32 %v5191_v61, %v3213_v59 }
0x1172   :  { %5163 = vpow2.f32 %v3229_v58  ;;  %v4919_v3 = vpop.f32.mrf.mxu1 }
0x1173   :  { %v3231_v4 = vmul.f32 1.442695, %v3214_v0 }
0x1175   :  { %5165 = vpow2.f32 %v3231_v4 }
0x1176   :  { %v5156_v5 = vpop.eup %5155 }
0x1177   :  { %v3239_v6 = vsel %vm1422_vm12, %v5156_v5, 0.0 }
0x1178   :  { %3240 = vadd.xlane.f32.xlu0 %v3239_v6 }
0x117a   :  { %v5158_v15 = vpop.eup %5157 }
0x117b   :  { %v5160_v7 = vpop.eup %5159  ;;  %v3242_v8 = vsel %vm1422_vm12, %v5158_v15, 0.0 }
0x117c   :  { %3243 = vadd.xlane.f32.xlu0 %v3242_v8  ;;  %v3245_v9 = vsel %vm1422_vm12, %v5160_v7, 0.0 }
0x117d   :  { %3246 = vadd.xlane.f32.xlu1 %v3245_v9 }
0x117e   :  { %v5162_v10 = vpop.eup %5161 }
0x117f   :  { %v6193_v12 = vpop.eup %5163  ;;  %v3248_v13 = vsel %vm1422_vm12, %v5162_v10, 0.0 }
0x1180   :  { %3249 = vadd.xlane.f32.xlu0 %v3248_v13  ;;  %v3251_v62 = vsel %vm1422_vm12, %v6193_v12, 0.0 }
0x1181   :  { %3252 = vadd.xlane.f32.xlu1 %v3251_v62 }
0x1182   :  { %v6198_v53 = vpop.eup %5165 }
0x1183   :  { %v3254_v14 = vsel %vm1422_vm12, %v6198_v53, 0.0 }
0x1184   :  { %3255 = vadd.xlane.f32.xlu0 %v3254_v14 }
0x1192   :  { %2597 = vrot.lane.b32.xlu1 %v6117_v11, %s5487_s12 }
0x119a   :  { %v3235_v20 = vpop.xlane.xlu0 %3234  ;;  %2595 = vrot.lane.b32.xlu0 %v6103_v2, %s5487_s12 }
0x119b   :  { %5167 = vrcp.f32 %v3235_v20 }
0x119e   :  { %v3238_v21 = vpop.xlane.xlu1 %3237 }
0x119f   :  { %5169 = vrcp.f32 %v3238_v21 }
0x11a8   :  { %v5168_v51 = vpop.eup %5167 }
0x11a9   :  { %v3258_v22 = vmul.f32 %v5168_v51, %v6174_v32 }
0x11ab   :  { %4923 = vmatmul.mubr.msk.f32.vlgmr.msra.gmra.mxu0 %vm1422_vm12, %v3258_v22 }
0x11ac   :  { %v5170_v49 = vpop.eup %5169  ;;  %4931 = vmatpush3.msra.mxu0 %v2584_v16  ;;  %4932 = vmatprep.mubr.msk.f32.mxu0 %vm5485_vm10, %v5483_v1 }
0x11ad   :  { %v3260_v11 = vmul.f32 %v5170_v49, %v6178_v34  ;;  %4940 = vmatprep.subr.mxu0 %v5483_v1 }
0x11af   :  { %4928 = vmatmul.mubr.msk.f32.vlgmr.msra.gmra.mxu1 %vm1422_vm12, %v3260_v11 }
0x11b0   :  { %4936 = vmatpush3.msra.mxu1 %v2586_v18  ;;  %4937 = vmatprep.mubr.msk.f32.mxu1 %vm5485_vm10, %v5483_v1 }
0x11b1   :  { %4945 = vmatprep.subr.mxu1 %v5483_v1 }
0x1201   :  { %v3241_v2 = vpop.xlane.xlu0 %3240 }
0x1202   :  { %5171 = vrcp.f32 %v3241_v2 }
0x1205   :  { %v3244_v23 = vpop.xlane.xlu0 %3243 }
0x1206   :  { %5173 = vrcp.f32 %v3244_v23  ;;  %v3247_v24 = vpop.xlane.xlu1 %3246 }
0x1207   :  { %5175 = vrcp.f32 %v3247_v24 }
0x1209   :  { %v3250_v25 = vpop.xlane.xlu0 %3249 }
0x120a   :  { %5177 = vrcp.f32 %v3250_v25  ;;  %v3253_v26 = vpop.xlane.xlu1 %3252 }
0x120b   :  { %5179 = vrcp.f32 %v3253_v26 }
0x120d   :  { %v3256_v27 = vpop.xlane.xlu0 %3255 }
0x120e   :  { %5181 = vrcp.f32 %v3256_v27  ;;  %v2598_v39 = vpop.permute.xlu1 %2597 }
0x120f   :  { %v5172_v28 = vpop.eup %5171 }
0x1210   :  { %v3262_v29 = vmul.f32 %v5172_v28, %v5156_v5 }
0x1211   :  { %v2596_v35 = vpop.permute.xlu0 %2595 }
0x1212   :  { %4933 = vmatmul.mubr.msk.f32.vlgmr.msra.gmra.mxu0 %vm1422_vm12, %v3262_v29 }
0x1213   :  { %v5174_v30 = vpop.eup %5173  ;;  %4941 = vmatpush3.msra.mxu0 %v2590_v17  ;;  %4942 = vmatprep.mubr.msk.f32.mxu0 %vm5485_vm10, %v5483_v1 }
0x1214   :  { %v5176_v31 = vpop.eup %5175  ;;  %4950 = vmatprep.subr.mxu0 %v5483_v1  ;;  %v3264_v32 = vmul.f32 %v5174_v30, %v5158_v15  ;;  %v4031_v30 = vld [vmem:[#allocation19 + $0x78] sm:$0xff] }
0x1215   :  { %v3266_v33 = vmul.f32 %v5176_v31, %v5160_v7  ;;  %v4030_v31 = vld [vmem:[#allocation19 + $0x70] sm:$0xff] }
0x1216   :  { %4938 = vmatmul.mubr.msk.f32.vlgmr.msra.gmra.mxu1 %vm1422_vm12, %v3264_v32  ;;  %v4029_v32 = vld [vmem:[#allocation19 + $0x68] sm:$0xff] }
0x1217   :  { %v5178_v34 = vpop.eup %5177  ;;  %4943 = vmatmul.mubr.msk.f32.vlgmr.msra.gmra.mxu0 %vm1422_vm12, %v3266_v33  ;;  %4946 = vmatpush3.msra.mxu1 %v2592_v19  ;;  %v4028_v33 = vld [vmem:[#allocation19 + $0x60] sm:$0xff] }
0x1218   :  { %v5180_v36 = vpop.eup %5179  ;;  %4951 = vmatpush3.msra.mxu0 %v2596_v35  ;;  %4947 = vmatprep.mubr.msk.f32.mxu1 %vm5485_vm10, %v5483_v1  ;;  %v3268_v37 = vmul.f32 %v5178_v34, %v5162_v10  ;;  %v4027_v34 = vld [vmem:[#allocation19 + $0x58] sm:$0xff]  ;;  %v4026_v35 = vld [vmem:[#allocation19 + $0x50] sm:$0xff] }
0x1219   :  { %4952 = vmatprep.mubr.msk.f32.mxu0 %vm5485_vm10, %v5483_v1  ;;  %4955 = vmatprep.subr.mxu1 %v5483_v1  ;;  %v3270_v38 = vmul.f32 %v5180_v36, %v6193_v12  ;;  %v4025_v36 = vld [vmem:[#allocation19 + $0x48] sm:$0xff] }
0x121a   :  { %4948 = vmatmul.mubr.msk.f32.vlgmr.msra.gmra.mxu1 %vm1422_vm12, %v3268_v37  ;;  %4960 = vmatprep.subr.mxu0 %v4495_v42  ;;  %v4024_v37 = vld [vmem:[#allocation19 + $0x40] sm:$0xff] }
0x121b   :  { %v5182_v40 = vpop.eup %5181  ;;  %4953 = vmatmul.mubr.msk.f32.vlgmr.msra.gmra.mxu0 %vm1422_vm12, %v3270_v38  ;;  %4956 = vmatpush3.msra.mxu1 %v2598_v39  ;;  %v4521_v38 = vld [vmem:[%s6390_s19 + $0xf8] sm:$0xff]  ;;  %v4520_v39 = vld [vmem:[%s6390_s19 + $0xf0] sm:$0xff] }
0x121c   :  { %4957 = vmatprep.mubr.msk.f32.mxu1 %vm5485_vm10, %v5483_v1  ;;  %v3272_v41 = vmul.f32 %v5182_v40, %v6198_v53  ;;  %4961 = vmatpush3.msra.mxu0 %v4495_v42  ;;  %v4519_v40 = vld [vmem:[%s6390_s19 + $0xe8] sm:$0xff]  ;;  %v4517_v42 = vld [vmem:[%s6390_s19 + $0xd8] sm:$0xff] }
0x121d   :  { %4962 = vmatprep.subr.mxu0 %v4494_v43  ;;  %4979 = vmatprep.subr.mxu1 %v4031_v30 }
0x121e   :  { %4958 = vmatmul.mubr.msk.f32.vlgmr.msra.gmra.mxu1 %vm1422_vm12, %v3272_v41  ;;  %4963 = vmatpush3.msra.mxu0 %v4494_v43  ;;  %v4518_v41 = vld [vmem:[%s6390_s19 + $0xe0] sm:$0xff]  ;;  %v4516_v43 = vld [vmem:[%s6390_s19 + $0xd0] sm:$0xff] }
0x121f   :  { %4964 = vmatprep.subr.mxu0 %v4493_v47  ;;  %4980 = vmatpush3.msra.mxu1 %v4031_v30 }
0x1220   :  { %4965 = vmatpush3.msra.mxu0 %v4493_v47  ;;  %4981 = vmatprep.subr.mxu1 %v4030_v31  ;;  %v4511_v47 = vld [vmem:[%s6390_s19 + $0xa8] sm:$0xff] }
0x1221   :  { %4966 = vmatprep.subr.mxu0 %v4492_v48  ;;  %4982 = vmatpush3.msra.mxu1 %v4030_v31 }
0x1222   :  { %4967 = vmatpush3.msra.mxu0 %v4492_v48  ;;  %4983 = vmatprep.subr.mxu1 %v4029_v32  ;;  %v4510_v48 = vld [vmem:[%s6390_s19 + $0xa0] sm:$0xff] }
0x1223   :  { %4968 = vmatprep.subr.mxu0 %v4491_v50  ;;  %4984 = vmatpush3.msra.mxu1 %v4029_v32  ;;  %v4278_v32 = vld [vmem:[#allocation20 + $0x38] sm:$0xff] }
0x1224   :  { %4969 = vmatpush3.msra.mxu0 %v4491_v50  ;;  %4985 = vmatprep.subr.mxu1 %v4028_v33 }
0x1225   :  { %4970 = vmatprep.subr.mxu0 %v4490_v52  ;;  %4986 = vmatpush3.msra.mxu1 %v4028_v33  ;;  %v4277_v33 = vld [vmem:[#allocation20 + $0x30] sm:$0xff] }
0x1226   :  { %4971 = vmatpush3.msra.mxu0 %v4490_v52  ;;  %4987 = vmatprep.subr.mxu1 %v4027_v34 }
0x1227   :  { %4972 = vmatprep.subr.mxu0 %v4489_v54  ;;  %4988 = vmatpush3.msra.mxu1 %v4027_v34  ;;  %v4276_v34 = vld [vmem:[#allocation20 + $0x28] sm:$0xff] }
0x1228   :  { %4973 = vmatpush3.msra.mxu0 %v4489_v54  ;;  %4989 = vmatprep.subr.mxu1 %v4026_v35 }
0x1229   :  { %4974 = vmatprep.subr.mxu0 %v4488_v55  ;;  %4990 = vmatpush3.msra.mxu1 %v4026_v35  ;;  %v4275_v35 = vld [vmem:[#allocation20 + $0x20] sm:$0xff] }
0x122a   :  { %4975 = vmatpush3.msra.mxu0 %v4488_v55  ;;  %4991 = vmatprep.subr.mxu1 %v4025_v36 }
0x122b   :  { %4992 = vmatpush3.msra.mxu1 %v4025_v36  ;;  %4998 = vmatprep.subr.mxu0 %v4521_v38  ;;  %v4274_v36 = vld [vmem:[#allocation20 + $0x18] sm:$0xff] }
0x122c   :  { %4993 = vmatprep.subr.mxu1 %v4024_v37 }
0x122d   :  { %4994 = vmatpush3.msra.mxu1 %v4024_v37  ;;  %v4273_v37 = vld [vmem:[#allocation20 + $0x10] sm:$0xff] }
0x122e   :  { %5033 = vmatprep.subr.mxu1 %v4278_v32 }
0x126b   :  { %v3342_v44 = vpop.f32.mrf.mxu0 }
0x126d   :  { %v4924_v45 = vpop.f32.mrf.mxu0 }
0x126e   :  { %v4514_v45 = vld [vmem:[%s6390_s19 + $0xc0] sm:$0xff] }
0x126f   :  { %v3415_v46 = vpop.f32.mrf.mxu1 }
0x1271   :  { %v4929_v1 = vpop.f32.mrf.mxu1 }
0x1272   :  { %v4512_v1 = vld [vmem:[%s6390_s19 + $0xb0] sm:$0xff] }
0x12d2   :  { %v3488_v56 = vpop.f32.mrf.mxu0 }
0x12d3   :  { %3859 = vrot.lane.b32.xlu0 %v3488_v56, %s5489_s26 }
0x12d4   :  { %v4934_v57 = vpop.f32.mrf.mxu0 }
0x12d6   :  { %v3561_v58 = vpop.f32.mrf.mxu1 }
0x12d7   :  { %v3634_v59 = vpop.f32.mrf.mxu0  ;;  %3861 = vrot.lane.b32.xlu1 %v3561_v58, %s5489_s26 }
0x12d8   :  { %3867 = vrot.lane.b32.xlu0 %v3634_v59, %s5490_s0  ;;  %v4939_v61 = vpop.f32.mrf.mxu1  ;;  %v4500_v59 = vld [vmem:[%s6386_s15 + $0x1] ss:$0 sm:$0xff] }
0x12d9   :  { %v4944_v0 = vpop.f32.mrf.mxu0 }
0x12da   :  { %v3707_v3 = vpop.f32.mrf.mxu1  ;;  %v4501_v0 = vld [vmem:[%s6387_s16 + $0x1] ss:$0 sm:$0xff] }
0x12db   :  { %v3780_v4 = vpop.f32.mrf.mxu0  ;;  %3869 = vrot.lane.b32.xlu1 %v3707_v3, %s5490_s0 }
0x12dc   :  { %3875 = vrot.lane.b32.xlu0 %v3780_v4, %s5491_s30  ;;  %v4949_v5 = vpop.f32.mrf.mxu1 }
0x12dd   :  { %v4954_v6 = vpop.f32.mrf.mxu0 }
0x12de   :  { %v3853_v15 = vpop.f32.mrf.mxu1 }
0x12df   :  { %3877 = vrot.lane.b32.xlu1 %v3853_v15, %s5491_s30 }
0x12e0   :  { %v4959_v7 = vpop.f32.mrf.mxu1 }
0x1345   :  { %v3860_v8 = vpop.permute.xlu0 %3859 }
0x1346   :  { %v3881_v12 = vsel %vm791_vm11, %v3342_v44, %v3860_v8  ;;  %v4515_v44 = vld [vmem:[%s6390_s19 + $0xc8] sm:$0xff]  ;;  %v4509_v8 = vld [vmem:[%s6390_s19 + $0x98] sm:$0xff] }
0x1349   :  { %v3862_v9 = vpop.permute.xlu1 %3861 }
0x134a   :  { %v3868_v10 = vpop.permute.xlu0 %3867  ;;  %v3882_v16 = vsel %vm791_vm11, %v3415_v46, %v3862_v9  ;;  %v4513_v46 = vld [vmem:[%s6390_s19 + $0xb8] sm:$0xff]  ;;  %v4508_v9 = vld [vmem:[%s6390_s19 + $0x90] sm:$0xff] }
0x134b   :  { %v3883_v62 = vsel %vm259_vm0, %v3881_v12, %v3868_v10  ;;  %v4507_v10 = vld [vmem:[%s6390_s19 + $0x88] sm:$0xff]  ;;  %v4506_v12 = vld [vmem:[%s6390_s19 + $0x80] sm:$0xff] }
0x134d   :  { %v3870_v13 = vpop.permute.xlu1 %3869 }
0x134e   :  { %v3876_v53 = vpop.permute.xlu0 %3875  ;;  %v3884_v17 = vsel %vm259_vm0, %v3882_v16, %v3870_v13  ;;  %v4503_v13 = vld [vmem:[%s6389_s18 + $0x1] ss:$0 sm:$0xff] }
0x134f   :  { %v3885_v14 = vsel %vm2075_vm13, %v3883_v62, %v3876_v53 }
0x1350   :  { %4976 = vmatprep.mubr.msk.f32.mxu0 %vm415_vm9, %v3885_v14 }
0x1351   :  { %v3878_v18 = vpop.permute.xlu1 %3877 }
0x1352   :  { %v3886_v19 = vsel %vm2075_vm13, %v3884_v17, %v3878_v18 }
0x1353   :  { %4977 = vmatmul.mubr.msk.f32.vlgmr.msra.gmra.mxu0 %vm415_vm9, %v3886_v19  ;;  %v4523_v19 = vld [vmem:[%s6391_s20 + $0x1] ss:$0 sm:$0xff] }
0x1354   :  { %4999 = vmatpush3.msra.mxu0 %v4521_v38  ;;  %v4272_v38 = vld [vmem:[#allocation20 + $0x8] sm:$0xff] }
0x1355   :  { %5000 = vmatprep.subr.mxu0 %v4520_v39 }
0x1356   :  { %5001 = vmatpush3.msra.mxu0 %v4520_v39  ;;  %v4271_v39 = vld [vmem:[#allocation20] sm:$0xff] }
0x1357   :  { %5002 = vmatprep.subr.mxu0 %v4519_v40 }
0x1358   :  { %5003 = vmatpush3.msra.mxu0 %v4519_v40 }
0x1359   :  { %5004 = vmatprep.subr.mxu0 %v4518_v41 }
0x135a   :  { %5005 = vmatpush3.msra.mxu0 %v4518_v41 }
0x135b   :  { %5006 = vmatprep.subr.mxu0 %v4517_v42 }
0x135c   :  { %5007 = vmatpush3.msra.mxu0 %v4517_v42 }
0x135d   :  { %5008 = vmatprep.subr.mxu0 %v4516_v43 }
0x135e   :  { %5009 = vmatpush3.msra.mxu0 %v4516_v43 }
0x135f   :  { %5010 = vmatprep.subr.mxu0 %v4515_v44 }
0x1360   :  { %5011 = vmatpush3.msra.mxu0 %v4515_v44 }
0x1361   :  { %5012 = vmatprep.subr.mxu0 %v4514_v45 }
0x1362   :  { %5013 = vmatpush3.msra.mxu0 %v4514_v45 }
0x1363   :  { %5014 = vmatprep.subr.mxu0 %v4513_v46 }
0x1364   :  { %5015 = vmatpush3.msra.mxu0 %v4513_v46 }
0x1365   :  { %5016 = vmatprep.subr.mxu0 %v4512_v1 }
0x1366   :  { %5017 = vmatpush3.msra.mxu0 %v4512_v1  ;;  %v4526_v1 = vld [vmem:[%s6392_s21 + $0x1] ss:$0 sm:$0xff]  ;;  %s5492_s21 = smov [#allocation22]  }
0x1367   :  { %5018 = vmatprep.subr.mxu0 %v4511_v47  ;;  %s4374_s26 = sshll.u32 %s5492_s21, 4  ;;  %s4375_s26 = int_to_ptr.vmem [resolvable:$true] %s4374_s26 }
0x1368   :  { %5019 = vmatpush3.msra.mxu0 %v4511_v47  ;;  %p5437_p5 = scmp.lt.s32.totalorder %s4375_s26, %s4375_s26 }
0x1369   :  { %5020 = vmatprep.subr.mxu0 %v4510_v48 }
0x136a   :  { %5021 = vmatpush3.msra.mxu0 %v4510_v48 }
0x136b   :  { %5022 = vmatprep.subr.mxu0 %v4509_v8 }
0x136c   :  { %5023 = vmatpush3.msra.mxu0 %v4509_v8 }
0x136d   :  { %5024 = vmatprep.subr.mxu0 %v4508_v9 }
0x136e   :  { %5025 = vmatpush3.msra.mxu0 %v4508_v9 }
0x136f   :  { %5026 = vmatprep.subr.mxu0 %v4507_v10 }
0x1370   :  { %5027 = vmatpush3.msra.mxu0 %v4507_v10 }
0x1371   :  { %5028 = vmatprep.subr.mxu0 %v4506_v12 }
0x1372   :  { %5029 = vmatpush3.msra.mxu0 %v4506_v12 }
0x1413   :  { %v4978_v20 = vpop.f32.mrf.mxu0 }
0x1414   :  { %v3974_v21 = vadd.f32 %v4978_v20, %v6096_v63 }
0x1415   :  { %v3968_v51 = vpop.f32.mrf.mxu0 }
0x1416   :  { %v3969_v22 = vadd.f32 %v3968_v51, %v6091_v60  ;;  %v3984_v49 = vsel %vm415_vm9, %v3974_v21, 0.0 }
0x1417   :  { %3985 = vadd.xlane.f32.xlu1 %v3984_v49 }
0x1418   :  { %v3981_v11 = vsel %vm415_vm9, %v3969_v22, 0.0 }
0x1419   :  { %3982 = vadd.xlane.f32.xlu0 %v3981_v11 }
0x14a0   :  { %v3986_v2 = vpop.xlane.xlu1 %3985 }
0x14a1   :  { %v3988_v23 = vmul.f32 0.015625, %v3986_v2 }
0x14a2   :  { %v3983_v24 = vpop.xlane.xlu0 %3982 }
0x14a3   :  { %v3987_v25 = vmul.f32 0.015625, %v3983_v24  ;;  %v6276_v26 = vsub.f32 %v3974_v21, %v3988_v23 }
0x14a5   :  { %v6278_v27 = vsub.f32 %v3969_v22, %v3987_v25  ;;  %v3992_v60 = vmul.f32 %v6276_v26, %v6276_v26 }
0x14a7   :  { %v3991_v63 = vmul.f32 %v6278_v27, %v6278_v27  ;;  %v3996_v29 = vsel %vm415_vm9, %v3992_v60, 0.0 }
0x14a9   :  { %v3993_v28 = vsel %vm415_vm9, %v3991_v63, 0.0 }
0x14aa   :  { %3994 = vadd.xlane.f32.xlu0 %v3993_v28 }
0x14ae   :  { %3997 = vadd.xlane.f32.xlu0 %v3996_v29 }
0x1533   :  { %v3995_v50 = vpop.xlane.xlu0 %3994 }
0x1534   :  { %v3999_v52 = vmul.f32 0.015625, %v3995_v50 }
0x1536   :  { %v4001_v54 = vadd.f32 1e-06, %v3999_v52 }
0x1537   :  { %v3998_v55 = vpop.xlane.xlu0 %3997 }
0x1538   :  { %5183 = vrsqrt.f32 %v4001_v54  ;;  %v4000_v56 = vmul.f32 0.015625, %v3998_v55  ;;  %v4527_v54 = vld [vmem:[%s6393_s22 + $0x1] ss:$0 sm:$0xff]  ;;  %s5432_s22 = scalar_lea.vmem %s4375_s26, 256 }
0x1539   :  { %p5433_p4 = scmp.ne.s32.totalorder %s4375_s26, %s5432_s22  ;;  %p5438_p6 = scmp.lt.s32.totalorder %s5432_s22, %s5432_s22 }
0x153a   :  { %v4002_v57 = vadd.f32 1e-06, %v4000_v56 }
0x153b   :  { %p5439_p7 = por %p5438_p6, %p5437_p5 }
0x153c   :  { %5185 = vrsqrt.f32 %v4002_v57 }
0x153d   :  { %p5440_p8 = pnand %p5439_p7, %p5433_p4 }
0x1545   :  { %v5184_v58 = vpop.eup %5183 }
0x1546   :  { %v4005_v61 = vmul.f32 %v5184_v58, %v6278_v27  ;;  %v4528_v58 = vld [vmem:[%s6395_s24] ss:$0 sm:$0xff] }
0x1548   :  { %v4013_v3 = vmul.f32 %v4500_v59, %v4005_v61 }
0x1549   :  { %v5186_v4 = vpop.eup %5185 }
0x154a   :  { %v4006_v5 = vmul.f32 %v5186_v4, %v6276_v26  ;;  %v4021_v6 = vadd.f32 %v4501_v0, %v4013_v3 }
0x154c   :  { %v4014_v15 = vmul.f32 %v4500_v59, %v4006_v5  ;;  %4995 = vmatprep.mubr.msk.f32.mxu1 %vm415_vm9, %v4021_v6 }
0x154e   :  { %v4022_v7 = vadd.f32 %v4501_v0, %v4014_v15 }
0x1550   :  { %4996 = vmatmul.mubr.msk.f32.vlgmr.msra.gmra.mxu1 %vm415_vm9, %v4022_v7 }
0x1551   :  { %5034 = vmatpush3.msra.mxu1 %v4278_v32 }
0x1552   :  { %5035 = vmatprep.subr.mxu1 %v4277_v33 }
0x1553   :  { %5036 = vmatpush3.msra.mxu1 %v4277_v33 }
0x1554   :  { %5037 = vmatprep.subr.mxu1 %v4276_v34 }
0x1555   :  { %5038 = vmatpush3.msra.mxu1 %v4276_v34 }
0x1556   :  { %5039 = vmatprep.subr.mxu1 %v4275_v35 }
0x1557   :  { %5040 = vmatpush3.msra.mxu1 %v4275_v35 }
0x1558   :  { %5041 = vmatprep.subr.mxu1 %v4274_v36 }
0x1559   :  { %5042 = vmatpush3.msra.mxu1 %v4274_v36 }
0x155a   :  { %5043 = vmatprep.subr.mxu1 %v4273_v37 }
0x155b   :  { %5044 = vmatpush3.msra.mxu1 %v4273_v37 }
0x155c   :  { %5045 = vmatprep.subr.mxu1 %v4272_v38 }
0x155d   :  { %5046 = vmatpush3.msra.mxu1 %v4272_v38 }
0x155e   :  { %5047 = vmatprep.subr.mxu1 %v4271_v39 }
0x155f   :  { %5048 = vmatpush3.msra.mxu1 %v4271_v39 }
0x1610   :  { %v4997_v62 = vpop.f32.mrf.mxu1 }
0x1611   :  { %v4118_v53 = vadd.f32 %v4997_v62, %v4503_v13 }
0x1612   :  { %v4112_v14 = vpop.f32.mrf.mxu1 }
0x1613   :  { %v4113_v16 = vadd.f32 %v4503_v13, %v4112_v14  ;;  %v4122_v18 = vmax.f32 %v4118_v53, 0.0 }
0x1615   :  { %v4121_v17 = vmax.f32 %v4113_v16, 0.0 }
0x1617   :  { %5030 = vmatprep.mubr.f32.mxu0 %v4121_v17 }
0x1618   :  { %5031 = vmatmul.mubr.f32.vlgmr.msra.gmra.mxu0 %v4122_v18 }
0x16d8   :  { %v5032_v20 = vpop.f32.mrf.mxu0 }
0x16d9   :  { %v4220_v21 = vadd.f32 %v5032_v20, %v4523_v19 }
0x16da   :  { %v4214_v51 = vpop.f32.mrf.mxu0 }
0x16db   :  { %v4224_v22 = vadd.f32 %v4220_v21, %v4022_v7  ;;  %v4215_v49 = vadd.f32 %v4523_v19, %v4214_v51 }
0x16dd   :  { %v4232_v11 = vsel %vm415_vm9, %v4224_v22, 0.0  ;;  %v4223_v2 = vadd.f32 %v4215_v49, %v4021_v6 }
0x16de   :  { %4233 = vadd.xlane.f32.xlu0 %v4232_v11 }
0x16df   :  { %v4229_v23 = vsel %vm415_vm9, %v4223_v2, 0.0 }
0x16e0   :  { %4230 = vadd.xlane.f32.xlu1 %v4229_v23 }
0x1767   :  { %v4234_v24 = vpop.xlane.xlu0 %4233 }
0x1768   :  { %v4236_v25 = vmul.f32 0.015625, %v4234_v24 }
0x1769   :  { %v4231_v26 = vpop.xlane.xlu1 %4230 }
0x176a   :  { %v4238_v27 = vsub.f32 %v4224_v22, %v4236_v25  ;;  %v4235_v63 = vmul.f32 0.015625, %v4231_v26 }
0x176c   :  { %v4237_v28 = vsub.f32 %v4223_v2, %v4235_v63  ;;  %v4240_v60 = vmul.f32 %v4238_v27, %v4238_v27 }
0x176e   :  { %v4244_v29 = vsel %vm415_vm9, %v4240_v60, 0.0  ;;  %v4239_v30 = vmul.f32 %v4237_v28, %v4237_v28 }
0x176f   :  { %4245 = vadd.xlane.f32.xlu0 %v4244_v29 }
0x1770   :  { %v4241_v31 = vsel %vm415_vm9, %v4239_v30, 0.0 }
0x1771   :  { %4242 = vadd.xlane.f32.xlu1 %v4241_v31 }
0x17f8   :  { %v4246_v40 = vpop.xlane.xlu0 %4245 }
0x17f9   :  { %v4248_v41 = vmul.f32 0.015625, %v4246_v40 }
0x17fa   :  { %v4243_v42 = vpop.xlane.xlu1 %4242 }
0x17fb   :  { %v4250_v43 = vadd.f32 1e-06, %v4248_v41  ;;  %v4247_v44 = vmul.f32 0.015625, %v4243_v42 }
0x17fd   :  { %5187 = vrsqrt.f32 %v4250_v43  ;;  %v4249_v45 = vadd.f32 1e-06, %v4247_v44 }
0x17ff   :  { %5189 = vrsqrt.f32 %v4249_v45 }
0x180a   :  { %v5188_v46 = vpop.eup %5187 }
0x180b   :  { %v4254_v47 = vmul.f32 %v5188_v46, %v4238_v27 }
0x180c   :  { %v5190_v48 = vpop.eup %5189 }
0x180d   :  { %v4253_v50 = vmul.f32 %v5190_v48, %v4237_v28  ;;  %v4262_v52 = vmul.f32 %v4526_v1, %v4254_v47 }
0x180f   :  { %v4261_v55 = vmul.f32 %v4526_v1, %v4253_v50  ;;  %v4270_v57 = vadd.f32 %v4527_v54, %v4262_v52 }
0x1811   :  { %v4269_v56 = vadd.f32 %v4527_v54, %v4261_v55 }
0x1813   :  { %5049 = vmatprep.mubr.msk.f32.mxu1 %vm415_vm9, %v4269_v56 }
0x1814   :  { %5050 = vmatmul.mubr.msk.f32.vlgmr.msra.gmra.mxu1 %vm415_vm9, %v4270_v57 }
0x18d4   :  { %v5051_v59 = vpop.f32.mrf.mxu1 }
0x18d5   :  { %v4364_v61 = vadd.f32 %v5051_v59, %v4528_v58 }
0x18d6   :  { %v4358_v0 = vpop.f32.mrf.mxu1 }
0x18d7   :  { %4368 = vst [vmem:[#allocation22 + $0x8] sm:$0xff] %v4364_v61  ;;  %v4359_v3 = vadd.f32 %v4528_v58, %v4358_v0 }
0x18d9   :  { %4367 = vst [vmem:[#allocation22] sm:$0xff] %v4359_v3 }
0x18da   :  { %5443 = shalt.err (!%p5440_p8)
}
0x18db   :  { %4380 = dma.vmem_to_hbm [thread:$0]  %s4375_s26, 256, %s6396_s25, [#allocation4], %s5472_s2, %s5472_s2, %s5473_s3  }
0x18dc   :  { %5466 = dma.done.wait [#allocation4], 256  }
0x18dd   :  { %5467 = vsyncadd [#allocation4], 4294967040 }
0x18de   :  { %4384 = vsyncpa [#allocation3], 1 }
0x18df   :  { %4385 = vsyncpa [#allocation6], 1 }
0x18e0   :  { %4386 = vsyncpa [#allocation9], 1 }
0x18e1   :  { %4387 = vsyncpa [#allocation12], 1 }
0x18e2   :  { %4388 = vsyncpa [#allocation15], 1 }
0x18e3   :  { %4389 = vsyncpa [#allocation18], 1 }
0x18e4   :  { %4390 = vsyncpa [#allocation21], 1 }
0x18e5   :  { %4391 = vsyncpa [#allocation4], 1 }

</bundles_post_ra>
